<compile_context>
chip_gen: v7x
topology: tpu7x:2x2x1
jax: 0.10.0
libtpu: 0.0.40
codegen_flags: <defaults>
</compile_context>

<pallas_src>
import functools

import numpy as np

import jax
import jax.numpy as jnp
from jax.experimental import pallas as pl
from jax.experimental.pallas import tpu as pltpu

K = 7          # spatial conv kernel size
P = K // 2     # padding


def _round_up(n, m):
    return ((n + m - 1) // m) * m


# ----------------------------------------------------------------------------
# Kernel
# ----------------------------------------------------------------------------
def cbam_kernel(x_ref, mlp_ref, conv_ref, cb_ref, o_ref, *,
                channels, hidden, rows):
    """One batch-block of CBAM.  x_ref block: (BB, C, H*W), lane-dense."""
    r_w1, r_b1, r_w2, r_b2 = rows

    x = x_ref[...].astype(jnp.float32)                         # (BB, C, HW)
    bb = x.shape[0]

    # ---------------- channel attention (MXU) -------------------------------
    avg_c = jnp.mean(x, axis=-1)                               # (BB, C)
    max_c = jnp.max(x, axis=-1)                                # (BB, C)
    pooled = jnp.concatenate([avg_c, max_c], axis=0)           # (2*BB, C)

    # Packed MLP constant: each segment starts on a sublane-aligned row.
    w1_t = mlp_ref[r_w1:r_w1 + channels, :hidden]              # (C, Hp)
    b1 = mlp_ref[r_b1:r_b1 + 1, :hidden]                       # (1, Hp)
    w2_t = mlp_ref[r_w2:r_w2 + hidden, :channels]              # (Hp, C)
    b2 = mlp_ref[r_b2:r_b2 + 1, :channels]                     # (1, C)

    h = jnp.maximum(
        jnp.dot(pooled, w1_t, preferred_element_type=jnp.float32) + b1, 0.0)
    y = jnp.dot(h, w2_t, preferred_element_type=jnp.float32) + b2   # (2*BB, C)
    chan = jax.nn.sigmoid(y[:bb] + y[bb:])                     # (BB, C)
    xs = x * chan[:, :, None]                                  # (BB, C, HW)

    # ---------------- spatial attention (fused Toeplitz conv, MXU) ----------
    avg_s = jnp.mean(xs, axis=1)                               # (BB, HW)
    max_s = jnp.max(xs, axis=1)                                # (BB, HW)
    sp = jnp.concatenate([avg_s, max_s], axis=-1).astype(conv_ref.dtype)
    conv = jnp.dot(sp, conv_ref[...],
                   preferred_element_type=jnp.float32) + cb_ref[0]  # (BB, HW)
    spatial = jax.nn.sigmoid(conv)

    o_ref[...] = (xs * spatial[:, None, :]).astype(o_ref.dtype)


# ----------------------------------------------------------------------------
# Wrapper-side glue
# ----------------------------------------------------------------------------
def _build_toeplitz(w_kk, H, W):
    """Dense (H*W, H*W) operator equivalent to a zero-padded KxK conv.

    M[i, j] = w[hi - hj + P, wi - wj + P] if that tap exists, else 0, so
    flat_out = flat_in @ M reproduces the padded convolution exactly.
    """
    hh = np.arange(H)
    ww = np.arange(W)
    dh = hh[:, None] - hh[None, :] + P
    dw = ww[:, None] - ww[None, :] + P
    valid = (((dh >= 0) & (dh < K))[:, None, :, None]
             & ((dw >= 0) & (dw < K))[None, :, None, :])       # (H, W, H, W)
    gathered = w_kk[np.clip(dh, 0, K - 1)[:, None, :, None],
                    np.clip(dw, 0, K - 1)[None, :, None, :]]
    m = jnp.where(jnp.asarray(valid), gathered, 0.0)
    return m.reshape(H * W, H * W).astype(jnp.float32)


def _pick_block_b(batch, bytes_per_image, budget_bytes, *, target=256):
    """Largest divisor of `batch` that fits the VMEM budget, capped at
    `target` rows (MXU M target: 256 on v6e/v7x), while keeping at least two
    grid steps so the 'parallel' batch axis can shard across TensorCores."""
    min_grid = 2 if batch >= 2 else 1
    best = 1
    for d in range(1, batch + 1):
        if batch % d:
            continue
        if d > target or batch // d < min_grid:
            continue
        if d * bytes_per_image <= budget_bytes:
            best = max(best, d)
    return best


def cbam_pallas(x, w1, b1, w2, b2, conv_w, conv_b,
                bn_gamma, bn_beta, bn_mean, bn_var, eps,
                *, block_b=None, spatial_mxu_dtype=jnp.bfloat16):
    B, C, H, W = x.shape
    HW = H * W
    hidden = w1.shape[0]

    # ---- fold eval-mode BN into the conv; build the fused Toeplitz operator --
    bn_scale = bn_gamma / jnp.sqrt(bn_var + eps)
    cw = (conv_w[0] * bn_scale).astype(jnp.float32)            # (2, K, K)
    cb = ((conv_b[0] - bn_mean) * bn_scale + bn_beta).reshape(1).astype(jnp.float32)
    # Rows [0:HW] act on the avg map, [HW:2HW] on the max map (matches the
    # in-kernel concat order).  bf16 operands -> single MXU pass.
    conv_op = jnp.concatenate(
        [_build_toeplitz(cw[0], H, W), _build_toeplitz(cw[1], H, W)],
        axis=0).astype(spatial_mxu_dtype)                      # (2*HW, HW)

    # ---- pack the channel-MLP parameters into one aligned f32 constant ------
    hidden_p = _round_up(max(hidden, 1), 128)                  # lane-aligned hidden
    r_w1 = 0
    r_b1 = _round_up(C, 8)
    r_w2 = _round_up(r_b1 + 1, 8)
    r_b2 = _round_up(r_w2 + hidden_p, 8)
    rows_total = _round_up(r_b2 + 1, 8)
    width = max(_round_up(C, 128), hidden_p)
    mlp = jnp.zeros((rows_total, width), jnp.float32)
    mlp = mlp.at[r_w1:r_w1 + C, :hidden].set(w1.T.astype(jnp.float32))
    mlp = mlp.at[r_b1, :hidden].set(b1.astype(jnp.float32))
    mlp = mlp.at[r_w2:r_w2 + hidden, :C].set(w2.T.astype(jnp.float32))
    mlp = mlp.at[r_b2, :C].set(b2.astype(jnp.float32))

    # Lane-dense view: last dim = H*W.  The global pools and the Toeplitz conv
    # require the FULL C and H*W extents in one block (specs below guarantee it).
    x_flat = x.reshape(B, C, HW)
    assert x_flat.shape[1:] == (C, HW)

    # ---- generation-aware VMEM budgeting ------------------------------------
    try:
        vmem_cap = int(pltpu.get_tpu_info().vmem_capacity_bytes)
    except Exception:
        vmem_cap = 64 << 20                    # conservative: v7x per-core VMEM
    # ~112 MiB usable on 128 MiB parts (v5e/v6e), ~56 MiB on 64 MiB parts (v7x).
    usable = min(vmem_cap - (8 << 20), (vmem_cap * 7) // 8)

    conv_bytes = conv_op.size * conv_op.dtype.itemsize
    mlp_bytes = mlp.size * 4
    # Constants are requested single-buffered; budget the double-buffered
    # fallback anyway.
    const_bytes = 2 * (conv_bytes + mlp_bytes)
    headroom = 4 << 20
    if const_bytes + headroom >= usable:
        # TODO(synk): pltpu.roll-based 49-tap conv for large H*W.
        raise NotImplementedError(
            "H*W too large for the dense Toeplitz spatial conv on this TPU")

    itemsize = x.dtype.itemsize
    # Per-image VMEM while one block is in flight: double-buffered in/out DMA
    # blocks plus ~3 live f32 intermediates (x, xs, xs*spatial) in the body.
    per_image = C * HW * (2 * itemsize + 2 * itemsize + 3 * 4)
    if block_b is None:
        block_b = _pick_block_b(B, per_image, usable - const_bytes - headroom)
    assert B % block_b == 0, (B, block_b)
    BB = block_b

    vmem_limit = int(min(usable,
                         max(BB * per_image + const_bytes + headroom, 32 << 20)))

    kernel = functools.partial(cbam_kernel, channels=C, hidden=hidden_p,
                               rows=(r_w1, r_b1, r_w2, r_b2))

    def call(single_buffer_consts):
        cmode = ({"pipeline_mode": pl.Buffered(1)}
                 if single_buffer_consts else {})
        grid_spec = pltpu.PrefetchScalarGridSpec(
            num_scalar_prefetch=0,
            grid=(B // BB,),
            in_specs=[
                pl.BlockSpec((BB, C, HW), lambda b: (b, 0, 0)),
                pl.BlockSpec(mlp.shape, lambda b: (0, 0), **cmode),
                pl.BlockSpec(conv_op.shape, lambda b: (0, 0), **cmode),
                pl.BlockSpec((1,), lambda b: (0,),
                             memory_space=pltpu.MemorySpace.SMEM),
            ],
            out_specs=pl.BlockSpec((BB, C, HW), lambda b: (b, 0, 0)),
        )
        return pl.pallas_call(
            kernel,
            out_shape=jax.ShapeDtypeStruct((B, C, HW), x.dtype),
            grid_spec=grid_spec,
            compiler_params=pltpu.CompilerParams(
                dimension_semantics=("parallel",),
                vmem_limit_bytes=vmem_limit),
        )(x_flat, mlp, conv_op, cb)

    try:
        # Single-buffer the grid-invariant operands (saves VMEM + DMA work).
        out_flat = call(True)
    except Exception:
        # Fallback for jax versions without BlockSpec(pipeline_mode=...).
        out_flat = call(False)

    return out_flat.reshape(B, C, H, W)


# ----------------------------------------------------------------------------
# Pure-JAX reference (PyTorch forward, BN in eval mode)
# ----------------------------------------------------------------------------
def cbam_reference(x, w1, b1, w2, b2, conv_w, conv_b,
                   bn_gamma, bn_beta, bn_mean, bn_var, eps):
    B, C, H, W = x.shape
    avg = jnp.mean(x, axis=(2, 3))
    mx = jnp.max(x, axis=(2, 3))

    def fc(v):
        h = jnp.maximum(jnp.sum(v[:, None, :] * w1[None], axis=-1) + b1, 0.0)
        return jnp.sum(h[:, None, :] * w2[None], axis=-1) + b2

    chan = jax.nn.sigmoid(fc(avg) + fc(mx))[:, :, None, None]
    xs = x * chan
    avg_s = jnp.mean(xs, axis=1)
    max_s = jnp.max(xs, axis=1)
    sp = jnp.stack([avg_s, max_s], axis=1)
    spp = jnp.pad(sp, ((0, 0), (0, 0), (P, P), (P, P)))
    conv = jnp.zeros((B, H, W), jnp.float32) + conv_b[0]
    for c in range(2):
        for dh in range(K):
            for dw in range(K):
                conv = conv + conv_w[0, c, dh, dw] * spp[:, c, dh:dh + H, dw:dw + W]
    bn = (conv - bn_mean) / jnp.sqrt(bn_var + eps) * bn_gamma + bn_beta
    spatial = jax.nn.sigmoid(bn)[:, None, :, :]
    return xs * spatial


if __name__ == "__main__":
    B, C, H, W = 16, 32, 16, 16
    reduction = 16
    hidden = C // reduction

    key = jax.random.PRNGKey(0)
    kx, k1, k2, k3, k4, k5, k6 = jax.random.split(key, 7)

    x = jax.random.normal(kx, (B, C, H, W), jnp.float32)

    # fc = Linear(C, hidden) -> ReLU -> Linear(hidden, C)
    w1 = jax.random.normal(k1, (hidden, C), jnp.float32) * 0.1
    b1 = jax.random.normal(k2, (hidden,), jnp.float32) * 0.1
    w2 = jax.random.normal(k3, (C, hidden), jnp.float32) * 0.1
    b2 = jax.random.normal(k4, (C,), jnp.float32) * 0.1

    # conv = Conv2d(2, 1, k=7, pad=3) -> BatchNorm2d(1) -> Sigmoid
    conv_w = jax.random.normal(k5, (1, 2, K, K), jnp.float32) * 0.1   # OIHW
    conv_b = jax.random.normal(k6, (1,), jnp.float32) * 0.1
    bn_gamma, bn_beta = jnp.float32(1.5), jnp.float32(0.1)
    bn_mean, bn_var = jnp.float32(0.05), jnp.float32(0.8)
    eps = jnp.float32(1e-5)

    args = (w1, b1, w2, b2, conv_w, conv_b, bn_gamma, bn_beta, bn_mean, bn_var, eps)

    ref = jax.block_until_ready(cbam_reference(x, *args))

    # 1) Fast path: bf16 MXU operands for the fused spatial-conv matmul.
    #    49-tap bf16 accumulation (f32 accumulator) => worst-case ~1e-2 relative.
    out = jax.block_until_ready(cbam_pallas(x, *args))
    assert out.shape == (B, C, H, W) and out.dtype == x.dtype
    assert jnp.allclose(out, ref, rtol=2e-2, atol=2e-2), \
        float(jnp.max(jnp.abs(out - ref)))

    # 2) f32 spatial-conv operands: tighter structural check.
    out32 = jax.block_until_ready(
        cbam_pallas(x, *args, spatial_mxu_dtype=jnp.float32))
    assert jnp.allclose(out32, ref, rtol=1e-2, atol=1e-2), \
        float(jnp.max(jnp.abs(out32 - ref)))

    # 3) Output dtype follows the input dtype (bf16 in -> bf16 out).
    x_bf = x.astype(jnp.bfloat16)
    ref_bf = cbam_reference(x_bf.astype(jnp.float32), *args)
    out_bf = jax.block_until_ready(cbam_pallas(x_bf, *args))
    assert out_bf.dtype == jnp.bfloat16 and out_bf.shape == (B, C, H, W)
    assert jnp.allclose(out_bf.astype(jnp.float32), ref_bf, rtol=4e-2, atol=4e-2)

    print("KERNEL_OK")
</pallas_src>

<mosaic_0001>
module attributes {stable_mosaic.version = 11 : i64} {
  func.func @cbam_kernel(%arg0: i32, %arg1: memref<8x32x256xf32, #tpu.memory_space<vmem>>, %arg2: memref<176x128xf32, #tpu.memory_space<vmem>>, %arg3: memref<512x256xbf16, #tpu.memory_space<vmem>>, %arg4: memref<1xf32, #tpu.memory_space<smem>>, %arg5: memref<8x32x256xf32, #tpu.memory_space<vmem>>) attributes {dimension_semantics = [#tpu.dimension_semantics<parallel>], iteration_bounds = array<i64: 2>, scalar_prefetch = 0 : i64, scratch_operands = 0 : i64, tpu.core_type = #tpu.core_type<tc>, window_params = [{transform_indices = @transform_0, window_bounds = array<i64: 8, 32, 256>}, {pipeline_mode = #tpu.pipeline_mode<synchronous>, transform_indices = @transform_1, window_bounds = array<i64: 176, 128>}, {pipeline_mode = #tpu.pipeline_mode<synchronous>, transform_indices = @transform_2, window_bounds = array<i64: 512, 256>}, {transform_indices = @transform_3, window_bounds = array<i64: 1>}, {transform_indices = @transform_4, window_bounds = array<i64: 8, 32, 256>}]} {
    %c0 = arith.constant 0 : index
    %c0_0 = arith.constant 0 : index
    %c0_1 = arith.constant 0 : index
    %0 = vector.load %arg1[%c0, %c0_0, %c0_1] : memref<8x32x256xf32, #tpu.memory_space<vmem>>, vector<8x32x256xf32>
    %cst = arith.constant dense<0.000000e+00> : vector<8x32xf32>
    %1 = vector.multi_reduction <add>, %0, %cst [2] : vector<8x32x256xf32> to vector<8x32xf32>
    %cst_2 = arith.constant 2.560000e+02 : f32
    %2 = vector.broadcast %cst_2 : f32 to vector<8x32xf32>
    %3 = arith.divf %1, %2 : vector<8x32xf32>
    %cst_3 = arith.constant dense<0xFF800000> : vector<8x32xf32>
    %4 = vector.multi_reduction <maximumf>, %0, %cst_3 [2] : vector<8x32x256xf32> to vector<8x32xf32>
    %5 = tpu.concatenate %3, %4 in 0 : vector<8x32xf32>, vector<8x32xf32> -> vector<16x32xf32>
    %c0_4 = arith.constant 0 : index
    %c0_5 = arith.constant 0 : index
    %6 = vector.load %arg2[%c0_4, %c0_5] : memref<176x128xf32, #tpu.memory_space<vmem>>, vector<32x128xf32>
    %c32 = arith.constant 32 : index
    %c0_6 = arith.constant 0 : index
    %7 = vector.load %arg2[%c32, %c0_6] : memref<176x128xf32, #tpu.memory_space<vmem>>, vector<1x128xf32>
    %c40 = arith.constant 40 : index
    %c0_7 = arith.constant 0 : index
    %8 = vector.load %arg2[%c40, %c0_7] : memref<176x128xf32, #tpu.memory_space<vmem>>, vector<128x32xf32>
    %c168 = arith.constant 168 : index
    %c0_8 = arith.constant 0 : index
    %9 = vector.load %arg2[%c168, %c0_8] : memref<176x128xf32, #tpu.memory_space<vmem>>, vector<1x32xf32>
    %cst_9 = arith.constant dense<0.000000e+00> : vector<16x128xf32>
    %10 = tpu.matmul %5, %6, %cst_9 {dimension_numbers = #tpu.dot_dimension_numbers<[1], [0], [0], [1], [0, 0, 1, 1], [], []>} : vector<16x32xf32>, vector<32x128xf32>, vector<16x128xf32> -> vector<16x128xf32>
    %11 = vector.broadcast %7 : vector<1x128xf32> to vector<16x128xf32>
    %12 = arith.addf %10, %11 : vector<16x128xf32>
    %cst_10 = arith.constant 0.000000e+00 : f32
    %13 = vector.broadcast %cst_10 : f32 to vector<16x128xf32>
    %14 = arith.maximumf %12, %13 : vector<16x128xf32>
    %cst_11 = arith.constant dense<0.000000e+00> : vector<16x32xf32>
    %15 = tpu.matmul %14, %8, %cst_11 {dimension_numbers = #tpu.dot_dimension_numbers<[1], [0], [0], [1], [0, 0, 1, 1], [], []>} : vector<16x128xf32>, vector<128x32xf32>, vector<16x32xf32> -> vector<16x32xf32>
    %16 = vector.broadcast %9 : vector<1x32xf32> to vector<16x32xf32>
    %17 = arith.addf %15, %16 : vector<16x32xf32>
    %18 = vector.extract_strided_slice %17 {offsets = [0, 0], sizes = [8, 32], strides = [1, 1]} : vector<16x32xf32> to vector<8x32xf32>
    %19 = vector.extract_strided_slice %17 {offsets = [8, 0], sizes = [8, 32], strides = [1, 1]} : vector<16x32xf32> to vector<8x32xf32>
    %20 = arith.addf %18, %19 : vector<8x32xf32>
    %21 = arith.negf %20 : vector<8x32xf32>
    %22 = math.exp %21 : vector<8x32xf32>
    %cst_12 = arith.constant 1.000000e+00 : f32
    %23 = vector.broadcast %cst_12 : f32 to vector<8x32xf32>
    %24 = arith.addf %23, %22 : vector<8x32xf32>
    %25 = arith.divf %23, %24 : vector<8x32xf32>
    %26 = vector.shape_cast %25 : vector<8x32xf32> to vector<8x32x1xf32>
    %27 = vector.broadcast %26 : vector<8x32x1xf32> to vector<8x32x256xf32>
    %28 = arith.mulf %0, %27 : vector<8x32x256xf32>
    %cst_13 = arith.constant dense<0.000000e+00> : vector<8x256xf32>
    %29 = vector.multi_reduction <add>, %28, %cst_13 [1] : vector<8x32x256xf32> to vector<8x256xf32>
    %cst_14 = arith.constant 3.200000e+01 : f32
    %30 = vector.broadcast %cst_14 : f32 to vector<8x256xf32>
    %31 = arith.divf %29, %30 : vector<8x256xf32>
    %cst_15 = arith.constant dense<0xFF800000> : vector<8x256xf32>
    %32 = vector.multi_reduction <maximumf>, %28, %cst_15 [1] : vector<8x32x256xf32> to vector<8x256xf32>
    %33 = tpu.concatenate %31, %32 in 1 : vector<8x256xf32>, vector<8x256xf32> -> vector<8x512xf32>
    %34 = arith.truncf %33 : vector<8x512xf32> to vector<8x512xbf16>
    %c0_16 = arith.constant 0 : index
    %c0_17 = arith.constant 0 : index
    %35 = vector.load %arg3[%c0_16, %c0_17] : memref<512x256xbf16, #tpu.memory_space<vmem>>, vector<512x256xbf16>
    %cst_18 = arith.constant dense<0.000000e+00> : vector<8x256xf32>
    %36 = tpu.matmul %34, %35, %cst_18 {dimension_numbers = #tpu.dot_dimension_numbers<[1], [0], [0], [1], [0, 0, 1, 1], [], []>} : vector<8x512xbf16>, vector<512x256xbf16>, vector<8x256xf32> -> vector<8x256xf32>
    %c0_19 = arith.constant 0 : index
    %37 = memref.load %arg4[%c0_19] : memref<1xf32, #tpu.memory_space<smem>>
    %38 = vector.broadcast %37 : f32 to vector<8x256xf32>
    %39 = arith.addf %36, %38 : vector<8x256xf32>
    %40 = arith.negf %39 : vector<8x256xf32>
    %41 = math.exp %40 : vector<8x256xf32>
    %cst_20 = arith.constant 1.000000e+00 : f32
    %42 = vector.broadcast %cst_20 : f32 to vector<8x256xf32>
    %43 = arith.addf %42, %41 : vector<8x256xf32>
    %44 = arith.divf %42, %43 : vector<8x256xf32>
    %45 = vector.shape_cast %44 : vector<8x256xf32> to vector<8x1x256xf32>
    %46 = vector.broadcast %45 : vector<8x1x256xf32> to vector<8x32x256xf32>
    %47 = arith.mulf %28, %46 : vector<8x32x256xf32>
    %c0_21 = arith.constant 0 : index
    %c0_22 = arith.constant 0 : index
    %c0_23 = arith.constant 0 : index
    %48 = vector.load %arg5[%c0_21, %c0_22, %c0_23] : memref<8x32x256xf32, #tpu.memory_space<vmem>>, vector<8x32x256xf32>
    tpu.vector_store %arg5[%c0_21, %c0_22, %c0_23], %47 {strides = array<i32>} : memref<8x32x256xf32, #tpu.memory_space<vmem>>, vector<8x32x256xf32>,
    return
  }
  func.func @transform_0(%arg0: i32) -> (i32, i32, i32) {
    %c0_i32 = arith.constant 0 : i32
    %c0_i32_0 = arith.constant 0 : i32
    %c0_i32_1 = arith.constant 0 : i32
    return %arg0, %c0_i32, %c0_i32_0 : i32, i32, i32
  }
  func.func @transform_1(%arg0: i32) -> (i32, i32) {
    %c0_i32 = arith.constant 0 : i32
    %c0_i32_0 = arith.constant 0 : i32
    %c0_i32_1 = arith.constant 0 : i32
    return %c0_i32, %c0_i32_0 : i32, i32
  }
  func.func @transform_2(%arg0: i32) -> (i32, i32) {
    %c0_i32 = arith.constant 0 : i32
    %c0_i32_0 = arith.constant 0 : i32
    %c0_i32_1 = arith.constant 0 : i32
    return %c0_i32, %c0_i32_0 : i32, i32
  }
  func.func @transform_3(%arg0: i32) -> i32 {
    %c0_i32 = arith.constant 0 : i32
    %c0_i32_0 = arith.constant 0 : i32
    return %c0_i32 : i32
  }
  func.func @transform_4(%arg0: i32) -> (i32, i32, i32) {
    %c0_i32 = arith.constant 0 : i32
    %c0_i32_0 = arith.constant 0 : i32
    %c0_i32_1 = arith.constant 0 : i32
    return %arg0, %c0_i32, %c0_i32_0 : i32, i32, i32
  }
}

module attributes {stable_mosaic.version = 11 : i64} {
  func.func @cbam_kernel(%arg0: i32, %arg1: memref<8x32x256xf32, #tpu.memory_space<vmem>>, %arg2: memref<176x128xf32, #tpu.memory_space<vmem>>, %arg3: memref<512x256xbf16, #tpu.memory_space<vmem>>, %arg4: memref<1xf32, #tpu.memory_space<smem>>, %arg5: memref<8x32x256xf32, #tpu.memory_space<vmem>>) attributes {dimension_semantics = [#tpu.dimension_semantics<parallel>], iteration_bounds = array<i64: 2>, scalar_prefetch = 0 : i64, scratch_operands = 0 : i64, tpu.core_type = #tpu.core_type<tc>, window_params = [{transform_indices = @transform_0, window_bounds = array<i64: 8, 32, 256>}, {pipeline_mode = #tpu.pipeline_mode<synchronous>, transform_indices = @transform_1, window_bounds = array<i64: 176, 128>}, {pipeline_mode = #tpu.pipeline_mode<synchronous>, transform_indices = @transform_2, window_bounds = array<i64: 512, 256>}, {transform_indices = @transform_3, window_bounds = array<i64: 1>}, {transform_indices = @transform_4, window_bounds = array<i64: 8, 32, 256>}]} {
    %c0 = arith.constant 0 : index
    %c0_0 = arith.constant 0 : index
    %c0_1 = arith.constant 0 : index
    %0 = vector.load %arg1[%c0, %c0_0, %c0_1] : memref<8x32x256xf32, #tpu.memory_space<vmem>>, vector<8x32x256xf32>
    %cst = arith.constant dense<0.000000e+00> : vector<8x32xf32>
    %1 = vector.multi_reduction <add>, %0, %cst [2] : vector<8x32x256xf32> to vector<8x32xf32>
    %cst_2 = arith.constant 2.560000e+02 : f32
    %2 = vector.broadcast %cst_2 : f32 to vector<8x32xf32>
    %3 = arith.divf %1, %2 : vector<8x32xf32>
    %cst_3 = arith.constant dense<0xFF800000> : vector<8x32xf32>
    %4 = vector.multi_reduction <maximumf>, %0, %cst_3 [2] : vector<8x32x256xf32> to vector<8x32xf32>
    %5 = tpu.concatenate %3, %4 in 0 : vector<8x32xf32>, vector<8x32xf32> -> vector<16x32xf32>
    %c0_4 = arith.constant 0 : index
    %c0_5 = arith.constant 0 : index
    %6 = vector.load %arg2[%c0_4, %c0_5] : memref<176x128xf32, #tpu.memory_space<vmem>>, vector<32x128xf32>
    %c32 = arith.constant 32 : index
    %c0_6 = arith.constant 0 : index
    %7 = vector.load %arg2[%c32, %c0_6] : memref<176x128xf32, #tpu.memory_space<vmem>>, vector<1x128xf32>
    %c40 = arith.constant 40 : index
    %c0_7 = arith.constant 0 : index
    %8 = vector.load %arg2[%c40, %c0_7] : memref<176x128xf32, #tpu.memory_space<vmem>>, vector<128x32xf32>
    %c168 = arith.constant 168 : index
    %c0_8 = arith.constant 0 : index
    %9 = vector.load %arg2[%c168, %c0_8] : memref<176x128xf32, #tpu.memory_space<vmem>>, vector<1x32xf32>
    %cst_9 = arith.constant dense<0.000000e+00> : vector<16x128xf32>
    %10 = tpu.matmul %5, %6, %cst_9 {dimension_numbers = #tpu.dot_dimension_numbers<[1], [0], [0], [1], [0, 0, 1, 1], [], []>} : vector<16x32xf32>, vector<32x128xf32>, vector<16x128xf32> -> vector<16x128xf32>
    %11 = vector.broadcast %7 : vector<1x128xf32> to vector<16x128xf32>
    %12 = arith.addf %10, %11 : vector<16x128xf32>
    %cst_10 = arith.constant 0.000000e+00 : f32
    %13 = vector.broadcast %cst_10 : f32 to vector<16x128xf32>
    %14 = arith.maximumf %12, %13 : vector<16x128xf32>
    %cst_11 = arith.constant dense<0.000000e+00> : vector<16x32xf32>
    %15 = tpu.matmul %14, %8, %cst_11 {dimension_numbers = #tpu.dot_dimension_numbers<[1], [0], [0], [1], [0, 0, 1, 1], [], []>} : vector<16x128xf32>, vector<128x32xf32>, vector<16x32xf32> -> vector<16x32xf32>
    %16 = vector.broadcast %9 : vector<1x32xf32> to vector<16x32xf32>
    %17 = arith.addf %15, %16 : vector<16x32xf32>
    %18 = vector.extract_strided_slice %17 {offsets = [0, 0], sizes = [8, 32], strides = [1, 1]} : vector<16x32xf32> to vector<8x32xf32>
    %19 = vector.extract_strided_slice %17 {offsets = [8, 0], sizes = [8, 32], strides = [1, 1]} : vector<16x32xf32> to vector<8x32xf32>
    %20 = arith.addf %18, %19 : vector<8x32xf32>
    %21 = arith.negf %20 : vector<8x32xf32>
    %22 = math.exp %21 : vector<8x32xf32>
    %cst_12 = arith.constant 1.000000e+00 : f32
    %23 = vector.broadcast %cst_12 : f32 to vector<8x32xf32>
    %24 = arith.addf %23, %22 : vector<8x32xf32>
    %25 = arith.divf %23, %24 : vector<8x32xf32>
    %26 = vector.shape_cast %25 : vector<8x32xf32> to vector<8x32x1xf32>
    %27 = vector.broadcast %26 : vector<8x32x1xf32> to vector<8x32x256xf32>
    %28 = arith.mulf %0, %27 : vector<8x32x256xf32>
    %cst_13 = arith.constant dense<0.000000e+00> : vector<8x256xf32>
    %29 = vector.multi_reduction <add>, %28, %cst_13 [1] : vector<8x32x256xf32> to vector<8x256xf32>
    %cst_14 = arith.constant 3.200000e+01 : f32
    %30 = vector.broadcast %cst_14 : f32 to vector<8x256xf32>
    %31 = arith.divf %29, %30 : vector<8x256xf32>
    %cst_15 = arith.constant dense<0xFF800000> : vector<8x256xf32>
    %32 = vector.multi_reduction <maximumf>, %28, %cst_15 [1] : vector<8x32x256xf32> to vector<8x256xf32>
    %33 = tpu.concatenate %31, %32 in 1 : vector<8x256xf32>, vector<8x256xf32> -> vector<8x512xf32>
    %34 = arith.truncf %33 : vector<8x512xf32> to vector<8x512xbf16>
    %c0_16 = arith.constant 0 : index
    %c0_17 = arith.constant 0 : index
    %35 = vector.load %arg3[%c0_16, %c0_17] : memref<512x256xbf16, #tpu.memory_space<vmem>>, vector<512x256xbf16>
    %cst_18 = arith.constant dense<0.000000e+00> : vector<8x256xf32>
    %36 = tpu.matmul %34, %35, %cst_18 {dimension_numbers = #tpu.dot_dimension_numbers<[1], [0], [0], [1], [0, 0, 1, 1], [], []>} : vector<8x512xbf16>, vector<512x256xbf16>, vector<8x256xf32> -> vector<8x256xf32>
    %c0_19 = arith.constant 0 : index
    %37 = memref.load %arg4[%c0_19] : memref<1xf32, #tpu.memory_space<smem>>
    %38 = vector.broadcast %37 : f32 to vector<8x256xf32>
    %39 = arith.addf %36, %38 : vector<8x256xf32>
    %40 = arith.negf %39 : vector<8x256xf32>
    %41 = math.exp %40 : vector<8x256xf32>
    %cst_20 = arith.constant 1.000000e+00 : f32
    %42 = vector.broadcast %cst_20 : f32 to vector<8x256xf32>
    %43 = arith.addf %42, %41 : vector<8x256xf32>
    %44 = arith.divf %42, %43 : vector<8x256xf32>
    %45 = vector.shape_cast %44 : vector<8x256xf32> to vector<8x1x256xf32>
    %46 = vector.broadcast %45 : vector<8x1x256xf32> to vector<8x32x256xf32>
    %47 = arith.mulf %28, %46 : vector<8x32x256xf32>
    %c0_21 = arith.constant 0 : index
    %c0_22 = arith.constant 0 : index
    %c0_23 = arith.constant 0 : index
    %48 = vector.load %arg5[%c0_21, %c0_22, %c0_23] : memref<8x32x256xf32, #tpu.memory_space<vmem>>, vector<8x32x256xf32>
    tpu.vector_store %arg5[%c0_21, %c0_22, %c0_23], %47 {strides = array<i32>} : memref<8x32x256xf32, #tpu.memory_space<vmem>>, vector<8x32x256xf32>,
    return
  }
  func.func @transform_0(%arg0: i32) -> (i32, i32, i32) {
    %c0_i32 = arith.constant 0 : i32
    %c0_i32_0 = arith.constant 0 : i32
    %c0_i32_1 = arith.constant 0 : i32
    return %arg0, %c0_i32, %c0_i32_0 : i32, i32, i32
  }
  func.func @transform_1(%arg0: i32) -> (i32, i32) {
    %c0_i32 = arith.constant 0 : i32
    %c0_i32_0 = arith.constant 0 : i32
    %c0_i32_1 = arith.constant 0 : i32
    return %c0_i32, %c0_i32_0 : i32, i32
  }
  func.func @transform_2(%arg0: i32) -> (i32, i32) {
    %c0_i32 = arith.constant 0 : i32
    %c0_i32_0 = arith.constant 0 : i32
    %c0_i32_1 = arith.constant 0 : i32
    return %c0_i32, %c0_i32_0 : i32, i32
  }
  func.func @transform_3(%arg0: i32) -> i32 {
    %c0_i32 = arith.constant 0 : i32
    %c0_i32_0 = arith.constant 0 : i32
    return %c0_i32 : i32
  }
  func.func @transform_4(%arg0: i32) -> (i32, i32, i32) {
    %c0_i32 = arith.constant 0 : i32
    %c0_i32_0 = arith.constant 0 : i32
    %c0_i32_1 = arith.constant 0 : i32
    return %arg0, %c0_i32, %c0_i32_0 : i32, i32, i32
  }
}

</mosaic_0001>

<bundles_post_ra>
// kernel: tpu_custom_call.1
= control target key start
LH: loop header
LB: loop body
LE: loop exit
PB: predicated region body
PF: predicated region fallthrough
CT: control target
= control target key end

     0   :  { %s4605_s0 = inlined_call_operand.hbm [shape: f32[16,32,256], index: 0, kind: input, shape index: {}]   ;;  %s4606_s1 = inlined_call_operand.hbm [shape: f32[176,128], index: 1, kind: input, shape index: {}]   ;;  %s4607_s2 = inlined_call_operand.hbm [shape: bf16[512,256], index: 2, kind: input, shape index: {}]   ;;  %s4608_s3 = inlined_call_operand.<no memory space> [shape: f32[1], index: 3, kind: input, shape index: {}]   ;;  %s4609_s4 = inlined_call_operand.hbm [shape: f32[16,32,256], index: 4, kind: output, shape index: {}]  }
   0x1   :  { %9 = sst [smem:[#allocation2]] %s4608_s3 }
   0x2   :  { %10 = vsyncpa [#allocation4], 0 }
   0x3   :  { %12 = vsyncpa [#allocation4 + $0x1], 0 }
   0x4   :  { %13 = vsyncpa [#allocation7], 0 }
   0x5   :  { %14 = vsyncpa [#allocation5], 0 }
   0x6   :  { %16 = vsyncpa [#allocation5 + $0x1], 0  ;;  %s3217_s17 = smov 0   ;;  %s3219_s18 = smov 0  }
   0x7   :  { %s3221_s19 = smov 0   ;;  %s3223_s20 = smov 0  }
   0x8 LB: > { %s3238_s3 = sadd.s32 4294967295, %s3176_s20   ;;  %s2565_s21 = sadd.s32 4294967294, %s3176_s20   ;;  %s3176_s20 = sphi %s3223_s20, %s4793_s20   ;;  %s3172_s19 = sphi %s3221_s19, %s4792_s19   ;;  %s3168_s18 = sphi %s3219_s18, %s4791_s18   ;;  %s3164_s17 = sphi %s3217_s17, %s4790_s17  }
   0x9   : > { %p42_p0 = scmp.ne.s32.totalorder %s3168_s18, %s3164_s17  ;;  %p4610_p1 = scmp.eq.s32.totalorder %s3238_s3, 0 }
   0xa   : > { %p135_p3 = scmp.eq.s32.totalorder %s2565_s21, 1  ;;  %p2566_p5 = scmp.ge.s32.totalorder %s3176_s20, 1 }
   0xb   : > { %p3247_p4 = por %p4610_p1, %p42_p0  ;;  %p142_p7 = scmp.lt.s32.totalorder %s3176_s20, 3 }
   0xc   : > { %p3252_p6 = por %p135_p3, %p42_p0  ;;  %s3178_s25 = smov [#allocation6]  }
   0xd   : > { %s4665_s22 = scalar_select %p3247_p4, 1, 0 }
   0xe   : > { %s4666_s23 = scalar_select %p3252_p6, 1, 0 }
   0xf   : > { %p3257_p8 = pnand %p2566_p5, %p142_p7  ;;  %s154_s26 = sshll.u32 %s3178_s25, 4  ;;  %s3261_s26 = int_to_ptr.vmem [resolvable:$true] %s154_s26 }
  0x10   : > { %s3179_s28 = smov [#allocation8]   ;;  %s3020_s6 = scalar_lea.hbm %s4606_s1, 2816 }
  0x11   : > { %p2786_p9 = pneg %p3257_p8  ;;  %s167_s29 = sshll.u32 %s3179_s28, 4  ;;  %s3272_s29 = int_to_ptr.vmem [resolvable:$true] %s167_s29 }
  0x12   : > { %p3021_p12 = scmp.ne.s32.totalorder %s4606_s1, %s3020_s6  ;;  %p3027_p5 = scmp.lt.u32.totalorder %s3020_s6, %s4606_s1 }
  0x13   : > { %p3268_p11 = pnand %p2786_p9, %p4610_p1 }
  0x15   : > { %p3022_p13 = pneg %p3268_p11 }
  0x17   : > { %p3023_p0 = pnand %p3022_p13, %p3021_p12 }
  0x19   : > { %p3024_p3 = pneg %p3023_p0 }
  0x1b   : > { %p3029_p7 = pnand %p3027_p5, %p3024_p3 }
  0x1d   : > { %3032 = shalt.err (!%p3029_p7)
}
  0x1e   : > { %s3033_s11 = scalar_lea.vmem %s3261_s26, 2816  ;;  %p3041_p2 = scmp.lt.s32.totalorder %s3261_s26, %s3261_s26 }
  0x1f   : > { %p3034_p9 = scmp.ne.s32.totalorder %s3261_s26, %s3033_s11  ;;  %p3042_p12 = scmp.lt.s32.totalorder %s3033_s11, %s3033_s11 }
  0x21   : > { %p3036_p10 = pnand %p3034_p9, %p3022_p13  ;;  %p3043_p0 = por %p3042_p12, %p3041_p2 }
  0x23   : > { %p3037_p1 = pneg %p3036_p10 }
  0x25   : > { %p3044_p6 = pnand %p3043_p0, %p3037_p1 }
  0x27   : > { %3047 = shalt.err (!%p3044_p6)
}
  0x28   : > { %s3180_s12 = smov 128   ;;  %s3181_s13 = smov 8  }
  0x29   : > { %2789 = dma.hbm_to_vmem [thread:$0]  (!%p3268_p11), %s4606_s1, 2816, %s3261_s26, [#allocation7], %s3180_s12, %s3180_s12, %s3181_s13  }
  0x2a   : > { %s3048_s25 = scalar_lea.hbm %s4607_s2, 8192 }
  0x2b   : > { %p3049_p2 = scmp.ne.s32.totalorder %s4607_s2, %s3048_s25  ;;  %p3055_p10 = scmp.lt.u32.totalorder %s3048_s25, %s4607_s2 }
  0x2d   : > { %p3051_p1 = pnand %p3049_p2, %p3022_p13 }
  0x2f   : > { %p3052_p6 = pneg %p3051_p1 }
  0x31   : > { %p3057_p3 = pnand %p3055_p10, %p3052_p6 }
  0x33   : > { %3060 = shalt.err (!%p3057_p3)
}
  0x34   : > { %s3061_s26 = scalar_lea.vmem %s3272_s29, 8192  ;;  %p3069_p12 = scmp.lt.s32.totalorder %s3272_s29, %s3272_s29 }
  0x35   : > { %p3062_p5 = scmp.ne.s32.totalorder %s3272_s29, %s3061_s26  ;;  %p3070_p0 = scmp.lt.s32.totalorder %s3061_s26, %s3061_s26 }
  0x37   : > { %p3064_p7 = pnand %p3062_p5, %p3022_p13  ;;  %p3071_p2 = por %p3070_p0, %p3069_p12 }
  0x39   : > { %p3065_p9 = pneg %p3064_p7 }
  0x3b   : > { %p3072_p1 = pnand %p3071_p2, %p3065_p9 }
  0x3d   : > { %3075 = shalt.err (!%p3072_p1)
}
  0x3e   : > { %2792 = dma.hbm_to_vmem [thread:$0]  (!%p3268_p11), %s4607_s2, 8192, %s3272_s29, [#allocation7], %s3180_s12, %s3180_s12, %s3181_s13  }
  0x3f   : > { %s3327_s9 = sadd.s32 1, %s3176_s20   ;;  %s29_s27 = sadd.s32 1, %s3172_s19 }
  0x40   : > { %s26_s10 = ssub.s32 %s3176_s20, %s3327_s9  ;;  %p36_p13 = scmp.ne.s32.totalorder %s3172_s19, %s3168_s18 }
  0x41   : > { %p27_p6 = scmp.eq.s32.totalorder %s26_s10, 0  ;;  %p37_p10 = scmp.eq.s32.totalorder %s3176_s20, 0 }
  0x42   : > { %p4669_p3 = scmp.eq.s32.totalorder %s3238_s3, 1  ;;  %p2803_p7 = scmp.lt.s32.totalorder %s3176_s20, 2 }
  0x43   : > { %s3343_s14 = scalar_select %p27_p6, %s3172_s19, %s29_s27  }
  0x44   : > { %p3337_p5 = por %p4669_p3, %p36_p13  ;;  %p38_p9 = por %p37_p10, %p36_p13 }
  0x45   : > { %s184_s15 = sand.u32 1, %s3172_s19   ;;  %s2657_s29 = sshll.u32 %s3176_s20, 13 }
  0x46   : > { %s4670_s11 = scalar_select %p3337_p5, 1, 0 }
  0x47   : > { %s2570_s16 = sshll.u32 %s184_s15, 9  ;;  %s3350_s21 = scalar_lea.hbm %s4605_s0, %s2657_s29 }
  0x48   : > { %s188_s25 = scalar_lea.vmem [#allocation3], %s2570_s16  ;;  %p3354_p11 = pnand %p2803_p7, %p38_p9 }
  0x49   : > { %s196_s28 = sshll.u32 %s188_s25, 4  ;;  %s3358_s5 = scalar_lea.sflag [#allocation4], %s184_s15  ;;  %s3352_s28 = int_to_ptr.vmem [resolvable:$true] %s196_s28 }
  0x4a   : > { %s3076_s6 = scalar_lea.hbm %s3350_s21, 8192  ;;  %p3078_p0 = pneg %p3354_p11 }
  0x4b   : > { %p3077_p12 = scmp.ne.s32.totalorder %s3350_s21, %s3076_s6  ;;  %s3081_s8 = scalar_lea.hbm %s4605_s0, 16384 }
  0x4c   : > { %p3082_p13 = scmp.lt.u32.totalorder %s3350_s21, %s4605_s0  ;;  %p3083_p6 = scmp.lt.u32.totalorder %s3081_s8, %s3076_s6 }
  0x4d   : > { %p3079_p2 = pnand %p3078_p0, %p3077_p12  ;;  %p3085_p3 = scmp.lt.u32.totalorder %s3076_s6, %s3350_s21 }
  0x4e   : > { %p3084_p10 = por %p3083_p6, %p3082_p13 }
  0x4f   : > { %p3080_p1 = pneg %p3079_p2 }
  0x50   : > { %p3086_p7 = por %p3085_p3, %p3084_p10 }
  0x52   : > { %p3087_p9 = pnand %p3086_p7, %p3080_p1 }
  0x54   : > { %3090 = shalt.err (!%p3087_p9)
}
  0x55   : > { %s3091_s15 = scalar_lea.vmem %s3352_s28, 8192  ;;  %s3182_s16 = smov [#allocation3]  }
  0x56   : > { %p3092_p12 = scmp.ne.s32.totalorder %s3352_s28, %s3091_s15  ;;  %s3096_s29 = sshll.u32 %s3182_s16, 4  ;;  %s3097_s29 = int_to_ptr.vmem [resolvable:$false] %s3096_s29 }
  0x57   : > { %s3098_s12 = scalar_lea.vmem %s3097_s29, 16384  ;;  %p3099_p4 = scmp.lt.s32.totalorder %s3352_s28, %s3097_s29 }
  0x58   : > { %p3094_p2 = pnand %p3092_p12, %p3078_p0  ;;  %p3100_p13 = scmp.lt.s32.totalorder %s3098_s12, %s3091_s15 }
  0x5a   : > { %p3095_p5 = pneg %p3094_p2  ;;  %p3101_p6 = por %p3100_p13, %p3099_p4 }
  0x5c   : > { %p3102_p10 = pnand %p3101_p6, %p3095_p5 }
  0x5e   : > { %3105 = shalt.err (!%p3102_p10)
}
  0x5f   : > { %s3183_s13 = smov 256   ;;  %s3184_s25 = smov 16  }
  0x60   : > { %2796 = dma.hbm_to_vmem [thread:$0]  (!%p3354_p11), %s3350_s21, 8192, %s3352_s28, %s3358_s5, %s3183_s13, %s3183_s13, %s3184_s25  }
  0x61   : > { %208 = sbr.rel (%p3257_p8) target bundleno = 1386 (0x56a), region = 36 }
  0x68   : > { %s3389_s6 = sand.u32 1, %s3168_s18   ;;  %p4672_p4 = scmp.ne.s32.totalorder %s4665_s22, 0 }
  0x69   : > { %s2575_s26 = sshll.u32 %s3389_s6, 9  ;;  %s211_s7 = scalar_lea.sflag [#allocation4], %s3389_s6 }
  0x6a   : > { %s3395_s8 = scalar_lea.vmem [#allocation3], %s2575_s26 }
  0x6b   : > { %3151 = dma.done.wait (%p4672_p4), %s211_s7, 8192  }
  0x6c   : > { %3153 = vsyncadd (%p4672_p4), %s211_s7, 4294959104  ;;  %p4673_p5 = scmp.eq.s32.totalorder %s3238_s3, 0 }
  0x6e   : > { %3155 = dma.done.wait (%p4673_p5), [#allocation7], 11008   ;;  %p4674_p8 = pmov %p4673_p5 }
  0x6f   : > { %v3406_v0 = vld [vmem:[%s3395_s8 + $0x40] sm:$0xff]  ;;  %v3409_v1 = vld [vmem:[%s3395_s8 + $0x48] sm:$0xff]  ;;  %v3420_v5 = vld [vmem:[%s3395_s8 + $0x50] sm:$0xff]  ;;  %vm581_vm0 = vcmask 130112   ;;  %vm588_vm1 = vcmask 195712   ;;  %vm595_vm2 = vcmask 261312  }
  0x70   : > { %3157 = vsyncadd (%p4674_p8), [#allocation7], 4294956288  ;;  %v3412_v2 = vld [vmem:[%s3395_s8] sm:$0xff]  ;;  %v325_v3 = vadd.f32 %v3409_v1, %v3406_v0  ;;  %v3417_v4 = vld [vmem:[%s3395_s8 + $0x8] sm:$0xff]  ;;  %v454_v54 = vmax.f32 %v3406_v0, %v3409_v1  ;;  %vm730_vm3 = vcmask 1041409   ;;  %vm732_vm4 = vcmask 1042434  }
  0x71   : > { %v3423_v6 = vld [vmem:[%s3395_s8 + $0x58] sm:$0xff]  ;;  %v313_v7 = vadd.f32 %v3417_v4, %v3412_v2  ;;  %v3428_v8 = vld [vmem:[%s3395_s8 + $0x10] sm:$0xff]  ;;  %v3438_v12 = vld [vmem:[%s3395_s8 + $0x60] sm:$0xff]  ;;  %v442_v50 = vmax.f32 %v3412_v2, %v3417_v4  ;;  %vm734_vm5 = vcmask 1043459   ;;  %vm736_vm6 = vcmask 1044484   ;;  %s1782_s22 = sld [smem:[#allocation2]] }
  0x72   : > { %v3431_v9 = vld [vmem:[%s3395_s8 + $0x18] sm:$0xff]  ;;  %326 = vadd.xlane.f32.xlu1 %v325_v3  ;;  %v328_v10 = vadd.f32 %v3423_v6, %v3420_v5  ;;  %v3441_v13 = vld [vmem:[%s3395_s8 + $0x68] sm:$0xff]  ;;  %v3444_v14 = vld [vmem:[%s3395_s8 + $0x20] sm:$0xff]  ;;  %v457_v61 = vmax.f32 %v3420_v5, %v3423_v6  ;;  %vm738_vm7 = vcmask 1045509   ;;  %vm740_vm8 = vcmask 1046534   ;;  %s4402_s24 = scalar_lea.vmem [#allocation9], %s2575_s26 }
  0x73   : > { %314 = vadd.xlane.f32.xlu0 %v313_v7  ;;  %v316_v11 = vadd.f32 %v3431_v9, %v3428_v8  ;;  %v3447_v15 = vld [vmem:[%s3395_s8 + $0x28] sm:$0xff]  ;;  %v331_v16 = vadd.f32 %v3441_v13, %v3438_v12  ;;  %v3454_v18 = vld [vmem:[%s3395_s8 + $0x90] sm:$0xff]  ;;  %v3457_v19 = vld [vmem:[%s3395_s8 + $0x98] sm:$0xff]  ;;  %v445_v55 = vmax.f32 %v3428_v8, %v3431_v9  ;;  %v460_v5 = vmax.f32 %v3438_v12, %v3441_v13  ;;  %s2659_s21 = sshll.u32 %s3238_s3, 13  ;;  %s2473_s28 = sshll.u32 %s4402_s24, 4  ;;  %s4547_s28 = int_to_ptr.vmem [resolvable:$true] %s2473_s28 }
  0x74   : > { %v319_v17 = vadd.f32 %v3447_v15, %v3444_v14  ;;  %v3460_v20 = vld [vmem:[%s3395_s8 + $0x80] sm:$0xff]  ;;  %v3463_v21 = vld [vmem:[%s3395_s8 + $0x88] sm:$0xff]  ;;  %v340_v22 = vadd.f32 %v3457_v19, %v3454_v18  ;;  %v3470_v24 = vld [vmem:[%s3395_s8 + $0x70] sm:$0xff]  ;;  %v448_v2 = vmax.f32 %v3444_v14, %v3447_v15  ;;  %v469_v9 = vmax.f32 %v3454_v18, %v3457_v19  ;;  %s4545_s5 = scalar_lea.hbm %s4609_s4, %s2659_s21  ;;  %s2459_s27 = scalar_lea.sflag [#allocation5], %s3389_s6 }
  0x75   : > { %v337_v23 = vadd.f32 %v3463_v21, %v3460_v20  ;;  %v3473_v25 = vld [vmem:[%s3395_s8 + $0x78] sm:$0xff]  ;;  %v3476_v26 = vld [vmem:[%s3395_s8 + $0x30] sm:$0xff]  ;;  %v3486_v30 = vld [vmem:[%s3395_s8 + $0xc0] sm:$0xff]  ;;  %v466_v4 = vmax.f32 %v3460_v20, %v3463_v21  ;;  %vm742_vm9 = vcmask 1047559   ;;  %vm961_vm10 = vcmask 261120   ;;  %s3106_s10 = scalar_lea.vmem %s4547_s28, 8192 }
  0x76   : > { %329 = vadd.xlane.f32.xlu1 %v328_v10  ;;  %v3479_v27 = vld [vmem:[%s3395_s8 + $0x38] sm:$0xff]  ;;  %v334_v28 = vadd.f32 %v3473_v25, %v3470_v24  ;;  %v3489_v31 = vld [vmem:[%s3395_s8 + $0xc8] sm:$0xff]  ;;  %v3492_v32 = vld [vmem:[%s3395_s8 + $0xa0] sm:$0xff]  ;;  %v463_v21 = vmax.f32 %v3470_v24, %v3473_v25  ;;  %p3107_p11 = scmp.ne.s32.totalorder %s4547_s28, %s3106_s10  ;;  %p4787_p0 = scmp.ne.s32.totalorder %s4670_s11, 0 }
  0x77   : > { %317 = vadd.xlane.f32.xlu0 %v316_v11  ;;  %v322_v29 = vadd.f32 %v3479_v27, %v3476_v26  ;;  %v3495_v33 = vld [vmem:[%s3395_s8 + $0xa8] sm:$0xff]  ;;  %v349_v34 = vadd.f32 %v3489_v31, %v3486_v30  ;;  %v3502_v36 = vld [vmem:[%s3395_s8 + $0xb0] sm:$0xff]  ;;  %v3505_v37 = vld [vmem:[%s3395_s8 + $0xb8] sm:$0xff]  ;;  %v451_v18 = vmax.f32 %v3476_v26, %v3479_v27  ;;  %s3186_s15 = smov [#allocation9]  }
  0x78   : > { %v343_v35 = vadd.f32 %v3495_v33, %v3492_v32  ;;  %v3508_v38 = vld [vmem:[%s3395_s8 + $0xd0] sm:$0xff]  ;;  %v3511_v39 = vld [vmem:[%s3395_s8 + $0xd8] sm:$0xff]  ;;  %v3514_v40 = vld [vmem:[%s3395_s8 + $0x100] sm:$0xff]  ;;  %v346_v42 = vadd.f32 %v3505_v37, %v3502_v36  ;;  %v472_v20 = vmax.f32 %v3492_v32, %v3495_v33  ;;  %p3108_p1 = pnand %p3107_p11, %p4787_p0  ;;  %s3110_s16 = sshll.u32 %s3186_s15, 4  ;;  %s3111_s16 = int_to_ptr.vmem [resolvable:$false] %s3110_s16 }
  0x79   : > { %v3517_v41 = vld [vmem:[%s3395_s8 + $0x108] sm:$0xff]  ;;  %v3522_v43 = vld [vmem:[%s3395_s8 + $0xe0] sm:$0xff]  ;;  %v352_v45 = vadd.f32 %v3511_v39, %v3508_v38  ;;  %v3532_v47 = vld [vmem:[%s3395_s8 + $0x110] sm:$0xff]  ;;  %s3112_s29 = scalar_lea.vmem %s3111_s16, 16384  ;;  %p3113_p7 = scmp.lt.s32.totalorder %s4547_s28, %s3111_s16 }
  0x7a   : > { %332 = vadd.xlane.f32.xlu1 %v331_v16  ;;  %v3525_v44 = vld [vmem:[%s3395_s8 + $0xe8] sm:$0xff]  ;;  %v361_v46 = vadd.f32 %v3517_v41, %v3514_v40  ;;  %v3535_v48 = vld [vmem:[%s3395_s8 + $0x118] sm:$0xff]  ;;  %v3544_v52 = vld [vmem:[%s3395_s8 + $0xf0] sm:$0xff]  ;;  %p3109_p3 = pneg %p3108_p1  ;;  %p3114_p9 = scmp.lt.s32.totalorder %s3112_s29, %s3106_s10 }
  0x7b   : > { %320 = vadd.xlane.f32.xlu0 %v319_v17  ;;  %v355_v49 = vadd.f32 %v3525_v44, %v3522_v43  ;;  %v364_v51 = vadd.f32 %v3535_v48, %v3532_v47  ;;  %v3547_v53 = vld [vmem:[%s3395_s8 + $0xf8] sm:$0xff]  ;;  %v3554_v56 = vld [vmem:[%s3395_s8 + $0x140] sm:$0xff]  ;;  %v3557_v57 = vld [vmem:[%s3395_s8 + $0x148] sm:$0xff] }
  0x7c   : > { %v358_v58 = vadd.f32 %v3547_v53, %v3544_v52  ;;  %v3562_v59 = vld [vmem:[%s3395_s8 + $0x120] sm:$0xff]  ;;  %v3565_v60 = vld [vmem:[%s3395_s8 + $0x128] sm:$0xff]  ;;  %v373_v62 = vadd.f32 %v3557_v57, %v3554_v56  ;;  %v3574_v0 = vld [vmem:[%s3395_s8 + $0x150] sm:$0xff]  ;;  %p3115_p12 = por %p3114_p9, %p3113_p7 }
  0x7d   : > { %v367_v63 = vadd.f32 %v3565_v60, %v3562_v59  ;;  %v3577_v1 = vld [vmem:[%s3395_s8 + $0x158] sm:$0xff]  ;;  %v3588_v6 = vld [vmem:[%s3395_s8 + $0x130] sm:$0xff]  ;;  %v3598_v10 = vld [vmem:[%s3395_s8 + $0x180] sm:$0xff] }
  0x7e   : > { %341 = vadd.xlane.f32.xlu1 %v340_v22  ;;  %v376_v3 = vadd.f32 %v3577_v1, %v3574_v0  ;;  %v3591_v7 = vld [vmem:[%s3395_s8 + $0x138] sm:$0xff]  ;;  %v3601_v11 = vld [vmem:[%s3395_s8 + $0x188] sm:$0xff]  ;;  %v3604_v14 = vld [vmem:[%s3395_s8 + $0x160] sm:$0xff]  ;;  %v481_v22 = vmax.f32 %v3508_v38, %v3511_v39  ;;  %v475_v39 = vmax.f32 %v3502_v36, %v3505_v37  ;;  %v496_v36 = vmax.f32 %v3562_v59, %v3565_v60  ;;  %p3116_p2 = pnand %p3115_p12, %p3109_p3 }
  0x7f   : > { %338 = vadd.xlane.f32.xlu0 %v337_v23  ;;  %v370_v8 = vadd.f32 %v3591_v7, %v3588_v6  ;;  %v3607_v12 = vld [vmem:[%s3395_s8 + $0x168] sm:$0xff]  ;;  %v385_v13 = vadd.f32 %v3601_v11, %v3598_v10  ;;  %v3614_v16 = vld [vmem:[%s3395_s8 + $0x190] sm:$0xff]  ;;  %v3617_v17 = vld [vmem:[%s3395_s8 + $0x198] sm:$0xff]  ;;  %v478_v23 = vmax.f32 %v3486_v30, %v3489_v31  ;;  %v484_v31 = vmax.f32 %v3522_v43, %v3525_v44 }
  0x80   : > { %v379_v15 = vadd.f32 %v3607_v12, %v3604_v14  ;;  %v388_v19 = vadd.f32 %v3617_v17, %v3614_v16  ;;  %v301_v26 = vld [vmem:[%s3395_s8 + $0x1a0] sm:$0xff]  ;;  %v302_v27 = vld [vmem:[%s3395_s8 + $0x1a8] sm:$0xff]  ;;  %v308_v24 = vld [vmem:[%s3395_s8 + $0x1d8] sm:$0xff]  ;;  %v487_v37 = vmax.f32 %v3544_v52, %v3547_v53  ;;  %v514_v52 = vmax.f32 %v3598_v10, %v3601_v11 }
  0x81   : > { %v391_v32 = vadd.f32 %v302_v27, %v301_v26  ;;  %v305_v25 = vld [vmem:[%s3395_s8 + $0x1c0] sm:$0xff]  ;;  %v508_v53 = vmax.f32 %v3604_v14, %v3607_v12  ;;  %v520_v59 = vmax.f32 %v301_v26, %v302_v27 }
  0x82   : > { %335 = vadd.xlane.f32.xlu1 %v334_v28  ;;  %v295_v28 = vld [vmem:[%s3395_s8 + $0x170] sm:$0xff] }
  0x83   : > { %323 = vadd.xlane.f32.xlu0 %v322_v29  ;;  %v296_v29 = vld [vmem:[%s3395_s8 + $0x178] sm:$0xff] }
  0x84   : > { %v382_v33 = vadd.f32 %v296_v29, %v295_v28 }
  0x86   : > { %350 = vadd.xlane.f32.xlu1 %v349_v34  ;;  %v307_v34 = vld [vmem:[%s3395_s8 + $0x1d0] sm:$0xff] }
  0x87   : > { %344 = vadd.xlane.f32.xlu0 %v343_v35  ;;  %v306_v35 = vld [vmem:[%s3395_s8 + $0x1c8] sm:$0xff]  ;;  %v400_v38 = vadd.f32 %v308_v24, %v307_v34 }
  0x88   : > { %v397_v30 = vadd.f32 %v306_v35, %v305_v25 }
  0x8a   : > { %347 = vadd.xlane.f32.xlu1 %v346_v42  ;;  %v493_v42 = vmax.f32 %v3532_v47, %v3535_v48  ;;  %v311_v47 = vld [vmem:[%s3395_s8 + $0x1f0] sm:$0xff]  ;;  %v312_v48 = vld [vmem:[%s3395_s8 + $0x1f8] sm:$0xff] }
  0x8b   : > { %353 = vadd.xlane.f32.xlu0 %v352_v45  ;;  %v490_v45 = vmax.f32 %v3514_v40, %v3517_v41  ;;  %v505_v40 = vmax.f32 %v3574_v0, %v3577_v1  ;;  %v502_v41 = vmax.f32 %v3554_v56, %v3557_v57  ;;  %v517_v56 = vmax.f32 %v3614_v16, %v3617_v17  ;;  %v935_v0 = vld [vmem:[#allocation6] sm:$0xff]  ;;  %v936_v1 = vld [vmem:[#allocation6 + $0x8] sm:$0xff]  ;;  %v941_v17 = vld [vmem:[#allocation6 + $0x30] sm:$0xff] }
  0x8c   : > { %v526_v57 = vmax.f32 %v305_v25, %v306_v35  ;;  %v940_v16 = vld [vmem:[#allocation6 + $0x28] sm:$0xff] }
  0x8e   : > { %362 = vadd.xlane.f32.xlu1 %v361_v46  ;;  %v309_v46 = vld [vmem:[%s3395_s8 + $0x1e0] sm:$0xff] }
  0x8f   : > { %356 = vadd.xlane.f32.xlu0 %v355_v49  ;;  %v310_v49 = vld [vmem:[%s3395_s8 + $0x1e8] sm:$0xff] }
  0x90   : > { %v403_v43 = vadd.f32 %v310_v49, %v309_v46 }
  0x92   : > { %443 = vmax.xlane.f32.xlu1 %v442_v50  ;;  %v303_v50 = vld [vmem:[%s3395_s8 + $0x1b0] sm:$0xff] }
  0x93   : > { %365 = vadd.xlane.f32.xlu0 %v364_v51  ;;  %v304_v51 = vld [vmem:[%s3395_s8 + $0x1b8] sm:$0xff] }
  0x94   : > { %v394_v44 = vadd.f32 %v304_v51, %v303_v50  ;;  %v523_v60 = vmax.f32 %v303_v50, %v304_v51 }
  0x96   : > { %455 = vmax.xlane.f32.xlu1 %v454_v54  ;;  %v499_v54 = vmax.f32 %v3588_v6, %v3591_v7 }
  0x97   : > { %446 = vmax.xlane.f32.xlu0 %v445_v55  ;;  %v406_v55 = vadd.f32 %v312_v48, %v311_v47 }
  0x9a   : > { %359 = vadd.xlane.f32.xlu1 %v358_v58  ;;  %v511_v58 = vmax.f32 %v295_v28, %v296_v29  ;;  %v944_v28 = vld [vmem:[#allocation6 + $0x48] sm:$0xff]  ;;  %v945_v29 = vld [vmem:[#allocation6 + $0x50] sm:$0xff] }
  0x9b   : > { %458 = vmax.xlane.f32.xlu0 %v457_v61  ;;  %v529_v61 = vmax.f32 %v307_v34, %v308_v24 }
  0x9e   : > { %374 = vadd.xlane.f32.xlu1 %v373_v62  ;;  %v535_v62 = vmax.f32 %v311_v47, %v312_v48  ;;  %v948_v48 = vld [vmem:[#allocation6 + $0x68] sm:$0xff] }
  0x9f   : > { %368 = vadd.xlane.f32.xlu0 %v367_v63  ;;  %v532_v63 = vmax.f32 %v309_v46, %v310_v49  ;;  %v947_v46 = vld [vmem:[#allocation6 + $0x60] sm:$0xff] }
  0xa2   : > { %449 = vmax.xlane.f32.xlu1 %v448_v2  ;;  %v570_v2 = vlaneseq }
  0xa3   : > { %377 = vadd.xlane.f32.xlu0 %v376_v3  ;;  %v2730_v3 = vpack.c.bf16 %v936_v1, %v935_v0 }
  0xa4   : > { %v571_v6 = vand.u32 127, %v570_v2 }
  0xa5   : > { %2731 = vmatprep.subr.bf16.mxu0 %v2730_v3 }
  0xa6   : > { %467 = vmax.xlane.f32.xlu1 %v466_v4  ;;  %2733 = vmatpush3.bf16.msra.mxu0 %v2730_v3  ;;  %v937_v4 = vld [vmem:[#allocation6 + $0x10] sm:$0xff] }
  0xa7   : > { %461 = vmax.xlane.f32.xlu0 %v460_v5  ;;  %v938_v5 = vld [vmem:[#allocation6 + $0x18] sm:$0xff] }
  0xa8   : > { %v2734_v7 = vpack.c.bf16 %v938_v5, %v937_v4 }
  0xaa   : > { %371 = vadd.xlane.f32.xlu1 %v370_v8  ;;  %v3669_v8 = vshrl.u32 %v570_v2, 7  ;;  %2735 = vmatprep.subr.bf16.mxu0 %v2734_v7 }
  0xab   : > { %470 = vmax.xlane.f32.xlu0 %v469_v9  ;;  %v576_v9 = vadd.s32 4294967288, %v571_v6  ;;  %2737 = vmatpush3.bf16.msra.mxu0 %v2734_v7 }
  0xac   : > { %v3672_v14 = vsub.s32 %v571_v6, %v3669_v8 }
  0xae   : > { %386 = vadd.xlane.f32.xlu1 %v385_v13  ;;  %v3675_v13 = vsub.s32 %v576_v9, %v3669_v8  ;;  %v952_v9 = vld [vmem:[#allocation6 + $0x88] sm:$0xff] }
  0xaf   : > { %380 = vadd.xlane.f32.xlu0 %v379_v15  ;;  %v583_v15 = vadd.s32 4294967280, %v571_v6 }
  0xb1   : > { %v3680_v24 = vsub.s32 %v583_v15, %v3669_v8 }
  0xb2   : > { %452 = vmax.xlane.f32.xlu1 %v451_v18  ;;  %v942_v18 = vld [vmem:[#allocation6 + $0x38] sm:$0xff] }
  0xb3   : > { %389 = vadd.xlane.f32.xlu0 %v388_v19 }
  0xb6   : > { %473 = vmax.xlane.f32.xlu1 %v472_v20 }
  0xb7   : > { %464 = vmax.xlane.f32.xlu0 %v463_v21  ;;  %v2738_v21 = vpack.c.bf16 %v941_v17, %v940_v16 }
  0xb9   : > { %2739 = vmatprep.subr.bf16.mxu1 %v2738_v21 }
  0xba   : > { %482 = vmax.xlane.f32.xlu1 %v481_v22  ;;  %v943_v22 = vld [vmem:[#allocation6 + $0x40] sm:$0xff]  ;;  %2741 = vmatpush3.bf16.msra.mxu1 %v2738_v21 }
  0xbb   : > { %479 = vmax.xlane.f32.xlu0 %v478_v23  ;;  %v2742_v27 = vpack.c.bf16 %v943_v22, %v942_v18 }
  0xbd   : > { %2743 = vmatprep.subr.bf16.mxu1 %v2742_v27 }
  0xbe   : > { %392 = vadd.xlane.f32.xlu1 %v391_v32  ;;  %2745 = vmatpush3.bf16.msra.mxu1 %v2742_v27 }
  0xbf   : > { %383 = vadd.xlane.f32.xlu0 %v382_v33 }
  0xc2   : > { %401 = vadd.xlane.f32.xlu1 %v400_v38 }
  0xc3   : > { %398 = vadd.xlane.f32.xlu0 %v397_v30  ;;  %v2746_v30 = vpack.c.bf16 %v945_v29, %v944_v28 }
  0xc5   : > { %2747 = vmatprep.subr.bf16.mxu1 %v2746_v30 }
  0xc6   : > { %485 = vmax.xlane.f32.xlu1 %v484_v31  ;;  %2749 = vmatpush3.bf16.msra.mxu1 %v2746_v30 }
  0xc7   : > { %476 = vmax.xlane.f32.xlu0 %v475_v39 }
  0xca   : > { %494 = vmax.xlane.f32.xlu1 %v493_v42 }
  0xcb   : > { %491 = vmax.xlane.f32.xlu0 %v490_v45  ;;  %v946_v45 = vld [vmem:[#allocation6 + $0x58] sm:$0xff] }
  0xce   : > { %404 = vadd.xlane.f32.xlu1 %v403_v43  ;;  %v590_v43 = vadd.s32 4294967272, %v571_v6 }
  0xcf   : > { %395 = vadd.xlane.f32.xlu0 %v394_v44 }
  0xd2   : > { %497 = vmax.xlane.f32.xlu1 %v496_v36 }
  0xd3   : > { %488 = vmax.xlane.f32.xlu0 %v487_v37  ;;  %v2750_v37 = vpack.c.bf16 %v947_v46, %v946_v45 }
  0xd5   : > { %2751 = vmatprep.subr.bf16.mxu1 %v2750_v37 }
  0xd6   : > { %506 = vmax.xlane.f32.xlu1 %v505_v40  ;;  %2753 = vmatpush3.bf16.msra.mxu1 %v2750_v37 }
  0xd7   : > { %503 = vmax.xlane.f32.xlu0 %v502_v41 }
  0xda   : > { %500 = vmax.xlane.f32.xlu1 %v499_v54  ;;  %v949_v54 = vld [vmem:[#allocation6 + $0x70] sm:$0xff] }
  0xdb   : > { %407 = vadd.xlane.f32.xlu0 %v406_v55 }
  0xde   : > { %515 = vmax.xlane.f32.xlu1 %v514_v52 }
  0xdf   : > { %509 = vmax.xlane.f32.xlu0 %v508_v53 }
  0xe2   : > { %512 = vmax.xlane.f32.xlu1 %v511_v58  ;;  %v3692_v58 = vsub.s32 %v590_v43, %v3669_v8 }
  0xe3   : > { %518 = vmax.xlane.f32.xlu0 %v517_v56 }
  0xe6   : > { %527 = vmax.xlane.f32.xlu1 %v526_v57 }
  0xe7   : > { %521 = vmax.xlane.f32.xlu0 %v520_v59  ;;  %v2754_v59 = vpack.c.bf16 %v949_v54, %v948_v48 }
  0xe9   : > { %2755 = vmatprep.subr.bf16.mxu1 %v2754_v59 }
  0xea   : > { %524 = vmax.xlane.f32.xlu1 %v523_v60  ;;  %2757 = vmatpush3.bf16.msra.mxu1 %v2754_v59 }
  0xeb   : > { %530 = vmax.xlane.f32.xlu0 %v529_v61 }
  0xee   : > { %536 = vmax.xlane.f32.xlu1 %v535_v62  ;;  %v950_v62 = vld [vmem:[#allocation6 + $0x78] sm:$0xff] }
  0xef   : > { %533 = vmax.xlane.f32.xlu0 %v532_v63  ;;  %v951_v63 = vld [vmem:[#allocation6 + $0x80] sm:$0xff] }
  0xf0   : > { %v2758_v5 = vpack.c.bf16 %v951_v63, %v950_v62 }
  0xf2   : > { %2759 = vmatprep.subr.bf16.mxu1 %v2758_v5 }
  0xf3   : > { %2761 = vmatpush3.bf16.msra.mxu1 %v2758_v5 }
  0xff   : > { %v327_v10 = vpop.xlane.xlu1 %326 }
 0x100   : > { %v315_v11 = vpop.xlane.xlu0 %314  ;;  %v414_v12 = vmul.f32 0.00390625, %v327_v10  ;;  %v953_v10 = vld [vmem:[#allocation6 + $0x90] sm:$0xff] }
 0x101   : > { %v410_v19 = vmul.f32 0.00390625, %v315_v11 }
 0x102   : > { %v600_v33 = vrot.slane %v414_v12, %v3672_v14 }
 0x103   : > { %v330_v20 = vpop.xlane.xlu1 %329  ;;  %v575_v25 = vrot.slane %v410_v19, %v3672_v14  ;;  %v2762_v19 = vpack.c.bf16 %v953_v10, %v952_v9 }
 0x104   : > { %v415_v23 = vmul.f32 0.00390625, %v330_v20  ;;  %v318_v26 = vpop.xlane.xlu0 %317 }
 0x105   : > { %v411_v32 = vmul.f32 0.00390625, %v318_v26  ;;  %2763 = vmatprep.subr.bf16.mxu1 %v2762_v19 }
 0x106   : > { %v604_v34 = vrot.slane %v415_v23, %v3675_v13  ;;  %2765 = vmatpush3.bf16.msra.mxu1 %v2762_v19 }
 0x107   : > { %v580_v35 = vrot.slane %v411_v32, %v3675_v13  ;;  %v333_v38 = vpop.xlane.xlu1 %332 }
 0x108   : > { %v605_v31 = vsel %vm581_vm0, %v604_v34, %v600_v33  ;;  %v416_v39 = vmul.f32 0.00390625, %v333_v38  ;;  %v321_v42 = vpop.xlane.xlu0 %320 }
 0x109   : > { %v582_v49 = vsel %vm581_vm0, %v580_v35, %v575_v25  ;;  %v412_v50 = vmul.f32 0.00390625, %v321_v42 }
 0x10a   : > { %v609_v51 = vrot.slane %v416_v39, %v3680_v24 }
 0x10b   : > { %v587_v44 = vrot.slane %v412_v50, %v3680_v24  ;;  %v342_v36 = vpop.xlane.xlu1 %341 }
 0x10c   : > { %v610_v40 = vsel %vm588_vm1, %v609_v51, %v605_v31  ;;  %v419_v41 = vmul.f32 0.00390625, %v342_v36  ;;  %v339_v47 = vpop.xlane.xlu0 %338 }
 0x10d   : > { %v589_v55 = vsel %vm588_vm1, %v587_v44, %v582_v49  ;;  %v418_v52 = vmul.f32 0.00390625, %v339_v47 }
 0x10e   : > { %v623_v53 = vrot.slane %v419_v41, %v3675_v13 }
 0x10f   : > { %v619_v56 = vrot.slane %v418_v52, %v3672_v14  ;;  %v336_v57 = vpop.xlane.xlu1 %335 }
 0x110   : > { %v417_v60 = vmul.f32 0.00390625, %v336_v57  ;;  %v324_v61 = vpop.xlane.xlu0 %323 }
 0x111   : > { %v624_v0 = vsel %vm581_vm0, %v623_v53, %v619_v56  ;;  %v413_v1 = vmul.f32 0.00390625, %v324_v61 }
 0x112   : > { %v614_v2 = vrot.slane %v417_v60, %v3692_v58 }
 0x113   : > { %v594_v3 = vrot.slane %v413_v1, %v3692_v58  ;;  %v351_v4 = vpop.xlane.xlu1 %350 }
 0x114   : > { %v615_v6 = vsel %vm595_vm2, %v614_v2, %v610_v40  ;;  %v345_v7 = vpop.xlane.xlu0 %344  ;;  %v422_v16 = vmul.f32 0.00390625, %v351_v4 }
 0x115   : > { %v596_v11 = vsel %vm595_vm2, %v594_v3, %v589_v55  ;;  %v420_v12 = vmul.f32 0.00390625, %v345_v7 }
 0x116   : > { %v731_v15 = vsel %vm730_vm3, %v615_v6, %v596_v11  ;;  %v638_v27 = vrot.slane %v422_v16, %v3672_v14 }
 0x117   : > { %v628_v17 = vrot.slane %v420_v12, %v3680_v24  ;;  %v348_v18 = vpop.xlane.xlu1 %347 }
 0x118   : > { %v421_v20 = vmul.f32 0.00390625, %v348_v18  ;;  %v354_v21 = vpop.xlane.xlu0 %353 }
 0x119   : > { %v629_v22 = vsel %vm588_vm1, %v628_v17, %v624_v0  ;;  %v423_v23 = vmul.f32 0.00390625, %v354_v21 }
 0x11a   : > { %v633_v26 = vrot.slane %v421_v20, %v3692_v58 }
 0x11b   : > { %v642_v28 = vrot.slane %v423_v23, %v3675_v13  ;;  %v363_v29 = vpop.xlane.xlu1 %362 }
 0x11c   : > { %v634_v32 = vsel %vm595_vm2, %v633_v26, %v629_v22  ;;  %v357_v33 = vpop.xlane.xlu0 %356  ;;  %v426_v38 = vmul.f32 0.00390625, %v363_v29 }
 0x11d   : > { %v733_v34 = vsel %vm732_vm4, %v634_v32, %v731_v15  ;;  %v643_v25 = vsel %vm581_vm0, %v642_v28, %v638_v27  ;;  %v424_v35 = vmul.f32 0.00390625, %v357_v33 }
 0x11e   : > { %v657_v46 = vrot.slane %v426_v38, %v3672_v14 }
 0x11f   : > { %v647_v30 = vrot.slane %v424_v35, %v3680_v24  ;;  %v444_v31 = vpop.xlane.xlu1 %443 }
 0x120   : > { %v366_v39 = vpop.xlane.xlu0 %365  ;;  %v779_v43 = vrot.slane %v444_v31, %v3672_v14 }
 0x121   : > { %v648_v42 = vsel %vm588_vm1, %v647_v30, %v643_v25  ;;  %v427_v45 = vmul.f32 0.00390625, %v366_v39 }
 0x123   : > { %v661_v49 = vrot.slane %v427_v45, %v3675_v13  ;;  %v456_v50 = vpop.xlane.xlu1 %455 }
 0x124   : > { %v447_v51 = vpop.xlane.xlu0 %446  ;;  %v798_v48 = vrot.slane %v456_v50, %v3672_v14 }
 0x125   : > { %v662_v44 = vsel %vm581_vm0, %v661_v49, %v657_v46  ;;  %v783_v36 = vrot.slane %v447_v51, %v3675_v13 }
 0x127   : > { %v784_v37 = vsel %vm581_vm0, %v783_v36, %v779_v43  ;;  %v360_v40 = vpop.xlane.xlu1 %359 }
 0x128   : > { %v425_v41 = vmul.f32 0.00390625, %v360_v40  ;;  %v459_v47 = vpop.xlane.xlu0 %458 }
 0x129   : > { %v802_v54 = vrot.slane %v459_v47, %v3675_v13 }
 0x12a   : > { %v652_v55 = vrot.slane %v425_v41, %v3692_v58 }
 0x12b   : > { %v803_v52 = vsel %vm581_vm0, %v802_v54, %v798_v48  ;;  %v375_v53 = vpop.xlane.xlu1 %374 }
 0x12c   : > { %v653_v56 = vsel %vm595_vm2, %v652_v55, %v648_v42  ;;  %v369_v57 = vpop.xlane.xlu0 %368  ;;  %v430_v55 = vmul.f32 0.00390625, %v375_v53 }
 0x12d   : > { %v735_v59 = vsel %vm734_vm5, %v653_v56, %v733_v34  ;;  %v428_v0 = vmul.f32 0.00390625, %v369_v57 }
 0x12f   : > { %v450_v60 = vpop.xlane.xlu1 %449  ;;  %v666_v4 = vrot.slane %v428_v0, %v3680_v24 }
 0x130   : > { %v788_v61 = vrot.slane %v450_v60, %v3680_v24  ;;  %v378_v62 = vpop.xlane.xlu0 %377 }
 0x131   : > { %v667_v11 = vsel %vm588_vm1, %v666_v4, %v662_v44  ;;  %v431_v40 = vmul.f32 0.00390625, %v378_v62  ;;  %v676_v4 = vrot.slane %v430_v55, %v3672_v14 }
 0x132   : > { %v789_v63 = vsel %vm588_vm1, %v788_v61, %v784_v37 }
 0x133   : > { %v468_v1 = vpop.xlane.xlu1 %467  ;;  %v680_v60 = vrot.slane %v431_v40, %v3675_v13 }
 0x134   : > { %v462_v2 = vpop.xlane.xlu0 %461  ;;  %v817_v31 = vrot.slane %v468_v1, %v3672_v14 }
 0x135   : > { %v807_v3 = vrot.slane %v462_v2, %v3680_v24 }
 0x137   : > { %v808_v5 = vsel %vm588_vm1, %v807_v3, %v803_v52  ;;  %v372_v6 = vpop.xlane.xlu1 %371 }
 0x138   : > { %v429_v7 = vmul.f32 0.00390625, %v372_v6  ;;  %v471_v9 = vpop.xlane.xlu0 %470 }
 0x139   : > { %v821_v38 = vrot.slane %v471_v9, %v3675_v13  ;;  %v681_v9 = vsel %vm581_vm0, %v680_v60, %v676_v4 }
 0x13a   : > { %v671_v10 = vrot.slane %v429_v7, %v3692_v58 }
 0x13b   : > { %v387_v12 = vpop.xlane.xlu1 %386  ;;  %v822_v45 = vsel %vm581_vm0, %v821_v38, %v817_v31 }
 0x13c   : > { %v672_v15 = vsel %vm595_vm2, %v671_v10, %v667_v11  ;;  %v381_v16 = vpop.xlane.xlu0 %380  ;;  %v434_v57 = vmul.f32 0.00390625, %v387_v12 }
 0x13d   : > { %v3732_v17 = vsel %vm736_vm6, %v672_v15, %v735_v59  ;;  %v432_v47 = vmul.f32 0.00390625, %v381_v16 }
 0x13e   : > { %v695_v6 = vrot.slane %v434_v57, %v3672_v14 }
 0x13f   : > { %v453_v18 = vpop.xlane.xlu1 %452  ;;  %v685_v1 = vrot.slane %v432_v47, %v3680_v24 }
 0x140   : > { %v390_v19 = vpop.xlane.xlu0 %389  ;;  %v793_v20 = vrot.slane %v453_v18, %v3692_v58 }
 0x141   : > { %v435_v48 = vmul.f32 0.00390625, %v390_v19  ;;  %v686_v15 = vsel %vm588_vm1, %v685_v1, %v681_v9 }
 0x142   : > { %v794_v26 = vsel %vm595_vm2, %v793_v20, %v789_v63 }
 0x143   : > { %v474_v21 = vpop.xlane.xlu1 %473  ;;  %v699_v62 = vrot.slane %v435_v48, %v3675_v13 }
 0x144   : > { %v465_v22 = vpop.xlane.xlu0 %464  ;;  %v826_v30 = vrot.slane %v474_v21, %v3680_v24 }
 0x145   : > { %v812_v23 = vrot.slane %v465_v22, %v3692_v58  ;;  %v700_v16 = vsel %vm581_vm0, %v699_v62, %v695_v6 }
 0x146   : > { %v827_v49 = vsel %vm588_vm1, %v826_v30, %v822_v45 }
 0x147   : > { %v813_v27 = vsel %vm595_vm2, %v812_v23, %v808_v5  ;;  %v3738_v28 = vpop.xlane.xlu1 %482 }
 0x148   : > { %v928_v29 = vsel %vm730_vm3, %v813_v27, %v794_v26  ;;  %v3741_v32 = vpop.xlane.xlu0 %479 }
 0x14b   : > { %v393_v33 = vpop.xlane.xlu1 %392 }
 0x14c   : > { %v384_v34 = vpop.xlane.xlu0 %383  ;;  %v436_v52 = vmul.f32 0.00390625, %v393_v33 }
 0x14d   : > { %v433_v56 = vmul.f32 0.00390625, %v384_v34 }
 0x14e   : > { %v704_v53 = vrot.slane %v436_v52, %v3680_v24 }
 0x14f   : > { %v402_v25 = vpop.xlane.xlu1 %401  ;;  %v690_v5 = vrot.slane %v433_v56, %v3692_v58 }
 0x150   : > { %v399_v35 = vpop.xlane.xlu0 %398  ;;  %v439_v61 = vmul.f32 0.00390625, %v402_v25  ;;  %v705_v20 = vsel %vm588_vm1, %v704_v53, %v700_v16 }
 0x151   : > { %v438_v63 = vmul.f32 0.00390625, %v399_v35  ;;  %v691_v21 = vsel %vm595_vm2, %v690_v5, %v686_v15 }
 0x152   : > { %v718_v10 = vrot.slane %v439_v61, %v3675_v13  ;;  %v739_v25 = vsel %vm738_vm7, %v691_v21, %v3732_v17 }
 0x153   : > { %v3746_v39 = vpop.xlane.xlu1 %485  ;;  %v714_v11 = vrot.slane %v438_v63, %v3672_v14 }
 0x154   : > { %v477_v42 = vpop.xlane.xlu0 %476  ;;  %v845_v17 = vrot.slane %v3746_v39, %v3680_v24 }
 0x155   : > { %v831_v46 = vrot.slane %v477_v42, %v3692_v58  ;;  %v719_v26 = vsel %vm581_vm0, %v718_v10, %v714_v11 }
 0x157   : > { %v832_v50 = vsel %vm595_vm2, %v831_v46, %v827_v49  ;;  %v3752_v51 = vpop.xlane.xlu1 %494  ;;  %v840_v46 = vrot.slane %v3738_v28, %v3675_v13  ;;  %v836_v49 = vrot.slane %v3741_v32, %v3672_v14 }
 0x158   : > { %v3755_v43 = vsel %vm732_vm4, %v832_v50, %v928_v29  ;;  %v3757_v44 = vpop.xlane.xlu0 %491 }
 0x15b   : > { %v405_v36 = vpop.xlane.xlu1 %404 }
 0x15c   : > { %v396_v37 = vpop.xlane.xlu0 %395  ;;  %v440_v2 = vmul.f32 0.00390625, %v405_v36  ;;  %v859_v36 = vrot.slane %v3752_v51, %v3675_v13 }
 0x15d   : > { %v437_v59 = vmul.f32 0.00390625, %v396_v37  ;;  %v855_v37 = vrot.slane %v3757_v44, %v3672_v14  ;;  %v841_v44 = vsel %vm581_vm0, %v840_v46, %v836_v49  ;;  %v3842_v49 = vsub.s32 0, %v3669_v8 }
 0x15e   : > { %v723_v18 = vrot.slane %v440_v2, %v3680_v24 }
 0x15f   : > { %v3759_v41 = vpop.xlane.xlu1 %497  ;;  %v709_v7 = vrot.slane %v437_v59, %v3692_v58  ;;  %v860_v57 = vsel %vm581_vm0, %v859_v36, %v855_v37  ;;  %v3849_v36 = vsub.s32 1, %v3669_v8  ;;  %v1169_v37 = vsub.s32 2, %v3669_v8 }
 0x160   : > { %v3761_v54 = vpop.xlane.xlu0 %488  ;;  %v724_v34 = vsel %vm588_vm1, %v723_v18, %v719_v26  ;;  %v864_v40 = vrot.slane %v3759_v41, %v3680_v24 }
 0x161   : > { %v710_v23 = vsel %vm595_vm2, %v709_v7, %v705_v20  ;;  %v850_v47 = vrot.slane %v3761_v54, %v3692_v58  ;;  %v846_v54 = vsel %vm588_vm1, %v845_v17, %v841_v44  ;;  %v955_v20 = vld [vmem:[#allocation6 + $0xa0] sm:$0xff] }
 0x162   : > { %v741_v38 = vsel %vm740_vm8, %v710_v23, %v739_v25  ;;  %v865_v61 = vsel %vm588_vm1, %v864_v40, %v860_v57  ;;  %v2856_v44 = vld [vmem:[#allocation8 + $0x114] ss:$8 sps:$4 sm:$0xff]   ;;  %v2862_v57 = vld [vmem:[#allocation8 + $0x124] ss:$8 sps:$4 sm:$0xff]  }
 0x163   : > { %v3764_v0 = vpop.xlane.xlu1 %506  ;;  %v851_v63 = vsel %vm595_vm2, %v850_v47, %v846_v54  ;;  %v1207_v54 = vsub.s32 4, %v3669_v8 }
 0x164   : > { %v504_v3 = vpop.xlane.xlu0 %503  ;;  %v878_v28 = vrot.slane %v3764_v0, %v3675_v13  ;;  %v930_v10 = vsel %vm734_vm5, %v851_v63, %v3755_v43  ;;  %v954_v43 = vld [vmem:[#allocation6 + $0x98] sm:$0xff] }
 0x165   : > { %v874_v32 = vrot.slane %v504_v3, %v3672_v14  ;;  %v2766_v21 = vpack.c.bf16 %v955_v20, %v954_v43  ;;  %v2887_v43 = vld [vmem:[#allocation8 + $0x60] ss:$8 sps:$4 sm:$0xff]   ;;  %v2892_v20 = vld [vmem:[#allocation8 + $0x174] ss:$8 sps:$4 sm:$0xff]  }
 0x167   : > { %v501_v12 = vpop.xlane.xlu1 %500  ;;  %v879_v0 = vsel %vm581_vm0, %v878_v28, %v874_v32  ;;  %2767 = vmatprep.subr.bf16.mxu1 %v2766_v21  ;;  %v1188_v28 = vsub.s32 3, %v3669_v8  ;;  %v2850_v32 = vld [vmem:[#allocation8 + $0x104] ss:$8 sps:$4 sm:$0xff]  }
 0x168   : > { %v408_v19 = vpop.xlane.xlu0 %407  ;;  %v869_v48 = vrot.slane %v501_v12, %v3692_v58  ;;  %2769 = vmatpush3.bf16.msra.mxu1 %v2766_v21  ;;  %2145 = vmatprep.subr.bf16.mxu0 %v2850_v32  ;;  %v2890_v21 = vld [vmem:[#allocation8 + $0x170] ss:$8 sps:$4 sm:$0xff]   ;;  %v2928_v32 = vld [vmem:[#allocation8 + $0x1d4] ss:$8 sps:$4 sm:$0xff]  }
 0x169   : > { %v441_v22 = vmul.f32 0.00390625, %v408_v19 }
 0x16a   : > { %v870_v62 = vsel %vm595_vm2, %v869_v48, %v865_v61  ;;  %v2848_v48 = vld [vmem:[#allocation8 + $0x100] ss:$8 sps:$4 sm:$0xff]  }
 0x16b   : > { %v728_v27 = vrot.slane %v441_v22, %v3692_v58  ;;  %v516_v29 = vpop.xlane.xlu1 %515  ;;  %v931_v12 = vsel %vm736_vm6, %v870_v62, %v930_v10  ;;  %v2863_v61 = vld [vmem:[#allocation8 + $0x20] ss:$8 sps:$4 sm:$0xff]   ;;  %v1245_v62 = vsub.s32 6, %v3669_v8 }
 0x16c   : > { %v510_v33 = vpop.xlane.xlu0 %509  ;;  %v893_v59 = vrot.slane %v516_v29, %v3672_v14  ;;  %v2875_v10 = vld [vmem:[#allocation8 + $0x40] ss:$8 sps:$4 sm:$0xff]  }
 0x16d   : > { %v729_v35 = vsel %vm595_vm2, %v728_v27, %v724_v34  ;;  %v883_v39 = vrot.slane %v510_v33, %v3680_v24  ;;  %v2582_v34 = vld [vmem:[#allocation6 + $0xa8] ss:$0 sm:$0xff] }
 0x16e   : > { %v743_v30 = vsel %vm742_vm9, %v729_v35, %v741_v38 }
 0x16f   : > { %2692 = vmatprep.mubr.msk.f32.mxu0 %vm961_vm10, %v743_v30  ;;  %v513_v31 = vpop.xlane.xlu1 %512  ;;  %v884_v2 = vsel %vm588_vm1, %v883_v39, %v879_v0  ;;  %v2853_v39 = vld [vmem:[#allocation8 + $0x4] ss:$8 sps:$4 sm:$0xff]   ;;  %v1226_v0 = vsub.s32 5, %v3669_v8 }
 0x170   : > { %v519_v42 = vpop.xlane.xlu0 %518  ;;  %v888_v52 = vrot.slane %v513_v31, %v3692_v58  ;;  %2104 = vmatprep.subr.bf16.mxu1 %v2853_v39  ;;  %v2931_v39 = vld [vmem:[#allocation8 + $0xd4] ss:$8 sps:$4 sm:$0xff]  }
 0x171   : > { %v897_v51 = vrot.slane %v519_v42, %v3675_v13 }
 0x172   : > { %v889_v53 = vsel %vm595_vm2, %v888_v52, %v884_v2  ;;  %v2854_v52 = vld [vmem:[#allocation8 + $0x110] ss:$8 sps:$4 sm:$0xff]   ;;  %v2868_v2 = vld [vmem:[#allocation8 + $0x134] ss:$8 sps:$4 sm:$0xff]  }
 0x173   : > { %v528_v45 = vpop.xlane.xlu1 %527  ;;  %v898_v3 = vsel %vm581_vm0, %v897_v51, %v893_v59  ;;  %v932_v16 = vsel %vm738_vm7, %v889_v53, %v931_v12  ;;  %v2851_v51 = vld [vmem:[#allocation8] ss:$8 sps:$4 sm:$0xff]   ;;  %v2869_v53 = vld [vmem:[#allocation8 + $0x30] ss:$8 sps:$4 sm:$0xff]  }
 0x174   : > { %v522_v50 = vpop.xlane.xlu0 %521  ;;  %v912_v5 = vrot.slane %v528_v45, %v3672_v14  ;;  %v2860_v59 = vld [vmem:[#allocation8 + $0x120] ss:$8 sps:$4 sm:$0xff]   ;;  %v2878_v12 = vld [vmem:[#allocation8 + $0x150] ss:$8 sps:$4 sm:$0xff]  }
 0x175   : > { %v902_v41 = vrot.slane %v522_v50, %v3680_v24 }
 0x177   : > { %v525_v55 = vpop.xlane.xlu1 %524  ;;  %v903_v6 = vsel %vm588_vm1, %v902_v41, %v898_v3  ;;  %v2859_v41 = vld [vmem:[#allocation8 + $0x14] ss:$8 sps:$4 sm:$0xff]   ;;  %v2866_v3 = vld [vmem:[#allocation8 + $0x130] ss:$8 sps:$4 sm:$0xff]  }
 0x178   : > { %v531_v56 = vpop.xlane.xlu0 %530  ;;  %v907_v60 = vrot.slane %v525_v55, %v3692_v58 }
 0x179   : > { %v916_v1 = vrot.slane %v531_v56, %v3675_v13  ;;  %v2857_v56 = vld [vmem:[#allocation8 + $0x10] ss:$8 sps:$4 sm:$0xff]  }
 0x17a   : > { %v908_v13 = vsel %vm595_vm2, %v907_v60, %v903_v6  ;;  %v2865_v60 = vld [vmem:[#allocation8 + $0x24] ss:$8 sps:$4 sm:$0xff]  }
 0x17b   : > { %v537_v4 = vpop.xlane.xlu1 %536  ;;  %v917_v15 = vsel %vm581_vm0, %v916_v1, %v912_v5  ;;  %v933_v19 = vsel %vm740_vm8, %v908_v13, %v932_v16  ;;  %v2874_v6 = vld [vmem:[#allocation8 + $0x144] ss:$8 sps:$4 sm:$0xff]   ;;  %v1264_v13 = vsub.s32 7, %v3669_v8  ;;  %v2881_v16 = vld [vmem:[#allocation8 + $0x50] ss:$8 sps:$4 sm:$0xff]  }
 0x17c   : > { %v534_v7 = vpop.xlane.xlu0 %533  ;;  %v926_v9 = vrot.slane %v537_v4, %v3692_v58  ;;  %v2871_v4 = vld [vmem:[#allocation8 + $0x34] ss:$8 sps:$4 sm:$0xff]  }
 0x17d   : > { %v921_v11 = vrot.slane %v534_v7, %v3680_v24  ;;  %v2579_v24 = vld [vmem:[#allocation6 + $0x20] ss:$0 sm:$0xff]  ;;  %v2872_v7 = vld [vmem:[#allocation8 + $0x140] ss:$8 sps:$4 sm:$0xff]  }
 0x17f   : > { %v922_v14 = vsel %vm588_vm1, %v921_v11, %v917_v15  ;;  %v2880_v11 = vld [vmem:[#allocation8 + $0x154] ss:$8 sps:$4 sm:$0xff]  }
 0x180   : > { %v927_v18 = vsel %vm595_vm2, %v926_v9, %v922_v14  ;;  %v2877_v9 = vld [vmem:[#allocation8 + $0x44] ss:$8 sps:$4 sm:$0xff]   ;;  %v2883_v15 = vld [vmem:[#allocation8 + $0x54] ss:$8 sps:$4 sm:$0xff]  }
 0x181   : > { %v934_v58 = vsel %vm742_vm9, %v927_v18, %v933_v19  ;;  %v2886_v18 = vld [vmem:[#allocation8 + $0x164] ss:$8 sps:$4 sm:$0xff]   ;;  %v2884_v19 = vld [vmem:[#allocation8 + $0x160] ss:$8 sps:$4 sm:$0xff]  }
 0x182   : > { %2693 = vmatmul.mubr.msk.f32.vlgmr.msra.gmra.mrb[0].mxu0 %vm961_vm10, %v934_v58  ;;  %v2889_v58 = vld [vmem:[#allocation8 + $0x64] ss:$8 sps:$4 sm:$0xff]  }
 0x183   : > { %2146 = vmatpush1.bf16.msra.mxu0 %v2848_v48  ;;  %v2926_v48 = vld [vmem:[#allocation8 + $0x1d0] ss:$8 sps:$4 sm:$0xff]  }
 0x184   : > { %2147 = vmatprep.subr.bf16.mxu0 %v2856_v44  ;;  %v2932_v44 = vld [vmem:[#allocation8 + $0x1e0] ss:$8 sps:$4 sm:$0xff]  }
 0x187   : > { %2148 = vmatpush1.bf16.msra.mxu0 %v2854_v52  ;;  %v2937_v52 = vld [vmem:[#allocation8 + $0xe4] ss:$8 sps:$4 sm:$0xff]  }
 0x188   : > { %2149 = vmatprep.subr.bf16.mxu0 %v2862_v57  ;;  %v2941_v57 = vld [vmem:[#allocation8 + $0xf0] ss:$8 sps:$4 sm:$0xff]  }
 0x18b   : > { %2150 = vmatpush1.bf16.msra.mxu0 %v2860_v59  ;;  %v2943_v59 = vld [vmem:[#allocation8 + $0xf4] ss:$8 sps:$4 sm:$0xff]  }
 0x18c   : > { %2151 = vmatprep.subr.bf16.mxu0 %v2868_v2  ;;  %v2956_v2 = vld [vmem:[%s3395_s8 + $0x10] sm:$0xff] }
 0x18f   : > { %2152 = vmatpush1.bf16.msra.mxu0 %v2866_v3 }
 0x190   : > { %2153 = vmatprep.subr.bf16.mxu0 %v2874_v6 }
 0x193   : > { %2154 = vmatpush1.bf16.msra.mxu0 %v2872_v7  ;;  %v2959_v7 = vld [vmem:[%s3395_s8 + $0x8] sm:$0xff] }
 0x194   : > { %2155 = vmatprep.subr.bf16.mxu0 %v2880_v11  ;;  %v2960_v11 = vld [vmem:[%s3395_s8 + $0x50] sm:$0xff] }
 0x197   : > { %2156 = vmatpush1.bf16.msra.mxu0 %v2878_v12 }
 0x198   : > { %2157 = vmatprep.subr.bf16.mxu0 %v2886_v18 }
 0x19b   : > { %2158 = vmatpush1.bf16.msra.mxu0 %v2884_v19  ;;  %v2962_v19 = vld [vmem:[%s3395_s8 + $0x20] sm:$0xff] }
 0x19c   : > { %2159 = vmatprep.subr.bf16.mxu0 %v2892_v20 }
 0x19f   : > { %2160 = vmatpush1.bf16.msra.mxu0 %v2890_v21 }
 0x255   : > { %v2694_v22 = vpop.f32.mrb[0].mxu0 }
 0x256   : > { %v1038_v23 = vadd.f32 %v2694_v22, %v2579_v24  ;;  %v1032_v26 = vpop.f32.mrb[1].mxu0  ;;  %v2893_v22 = vld [vmem:[#allocation8 + $0x70] ss:$8 sps:$4 sm:$0xff]  }
 0x257   : > { %v1033_v27 = vadd.f32 %v2579_v24, %v1032_v26  ;;  %v2895_v24 = vld [vmem:[#allocation8 + $0x74] ss:$8 sps:$4 sm:$0xff]   ;;  %v2896_v26 = vld [vmem:[#allocation8 + $0x180] ss:$8 sps:$4 sm:$0xff]  }
 0x258   : > { %v1042_v33 = vmax.f32 %v1038_v23, 0.0  ;;  %v2898_v23 = vld [vmem:[#allocation8 + $0x184] ss:$8 sps:$4 sm:$0xff]  }
 0x259   : > { %v1041_v29 = vmax.f32 %v1033_v27, 0.0  ;;  %2161 = vmatprep.subr.bf16.mxu0 %v2898_v23  ;;  %v2901_v27 = vld [vmem:[#allocation8 + $0x84] ss:$8 sps:$4 sm:$0xff]  }
 0x25a   : > { %2162 = vmatpush1.bf16.msra.mxu0 %v2896_v26  ;;  %v2965_v26 = vld [vmem:[%s3395_s8 + $0x48] sm:$0xff] }
 0x25b   : > { %2727 = vmatprep.mubr.f32.mxu1 %v1041_v29  ;;  %v2899_v29 = vld [vmem:[#allocation8 + $0x80] ss:$8 sps:$4 sm:$0xff]  }
 0x25c   : > { %2728 = vmatmul.mubr.f32.vlgmr.msra.gmra.mrb[0].mxu1 %v1042_v33  ;;  %v2904_v33 = vld [vmem:[#allocation8 + $0x194] ss:$8 sps:$4 sm:$0xff]  }
 0x25d   : > { %2105 = vmatpush1.bf16.msra.mxu1 %v2851_v51  ;;  %2163 = vmatprep.subr.bf16.mxu0 %v2904_v33  ;;  %v2929_v51 = vld [vmem:[#allocation8 + $0xd0] ss:$8 sps:$4 sm:$0xff]  }
 0x25e   : > { %2106 = vmatprep.subr.bf16.mxu1 %v2859_v41  ;;  %v2935_v41 = vld [vmem:[#allocation8 + $0xe0] ss:$8 sps:$4 sm:$0xff]  }
 0x261   : > { %2107 = vmatpush1.bf16.msra.mxu1 %v2857_v56  ;;  %v2940_v56 = vld [vmem:[#allocation8 + $0x1f4] ss:$8 sps:$4 sm:$0xff]  }
 0x262   : > { %2108 = vmatprep.subr.bf16.mxu1 %v2865_v60 }
 0x265   : > { %2109 = vmatpush1.bf16.msra.mxu1 %v2863_v61 }
 0x266   : > { %2110 = vmatprep.subr.bf16.mxu1 %v2871_v4  ;;  %v2957_v4 = vld [vmem:[%s3395_s8 + $0x18] sm:$0xff] }
 0x269   : > { %2111 = vmatpush1.bf16.msra.mxu1 %v2869_v53 }
 0x26a   : > { %2112 = vmatprep.subr.bf16.mxu1 %v2877_v9 }
 0x26d   : > { %2113 = vmatpush1.bf16.msra.mxu1 %v2875_v10 }
 0x26e   : > { %2114 = vmatprep.subr.bf16.mxu1 %v2883_v15  ;;  %v2961_v15 = vld [vmem:[%s3395_s8 + $0x58] sm:$0xff] }
 0x271   : > { %2115 = vmatpush1.bf16.msra.mxu1 %v2881_v16 }
 0x272   : > { %2116 = vmatprep.subr.bf16.mxu1 %v2889_v58 }
 0x275   : > { %2117 = vmatpush1.bf16.msra.mxu1 %v2887_v43  ;;  %v2963_v43 = vld [vmem:[%s3395_s8 + $0x28] sm:$0xff] }
 0x276   : > { %2118 = vmatprep.subr.bf16.mxu1 %v2895_v24 }
 0x279   : > { %2119 = vmatpush1.bf16.msra.mxu1 %v2893_v22  ;;  %v2964_v22 = vld [vmem:[%s3395_s8 + $0x40] sm:$0xff] }
 0x27a   : > { %2120 = vmatprep.subr.bf16.mxu1 %v2901_v27 }
 0x27d   : > { %2121 = vmatpush1.bf16.msra.mxu1 %v2899_v29 }
 0x32f   : > { %v2729_v25 = vpop.f32.mrb[0].mxu1 }
 0x330   : > { %v1119_v35 = vadd.f32 %v2729_v25, %v2582_v34  ;;  %v1113_v38 = vpop.f32.mrb[1].mxu1  ;;  %v2907_v25 = vld [vmem:[#allocation8 + $0x94] ss:$8 sps:$4 sm:$0xff]  }
 0x331   : > { %v1114_v30 = vadd.f32 %v2582_v34, %v1113_v38  ;;  %v2902_v34 = vld [vmem:[#allocation8 + $0x190] ss:$8 sps:$4 sm:$0xff]   ;;  %2122 = vmatprep.subr.bf16.mxu1 %v2907_v25  ;;  %v2910_v38 = vld [vmem:[#allocation8 + $0x1a4] ss:$8 sps:$4 sm:$0xff]  }
 0x332   : > { %2164 = vmatpush1.bf16.msra.mxu0 %v2902_v34  ;;  %v2966_v34 = vld [vmem:[%s3395_s8 + $0x80] sm:$0xff] }
 0x333   : > { %v1122_v31 = vadd.f32 %v1119_v35, %v1114_v30  ;;  %v2905_v35 = vld [vmem:[#allocation8 + $0x90] ss:$8 sps:$4 sm:$0xff]   ;;  %v2908_v30 = vld [vmem:[#allocation8 + $0x1a0] ss:$8 sps:$4 sm:$0xff]   ;;  %2165 = vmatprep.subr.bf16.mxu0 %v2910_v38 }
 0x334   : > { %2123 = vmatpush1.bf16.msra.mxu1 %v2905_v35  ;;  %v2967_v35 = vld [vmem:[%s3395_s8 + $0x88] sm:$0xff] }
 0x335   : > { %v2583_v42 = vmul.f32 -1.442695, %v1122_v31  ;;  %v2913_v31 = vld [vmem:[#allocation8 + $0xa4] ss:$8 sps:$4 sm:$0xff]  }
 0x336   : > { %2166 = vmatpush1.bf16.msra.mxu0 %v2908_v30  ;;  %2124 = vmatprep.subr.bf16.mxu1 %v2913_v31  ;;  %v2968_v30 = vld [vmem:[%s3395_s8 + $0x90] sm:$0xff] }
 0x337   : > { %2944 = vpow2.f32 %v2583_v42  ;;  %v2911_v42 = vld [vmem:[#allocation8 + $0xa0] ss:$8 sps:$4 sm:$0xff]  }
 0x338   : > { %2125 = vmatpush1.bf16.msra.mxu1 %v2911_v42  ;;  %v2969_v42 = vld [vmem:[%s3395_s8 + $0x98] sm:$0xff] }
 0x341   : > { %v2945_v45 = vpop.eup %2944 }
 0x342   : > { %v1126_v46 = vadd.f32 1.0, %v2945_v45  ;;  %v2916_v45 = vld [vmem:[#allocation8 + $0x1b4] ss:$8 sps:$4 sm:$0xff]  }
 0x343   : > { %2167 = vmatprep.subr.bf16.mxu0 %v2916_v45 }
 0x344   : > { %2946 = vrcp.f32 %v1126_v46  ;;  %v2914_v46 = vld [vmem:[#allocation8 + $0x1b0] ss:$8 sps:$4 sm:$0xff]  }
 0x345   : > { %2168 = vmatpush1.bf16.msra.mxu0 %v2914_v46 }
 0x34e   : > { %v3844_v50 = vpop.eup %2946 }
 0x34f   : > { %v1132_v17 = vrot.slane %v3844_v50, %v3842_v49  ;;  %v1151_v40 = vrot.slane %v3844_v50, %v3849_v36  ;;  %v1170_v47 = vrot.slane %v3844_v50, %v1169_v37  ;;  %v1189_v55 = vrot.slane %v3844_v50, %v1188_v28  ;;  %v2922_v37 = vld [vmem:[#allocation8 + $0x1c4] ss:$8 sps:$4 sm:$0xff]   ;;  %v2923_v28 = vld [vmem:[#allocation8 + $0xc0] ss:$8 sps:$4 sm:$0xff]  }
 0x350   : > { %v1208_v63 = vrot.slane %v3844_v50, %v1207_v54  ;;  %v1227_v1 = vrot.slane %v3844_v50, %v1226_v0  ;;  %v1246_v5 = vrot.slane %v3844_v50, %v1245_v62  ;;  %v1265_v14 = vrot.slane %v3844_v50, %v1264_v13  ;;  %v2919_v50 = vld [vmem:[#allocation8 + $0xb4] ss:$8 sps:$4 sm:$0xff]   ;;  %2169 = vmatprep.subr.bf16.mxu0 %v2922_v37  ;;  %v2938_v54 = vld [vmem:[#allocation8 + $0x1f0] ss:$8 sps:$4 sm:$0xff]  }
 0x351   : > { %1138 = vbcast.lane.b32.xlu1 %v1132_v17, 264  ;;  %1134 = vbcast.lane.b32.xlu0 %v1132_v17, 256 }
 0x352   : > { %2126 = vmatprep.subr.bf16.mxu1 %v2919_v50 }
 0x355   : > { %1153 = vbcast.lane.b32.xlu1 %v1151_v40, 256  ;;  %1172 = vbcast.lane.b32.xlu0 %v1170_v47, 256 }
 0x359   : > { %1157 = vbcast.lane.b32.xlu1 %v1151_v40, 264  ;;  %1142 = vbcast.lane.b32.xlu0 %v1132_v17, 272 }
 0x35d   : > { %1176 = vbcast.lane.b32.xlu1 %v1170_v47, 264  ;;  %1191 = vbcast.lane.b32.xlu0 %v1189_v55, 256 }
 0x361   : > { %1161 = vbcast.lane.b32.xlu1 %v1151_v40, 272  ;;  %1180 = vbcast.lane.b32.xlu0 %v1170_v47, 272 }
 0x365   : > { %1195 = vbcast.lane.b32.xlu1 %v1189_v55, 264  ;;  %1214 = vbcast.lane.b32.xlu0 %v1208_v63, 264 }
 0x369   : > { %1210 = vbcast.lane.b32.xlu1 %v1208_v63, 256  ;;  %1165 = vbcast.lane.b32.xlu0 %v1151_v40, 280  ;;  %v2920_v40 = vld [vmem:[#allocation8 + $0x1c0] ss:$8 sps:$4 sm:$0xff]  }
 0x36a   : > { %2170 = vmatpush1.bf16.msra.mxu0 %v2920_v40 }
 0x36b   : > { %2171 = vmatprep.subr.bf16.mxu0 %v2928_v32 }
 0x36d   : > { %1146 = vbcast.lane.b32.xlu1 %v1132_v17, 280  ;;  %1229 = vbcast.lane.b32.xlu0 %v1227_v1, 256  ;;  %v2917_v17 = vld [vmem:[#allocation8 + $0xb0] ss:$8 sps:$4 sm:$0xff]  }
 0x36e   : > { %2127 = vmatpush1.bf16.msra.mxu1 %v2917_v17  ;;  %2172 = vmatpush1.bf16.msra.mxu0 %v2926_v48  ;;  %v2971_v48 = vld [vmem:[%s3395_s8 + $0x68] sm:$0xff] }
 0x371   : > { %1199 = vbcast.lane.b32.xlu1 %v1189_v55, 272  ;;  %1184 = vbcast.lane.b32.xlu0 %v1170_v47, 280  ;;  %v2925_v47 = vld [vmem:[#allocation8 + $0xc4] ss:$8 sps:$4 sm:$0xff]  }
 0x372   : > { %2128 = vmatprep.subr.bf16.mxu1 %v2925_v47 }
 0x373   : > { %2129 = vmatpush1.bf16.msra.mxu1 %v2923_v28  ;;  %v2970_v28 = vld [vmem:[%s3395_s8 + $0x60] sm:$0xff] }
 0x374   : > { %2130 = vmatprep.subr.bf16.mxu1 %v2931_v39 }
 0x375   : > { %1233 = vbcast.lane.b32.xlu1 %v1227_v1, 264  ;;  %1248 = vbcast.lane.b32.xlu0 %v1246_v5, 256 }
 0x377   : > { %2131 = vmatpush1.bf16.msra.mxu1 %v2929_v51 }
 0x378   : > { %2132 = vmatprep.subr.bf16.mxu1 %v2937_v52 }
 0x379   : > { %1218 = vbcast.lane.b32.xlu1 %v1208_v63, 272  ;;  %1203 = vbcast.lane.b32.xlu0 %v1189_v55, 280  ;;  %v2934_v55 = vld [vmem:[#allocation8 + $0x1e4] ss:$8 sps:$4 sm:$0xff]  }
 0x37a   : > { %2173 = vmatprep.subr.bf16.mxu0 %v2934_v55 }
 0x37b   : > { %2174 = vmatpush1.bf16.msra.mxu0 %v2932_v44  ;;  %2133 = vmatpush1.bf16.msra.mxu1 %v2935_v41  ;;  %v2972_v44 = vld [vmem:[%s3395_s8 + $0xa0] sm:$0xff]  ;;  %v2973_v41 = vld [vmem:[%s3395_s8 + $0xa8] sm:$0xff] }
 0x37c   : > { %2175 = vmatprep.subr.bf16.mxu0 %v2940_v56  ;;  %2134 = vmatprep.subr.bf16.mxu1 %v2943_v59 }
 0x37d   : > { %1252 = vbcast.lane.b32.xlu1 %v1246_v5, 264  ;;  %1267 = vbcast.lane.b32.xlu0 %v1265_v14, 256 }
 0x37f   : > { %2176 = vmatpush1.bf16.msra.mxu0 %v2938_v54  ;;  %2135 = vmatpush1.bf16.msra.mxu1 %v2941_v57 }
 0x381   : > { %1237 = vbcast.lane.b32.xlu1 %v1227_v1, 272  ;;  %1222 = vbcast.lane.b32.xlu0 %v1208_v63, 280 }
 0x385   : > { %1271 = vbcast.lane.b32.xlu1 %v1265_v14, 264  ;;  %1241 = vbcast.lane.b32.xlu0 %v1227_v1, 280 }
 0x389   : > { %1256 = vbcast.lane.b32.xlu1 %v1246_v5, 272  ;;  %1260 = vbcast.lane.b32.xlu0 %v1246_v5, 280  ;;  %v2958_v5 = vld [vmem:[%s3395_s8] sm:$0xff] }
 0x38d   : > { %1275 = vbcast.lane.b32.xlu1 %v1265_v14, 272 }
 0x391   : > { %1279 = vbcast.lane.b32.xlu1 %v1265_v14, 280 }
 0x3c3   : > { %v1139_v60 = vpop.permute.xlu1 %1138  ;;  %v1135_v61 = vpop.permute.xlu0 %1134 }
 0x3c4   : > { %v3866_v3 = vmul.f32 %v2956_v2, %v1139_v60  ;;  %v3869_v53 = vmul.f32 %v2957_v4, %v1139_v60  ;;  %v3872_v6 = vmul.f32 %v2958_v5, %v1135_v61  ;;  %v3875_v9 = vmul.f32 %v2959_v7, %v1135_v61  ;;  %v2974_v61 = vld [vmem:[%s3395_s8 + $0xc0] sm:$0xff]  ;;  %v2976_v4 = vld [vmem:[%s3395_s8 + $0xd0] sm:$0xff]  ;;  %v2977_v7 = vld [vmem:[%s3395_s8 + $0xd8] sm:$0xff] }
 0x3c6   : > { %4675 = vst [vmem:[#allocation13_spill] sm:$0xff] %v3869_v53  ;;  %v1345_v14 = vadd.f32 %v3866_v3, %v3872_v6  ;;  %v1354_v18 = vadd.f32 %v3869_v53, %v3875_v9  ;;  %v1506_v21 = vmax.f32 %v3872_v6, %v3866_v3  ;;  %v1515_v24 = vmax.f32 %v3875_v9, %v3869_v53 }
 0x3c7   : > { %v1154_v63 = vpop.permute.xlu1 %1153  ;;  %v1173_v0 = vpop.permute.xlu0 %1172 }
 0x3c8   : > { %v3898_v23 = vmul.f32 %v2964_v22, %v1154_v63  ;;  %v3901_v27 = vmul.f32 %v2965_v26, %v1154_v63  ;;  %v3904_v25 = vmul.f32 %v2966_v34, %v1173_v0  ;;  %v3907_v38 = vmul.f32 %v2967_v35, %v1173_v0  ;;  %v2975_v0 = vld [vmem:[%s3395_s8 + $0xc8] sm:$0xff] }
 0x3c9   : > { %v2981_v35 = vld [vmem:[%s3395_s8 + $0x108] sm:$0xff] }
 0x3ca   : > { %4680 = vst [vmem:[#allocation18_spill] sm:$0xff] %v3898_v23  ;;  %4681 = vst [vmem:[#allocation19_spill] sm:$0xff] %v3901_v27 }
 0x3cb   : > { %v1158_v1 = vpop.permute.xlu1 %1157  ;;  %v1143_v62 = vpop.permute.xlu0 %1142  ;;  %4682 = vst [vmem:[#allocation20_spill] sm:$0xff] %v3904_v25  ;;  %4683 = vst [vmem:[#allocation21_spill] sm:$0xff] %v3907_v38 }
 0x3cc   : > { %v3878_v12 = vmul.f32 %v2960_v11, %v1158_v1  ;;  %v3881_v16 = vmul.f32 %v2961_v15, %v1158_v1  ;;  %v3888_v58 = vmul.f32 %v2962_v19, %v1143_v62  ;;  %v3891_v20 = vmul.f32 %v2963_v43, %v1143_v62  ;;  %v2978_v43 = vld [vmem:[%s3395_s8 + $0x110] sm:$0xff] }
 0x3ce   : > { %4676 = vst [vmem:[#allocation14_spill] sm:$0xff] %v3878_v12  ;;  %4677 = vst [vmem:[#allocation15_spill] sm:$0xff] %v3881_v16  ;;  %v1363_v46 = vadd.f32 %v3878_v12, %v3898_v23  ;;  %v1372_v50 = vadd.f32 %v3881_v16, %v3901_v27  ;;  %v1524_v17 = vmax.f32 %v3898_v23, %v3878_v12 }
 0x3cf   : > { %v1177_v10 = vpop.permute.xlu1 %1176  ;;  %v1192_v13 = vpop.permute.xlu0 %1191  ;;  %4678 = vst [vmem:[#allocation16_spill] sm:$0xff] %v3888_v58  ;;  %4679 = vst [vmem:[#allocation17_spill] sm:$0xff] %v3891_v20  ;;  %v1533_v37 = vmax.f32 %v3901_v27, %v3881_v16  ;;  %v3924_v40 = vadd.f32 %v1345_v14, %v3888_v58  ;;  %v3927_v47 = vadd.f32 %v1354_v18, %v3891_v20 }
 0x3d0   : > { %v3910_v31 = vmul.f32 %v2968_v30, %v1177_v10  ;;  %v3913_v45 = vmul.f32 %v2969_v42, %v1177_v10  ;;  %v3936_v51 = vmax.f32 %v1506_v21, %v3888_v58  ;;  %v3939_v55 = vmax.f32 %v1515_v24, %v3891_v20  ;;  %v2979_v24 = vld [vmem:[%s3395_s8 + $0x118] sm:$0xff]  ;;  %v2982_v42 = vld [vmem:[%s3395_s8 + $0x70] sm:$0xff] }
 0x3d1   : > { %v3952_v63 = vmul.f32 %v2974_v61, %v1192_v13  ;;  %v3955_v1 = vmul.f32 %v2975_v0, %v1192_v13 }
 0x3d2   : > { %4684 = vst [vmem:[#allocation22_spill] sm:$0xff] %v3910_v31  ;;  %4685 = vst [vmem:[#allocation23_spill] sm:$0xff] %v3913_v45  ;;  %v1381_v59 = vadd.f32 %v3910_v31, %v3904_v25  ;;  %v1390_v60 = vadd.f32 %v3913_v45, %v3907_v38  ;;  %v1542_v62 = vmax.f32 %v3904_v25, %v3910_v31 }
 0x3d3   : > { %v1162_v29 = vpop.permute.xlu1 %1161  ;;  %v1181_v33 = vpop.permute.xlu0 %1180  ;;  %4690 = vst [vmem:[#allocation28_spill] sm:$0xff] %v3952_v63  ;;  %4691 = vst [vmem:[#allocation29_spill] sm:$0xff] %v3955_v1  ;;  %v1551_v2 = vmax.f32 %v3907_v38, %v3913_v45 }
 0x3d4   : > { %v3930_v32 = vmul.f32 %v2970_v28, %v1162_v29  ;;  %v3933_v39 = vmul.f32 %v2971_v48, %v1162_v29  ;;  %v3942_v52 = vmul.f32 %v2972_v44, %v1181_v33  ;;  %v3945_v56 = vmul.f32 %v2973_v41, %v1181_v33  ;;  %v2980_v33 = vld [vmem:[%s3395_s8 + $0x100] sm:$0xff] }
 0x3d6   : > { %4686 = vst [vmem:[#allocation24_spill] sm:$0xff] %v3930_v32  ;;  %4687 = vst [vmem:[#allocation25_spill] sm:$0xff] %v3933_v39  ;;  %v1364_v11 = vadd.f32 %v1363_v46, %v3930_v32  ;;  %v1373_v13 = vadd.f32 %v1372_v50, %v3933_v39  ;;  %v1525_v15 = vmax.f32 %v1524_v17, %v3930_v32  ;;  %v2983_v50 = vld [vmem:[%s3395_s8 + $0x78] sm:$0xff] }
 0x3d7   : > { %4688 = vst [vmem:[#allocation26_spill] sm:$0xff] %v3942_v52  ;;  %4689 = vst [vmem:[#allocation27_spill] sm:$0xff] %v3945_v56  ;;  %v1196_v54 = vpop.permute.xlu1 %1195  ;;  %v1215_v57 = vpop.permute.xlu0 %1214  ;;  %v1534_v14 = vmax.f32 %v1533_v37, %v3933_v39  ;;  %v3972_v18 = vadd.f32 %v1381_v59, %v3942_v52  ;;  %v3975_v19 = vadd.f32 %v1390_v60, %v3945_v56 }
 0x3d8   : > { %v3962_v5 = vmul.f32 %v2976_v4, %v1196_v54  ;;  %v3965_v10 = vmul.f32 %v2977_v7, %v1196_v54  ;;  %v3978_v21 = vmul.f32 %v2978_v43, %v1215_v57  ;;  %v3981_v22 = vmul.f32 %v2979_v24, %v1215_v57  ;;  %v2984_v43 = vld [vmem:[%s3395_s8 + $0x30] sm:$0xff] }
 0x3d9   : > { %v3996_v37 = vmax.f32 %v1542_v62, %v3942_v52  ;;  %v3999_v28 = vmax.f32 %v1551_v2, %v3945_v56 }
 0x3da   : > { %4692 = vst [vmem:[#allocation30_spill] sm:$0xff] %v3962_v5  ;;  %4693 = vst [vmem:[#allocation31_spill] sm:$0xff] %v3965_v10  ;;  %v4003_v48 = vadd.f32 %v3962_v5, %v3952_v63  ;;  %v4007_v44 = vadd.f32 %v3965_v10, %v3955_v1 }
 0x3db   : > { %4694 = vst [vmem:[#allocation32_spill] sm:$0xff] %v3978_v21  ;;  %4695 = vst [vmem:[#allocation33_spill] sm:$0xff] %v3981_v22  ;;  %v1211_v26 = vpop.permute.xlu1 %1210  ;;  %v1166_v29 = vpop.permute.xlu0 %1165 }
 0x3dc   : > { %v3984_v34 = vmul.f32 %v2980_v33, %v1211_v26  ;;  %v3987_v30 = vmul.f32 %v2981_v35, %v1211_v26  ;;  %v3990_v46 = vmul.f32 %v2982_v42, %v1166_v29  ;;  %v3993_v17 = vmul.f32 %v2983_v50, %v1166_v29  ;;  %v2985_v26 = vld [vmem:[%s3395_s8 + $0x38] sm:$0xff] }
 0x3de   : > { %4696 = vst [vmem:[#allocation34_spill] sm:$0xff] %v3984_v34  ;;  %4697 = vst [vmem:[#allocation35_spill] sm:$0xff] %v3987_v30  ;;  %v4015_v57 = vadd.f32 %v3978_v21, %v3984_v34  ;;  %v4019_v59 = vadd.f32 %v3981_v22, %v3987_v30  ;;  %v1365_v60 = vadd.f32 %v1364_v11, %v3990_v46 }
 0x3df   : > { %4698 = vst [vmem:[#allocation36_spill] sm:$0xff] %v3990_v46  ;;  %4699 = vst [vmem:[#allocation37_spill] sm:$0xff] %v3993_v17  ;;  %v1374_v61 = vadd.f32 %v1373_v13, %v3993_v17  ;;  %v1526_v0 = vmax.f32 %v1525_v15, %v3990_v46  ;;  %v1535_v62 = vmax.f32 %v1534_v14, %v3993_v17  ;;  %v1147_v2 = vpop.permute.xlu1 %1146  ;;  %v1230_v15 = vpop.permute.xlu0 %1229 }
 0x3e0   : > { %v4030_v24 = vmul.f32 %v2984_v43, %v1147_v2  ;;  %v4033_v29 = vmul.f32 %v2985_v26, %v1147_v2  ;;  %v1366_v11 = vrot.slane %v1365_v60, 4 }
 0x3e1   : > { %v1375_v33 = vrot.slane %v1374_v61, 4  ;;  %v1527_v13 = vrot.slane %v1526_v0, 4  ;;  %v1536_v35 = vrot.slane %v1535_v62, 4 }
 0x3e2   : > { %4700 = vst [vmem:[#allocation38_spill] sm:$0xff] %v4030_v24  ;;  %4701 = vst [vmem:[#allocation39_spill] sm:$0xff] %v4033_v29  ;;  %v1347_v14 = vadd.f32 %v3924_v40, %v4030_v24  ;;  %v1356_v42 = vadd.f32 %v3927_v47, %v4033_v29  ;;  %v1508_v50 = vmax.f32 %v3936_v51, %v4030_v24 }
 0x3e3   : > { %v1517_v43 = vmax.f32 %v3939_v55, %v4033_v29  ;;  %v1367_v7 = vadd.f32 %v1366_v11, %v1365_v60  ;;  %v1376_v2 = vadd.f32 %v1375_v33, %v1374_v61  ;;  %v1528_v26 = vmax.f32 %v1526_v0, %v1527_v13  ;;  %v1200_v51 = vpop.permute.xlu1 %1199  ;;  %v1185_v61 = vpop.permute.xlu0 %1184 }
 0x3e4   : > { %v1537_v4 = vmax.f32 %v1535_v62, %v1536_v35  ;;  %v1348_v54 = vrot.slane %v1347_v14, 4  ;;  %v1357_v41 = vrot.slane %v1356_v42, 4  ;;  %v1509_v56 = vrot.slane %v1508_v50, 4 }
 0x3e5   : > { %v1518_v52 = vrot.slane %v1517_v43, 4  ;;  %v1368_v45 = vrot.slane %v1367_v7, 2  ;;  %v1377_v31 = vrot.slane %v1376_v2, 2  ;;  %v1529_v40 = vrot.slane %v1528_v26, 2 }
 0x3e6   : > { %v1538_v38 = vrot.slane %v1537_v4, 2  ;;  %v1349_v25 = vadd.f32 %v1348_v54, %v1347_v14  ;;  %v1358_v47 = vadd.f32 %v1357_v41, %v1356_v42  ;;  %v1510_v17 = vmax.f32 %v1508_v50, %v1509_v56 }
 0x3e7   : > { %v1519_v46 = vmax.f32 %v1517_v43, %v1518_v52  ;;  %v1369_v39 = vadd.f32 %v1368_v45, %v1367_v7  ;;  %v1378_v32 = vadd.f32 %v1377_v31, %v1376_v2  ;;  %v1530_v55 = vmax.f32 %v1528_v26, %v1529_v40  ;;  %v2987_v7 = vld [vmem:[%s3395_s8 + $0x148] sm:$0xff]  ;;  %v1234_v26 = vpop.permute.xlu1 %1233 }
 0x3e8   : > { %v1539_v60 = vmax.f32 %v1537_v4, %v1538_v38  ;;  %v1350_v0 = vrot.slane %v1349_v25, 2  ;;  %v1359_v62 = vrot.slane %v1358_v47, 2  ;;  %v1511_v11 = vrot.slane %v1510_v17, 2  ;;  %v2986_v38 = vld [vmem:[%s3395_s8 + $0x140] sm:$0xff] }
 0x3e9   : > { %v1520_v33 = vrot.slane %v1519_v46, 2  ;;  %v1370_v13 = vrot.slane %v1369_v39, 1  ;;  %v1379_v35 = vrot.slane %v1378_v32, 1  ;;  %v1531_v16 = vrot.slane %v1530_v55, 1 }
 0x3ea   : > { %v1540_v12 = vrot.slane %v1539_v60, 1  ;;  %v1351_v54 = vadd.f32 %v1350_v0, %v1349_v25  ;;  %v1360_v41 = vadd.f32 %v1359_v62, %v1358_v47  ;;  %v1512_v52 = vmax.f32 %v1510_v17, %v1511_v11  ;;  %v2988_v47 = vld [vmem:[%s3395_s8 + $0xe0] sm:$0xff] }
 0x3eb   : > { %v1521_v56 = vmax.f32 %v1519_v46, %v1520_v33  ;;  %v1371_v31 = vadd.f32 %v1370_v13, %v1369_v39  ;;  %v1380_v45 = vadd.f32 %v1379_v35, %v1378_v32  ;;  %v4044_v4 = vmul.f32 %v2986_v38, %v1230_v15  ;;  %v2989_v46 = vld [vmem:[%s3395_s8 + $0xe8] sm:$0xff]  ;;  %v1249_v32 = vpop.permute.xlu0 %1248  ;;  %v2993_v38 = vld [vmem:[%s3395_s8 + $0x158] sm:$0xff] }
 0x3ec   : > { %v4047_v14 = vmul.f32 %v2987_v7, %v1230_v15  ;;  %v1352_v42 = vrot.slane %v1351_v54, 1  ;;  %v1361_v50 = vrot.slane %v1360_v41, 1  ;;  %v1513_v43 = vrot.slane %v1512_v52, 1 }
 0x3ed   : > { %4702 = vst [vmem:[#allocation40_spill] sm:$0xff] %v4044_v4  ;;  %v1522_v2 = vrot.slane %v1521_v56, 1  ;;  %v1532_v40 = vmax.f32 %v1530_v55, %v1531_v16  ;;  %v1541_v25 = vmax.f32 %v1539_v60, %v1540_v12  ;;  %v4050_v0 = vmul.f32 %v2988_v47, %v1200_v51 }
 0x3ee   : > { %4703 = vst [vmem:[#allocation41_spill] sm:$0xff] %v4047_v14  ;;  %v4053_v39 = vmul.f32 %v2989_v46, %v1200_v51  ;;  %v1353_v17 = vadd.f32 %v1352_v42, %v1351_v54  ;;  %v1362_v15 = vadd.f32 %v1361_v50, %v1360_v41  ;;  %v1514_v62 = vmax.f32 %v1512_v52, %v1513_v43  ;;  %v2990_v52 = vld [vmem:[%s3395_s8 + $0xb0] sm:$0xff] }
 0x3ef   : > { %4704 = vst [vmem:[#allocation42_spill] sm:$0xff] %v4050_v0  ;;  %v1523_v11 = vmax.f32 %v1521_v56, %v1522_v2  ;;  %v1492_v33 = vmul.f32 0.03125, %v1371_v31  ;;  %v1493_v13 = vmul.f32 0.03125, %v1380_v45  ;;  %v1400_v12 = vadd.f32 %v4003_v48, %v4050_v0  ;;  %v2991_v31 = vld [vmem:[%s3395_s8 + $0xb8] sm:$0xff]  ;;  %v2992_v45 = vld [vmem:[%s3395_s8 + $0x150] sm:$0xff]  ;;  %v1219_v2 = vpop.permute.xlu1 %1218 }
 0x3f0   : > { %4705 = vst [vmem:[#allocation43_spill] sm:$0xff] %v4053_v39  ;;  %v1409_v16 = vadd.f32 %v4007_v44, %v4053_v39  ;;  %v1490_v55 = vmul.f32 0.03125, %v1353_v17  ;;  %v1491_v60 = vmul.f32 0.03125, %v1362_v15  ;;  %v4706_v51 = vmax.f32 %v3952_v63, %v3962_v5  ;;  %v2994_v15 = vld [vmem:[%s3395_s8 + $0x180] sm:$0xff] }
 0x3f1   : > { %v4707_v54 = vmax.f32 %v3955_v1, %v3965_v10  ;;  %v4068_v56 = vmul.f32 %v2990_v52, %v1185_v61  ;;  %v4071_v48 = vmul.f32 %v2991_v31, %v1185_v61  ;;  %v4074_v44 = vmul.f32 %v2992_v45, %v1234_v26  ;;  %v2998_v52 = vld [vmem:[%s3395_s8 + $0xf0] sm:$0xff]  ;;  %v2999_v45 = vld [vmem:[%s3395_s8 + $0xf8] sm:$0xff] }
 0x3f2   : > { %v1561_v35 = vmax.f32 %v4706_v51, %v4050_v0  ;;  %v4077_v7 = vmul.f32 %v2993_v38, %v1234_v26  ;;  %v4080_v42 = vsel %vm730_vm3, %v1492_v33, %v1490_v55  ;;  %v4083_v50 = vsel %vm730_vm3, %v1493_v13, %v1491_v60  ;;  %v2996_v55 = vld [vmem:[%s3395_s8 + $0x120] sm:$0xff]  ;;  %v2997_v51 = vld [vmem:[%s3395_s8 + $0x128] sm:$0xff] }
 0x3f3   : > { %v1570_v41 = vmax.f32 %v4707_v54, %v4053_v39  ;;  %4708 = vst [vmem:[#allocation44_spill] sm:$0xff] %v4068_v56  ;;  %4709 = vst [vmem:[#allocation45_spill] sm:$0xff] %v4071_v48  ;;  %v4086_v43 = vsel %vm730_vm3, %v1532_v40, %v1514_v62  ;;  %v4089_v61 = vsel %vm730_vm3, %v1541_v25, %v1523_v11  ;;  %v1204_v40 = vpop.permute.xlu0 %1203  ;;  %v2995_v62 = vld [vmem:[%s3395_s8 + $0x188] sm:$0xff] }
 0x3f4   : > { %4710 = vst [vmem:[#allocation46_spill] sm:$0xff] %v4074_v44  ;;  %4711 = vst [vmem:[#allocation47_spill] sm:$0xff] %v4077_v7  ;;  %v1383_v47 = vadd.f32 %v3972_v18, %v4068_v56  ;;  %v1392_v26 = vadd.f32 %v3975_v19, %v4071_v48  ;;  %v1544_v46 = vmax.f32 %v3996_v37, %v4068_v56 }
 0x3f5   : > { %v1553_v17 = vmax.f32 %v3999_v28, %v4071_v48  ;;  %v4101_v25 = vadd.f32 %v4074_v44, %v4044_v4  ;;  %v4105_v18 = vadd.f32 %v4077_v7, %v4047_v14  ;;  %v4108_v19 = vmul.f32 %v2994_v15, %v1249_v32 }
 0x3f6   : > { %v4111_v11 = vmul.f32 %v2995_v62, %v1249_v32  ;;  %v1384_v37 = vrot.slane %v1383_v47, 4  ;;  %v1393_v33 = vrot.slane %v1392_v26, 4  ;;  %v1545_v28 = vrot.slane %v1544_v46, 4 }
 0x3f7   : > { %v1554_v13 = vrot.slane %v1553_v17, 4  ;;  %v4114_v60 = vmul.f32 %v2996_v55, %v1219_v2  ;;  %v4117_v54 = vmul.f32 %v2997_v51, %v1219_v2  ;;  %v4120_v31 = vmul.f32 %v2998_v52, %v1204_v40 }
 0x3f8   : > { %v4123_v38 = vmul.f32 %v2999_v45, %v1204_v40  ;;  %v1385_v15 = vadd.f32 %v1384_v37, %v1383_v47  ;;  %v1394_v39 = vadd.f32 %v1393_v33, %v1392_v26  ;;  %v1546_v32 = vmax.f32 %v1544_v46, %v1545_v28  ;;  %v1253_v40 = vpop.permute.xlu1 %1252 }
 0x3f9   : > { %4712 = vst [vmem:[#allocation48_spill] sm:$0xff] %v4114_v60  ;;  %4713 = vst [vmem:[#allocation49_spill] sm:$0xff] %v4117_v54  ;;  %v1555_v62 = vmax.f32 %v1553_v17, %v1554_v13  ;;  %v4131_v2 = vadd.f32 %v4015_v57, %v4114_v60  ;;  %v4135_v51 = vadd.f32 %v4019_v59, %v4117_v54 }
 0x3fa   : > { %4714 = vst [vmem:[#allocation50_spill] sm:$0xff] %v4120_v31  ;;  %4715 = vst [vmem:[#allocation51_spill] sm:$0xff] %v4123_v38  ;;  %v1386_v52 = vrot.slane %v1385_v15, 2  ;;  %v1395_v47 = vrot.slane %v1394_v39, 2  ;;  %v1547_v26 = vrot.slane %v1546_v32, 2  ;;  %v1401_v17 = vadd.f32 %v1400_v12, %v4120_v31 }
 0x3fb   : > { %v1556_v46 = vrot.slane %v1555_v62, 2  ;;  %v1410_v37 = vadd.f32 %v1409_v16, %v4123_v38  ;;  %v1562_v33 = vmax.f32 %v1561_v35, %v4120_v31  ;;  %v1571_v28 = vmax.f32 %v1570_v41, %v4123_v38  ;;  %v1268_v35 = vpop.permute.xlu0 %1267 }
 0x3fc   : > { %v1387_v13 = vadd.f32 %v1386_v52, %v1385_v15  ;;  %v1396_v57 = vadd.f32 %v1395_v47, %v1394_v39  ;;  %v1548_v45 = vmax.f32 %v1546_v32, %v1547_v26  ;;  %v1402_v0 = vrot.slane %v1401_v17, 4  ;;  %v1238_v31 = vpop.permute.xlu1 %1237 }
 0x3fd   : > { %v1557_v55 = vmax.f32 %v1555_v62, %v1556_v46  ;;  %v1411_v59 = vrot.slane %v1410_v37, 4  ;;  %v1563_v10 = vrot.slane %v1562_v33, 4  ;;  %v1572_v5 = vrot.slane %v1571_v28, 4 }
 0x3fe   : > { %v1388_v1 = vrot.slane %v1387_v13, 1  ;;  %v1397_v63 = vrot.slane %v1396_v57, 1  ;;  %v1549_v48 = vrot.slane %v1548_v45, 1  ;;  %v1403_v27 = vadd.f32 %v1402_v0, %v1401_v17 }
 0x3ff   : > { %v1558_v56 = vrot.slane %v1557_v55, 1  ;;  %v1412_v12 = vadd.f32 %v1411_v59, %v1410_v37  ;;  %v1564_v16 = vmax.f32 %v1562_v33, %v1563_v10  ;;  %v1573_v23 = vmax.f32 %v1571_v28, %v1572_v5 }
 0x400   : > { %v1389_v41 = vadd.f32 %v1388_v1, %v1387_v13  ;;  %v1398_v15 = vadd.f32 %v1397_v63, %v1396_v57  ;;  %v1550_v39 = vmax.f32 %v1548_v45, %v1549_v48  ;;  %v4716_v32 = vmax.f32 %v3984_v34, %v3978_v21  ;;  %v3000_v63 = vld [vmem:[%s3395_s8 + $0x190] sm:$0xff] }
 0x401   : > { %v1404_v52 = vrot.slane %v1403_v27, 2  ;;  %v1413_v47 = vrot.slane %v1412_v12, 2  ;;  %v1565_v26 = vrot.slane %v1564_v16, 2  ;;  %v1574_v46 = vrot.slane %v1573_v23, 2 }
 0x402   : > { %v1579_v62 = vmax.f32 %v4716_v32, %v4114_v60  ;;  %v1494_v0 = vmul.f32 0.03125, %v1389_v41  ;;  %v4145_v17 = vmax.f32 %v1557_v55, %v1558_v56  ;;  %v4717_v5 = vmax.f32 %v3987_v30, %v3981_v22  ;;  %v3001_v55 = vld [vmem:[%s3395_s8 + $0x198] sm:$0xff]  ;;  %v1272_v41 = vpop.permute.xlu1 %1271 }
 0x403   : > { %v4152_v10 = vmul.f32 %v3000_v63, %v1253_v40  ;;  %v1405_v48 = vadd.f32 %v1404_v52, %v1403_v27  ;;  %v1414_v37 = vadd.f32 %v1413_v47, %v1412_v12  ;;  %v1566_v33 = vmax.f32 %v1564_v16, %v1565_v26  ;;  %v1223_v16 = vpop.permute.xlu0 %1222  ;;  %v3002_v52 = vld [vmem:[%s3395_s8 + $0x1c0] sm:$0xff]  ;;  %v3003_v26 = vld [vmem:[%s3395_s8 + $0x1c8] sm:$0xff] }
 0x404   : > { %v1588_v1 = vmax.f32 %v4717_v5, %v4117_v54  ;;  %v1575_v28 = vmax.f32 %v1573_v23, %v1574_v46  ;;  %v4154_v13 = vmul.f32 0.03125, %v1398_v15  ;;  %v4158_v57 = vsel %vm732_vm4, %v1494_v0, %v4080_v42  ;;  %v3004_v0 = vld [vmem:[%s3395_s8 + $0x160] sm:$0xff]  ;;  %v3005_v63 = vld [vmem:[%s3395_s8 + $0x168] sm:$0xff]  ;;  %v3007_v15 = vld [vmem:[%s3395_s8 + $0x138] sm:$0xff] }
 0x405   : > { %v4162_v56 = vsel %vm732_vm4, %v1550_v39, %v4086_v43  ;;  %v4165_v45 = vmul.f32 %v3001_v55, %v1253_v40  ;;  %v1406_v59 = vrot.slane %v1405_v48, 1  ;;  %v1415_v27 = vrot.slane %v1414_v37, 1  ;;  %v3006_v40 = vld [vmem:[%s3395_s8 + $0x130] sm:$0xff] }
 0x406   : > { %v1567_v12 = vrot.slane %v1566_v33, 1  ;;  %v1576_v23 = vrot.slane %v1575_v28, 1  ;;  %v4169_v42 = vadd.f32 %v4152_v10, %v4108_v19  ;;  %v4180_v47 = vmul.f32 %v3002_v52, %v1268_v35 }
 0x407   : > { %v4173_v43 = vadd.f32 %v4165_v45, %v4111_v11  ;;  %v1407_v39 = vadd.f32 %v1406_v59, %v1405_v48  ;;  %v1416_v32 = vadd.f32 %v1415_v27, %v1414_v37  ;;  %v4183_v46 = vmul.f32 %v3003_v26, %v1268_v35  ;;  %v3008_v27 = vld [vmem:[%s3395_s8 + $0x1d0] sm:$0xff]  ;;  %v3009_v35 = vld [vmem:[%s3395_s8 + $0x1d8] sm:$0xff] }
 0x408   : > { %4718 = vst [vmem:[#allocation52_spill] sm:$0xff] %v4180_v47  ;;  %v4186_v5 = vmul.f32 %v3004_v0, %v1238_v31  ;;  %v4189_v55 = vmul.f32 %v3005_v63, %v1238_v31  ;;  %v4192_v54 = vmul.f32 %v3006_v40, %v1223_v16  ;;  %v4195_v48 = vmul.f32 %v3007_v15, %v1223_v16  ;;  %v1257_v15 = vpop.permute.xlu1 %1256 }
 0x409   : > { %4719 = vst [vmem:[#allocation53_spill] sm:$0xff] %v4183_v46  ;;  %v4197_v37 = vmax.f32 %v1566_v33, %v1567_v12  ;;  %v4199_v59 = vmax.f32 %v1575_v28, %v1576_v23  ;;  %v4202_v52 = vmul.f32 %v3008_v27, %v1272_v41  ;;  %v4205_v26 = vmul.f32 %v3009_v35, %v1272_v41  ;;  %v1242_v41 = vpop.permute.xlu0 %1241  ;;  %v3010_v35 = vld [vmem:[%s3395_s8 + $0x170] sm:$0xff] }
 0x40a   : > { %4720 = vst [vmem:[#allocation54_spill] sm:$0xff] %v4186_v5  ;;  %4721 = vst [vmem:[#allocation55_spill] sm:$0xff] %v4189_v55  ;;  %v4207_v0 = vmul.f32 0.03125, %v1407_v39  ;;  %v4209_v31 = vmul.f32 0.03125, %v1416_v32  ;;  %v1436_v40 = vadd.f32 %v4101_v25, %v4186_v5  ;;  %v1445_v33 = vadd.f32 %v4105_v18, %v4189_v55 }
 0x40b   : > { %4722 = vst [vmem:[#allocation56_spill] sm:$0xff] %v4192_v54  ;;  %4723 = vst [vmem:[#allocation57_spill] sm:$0xff] %v4195_v48  ;;  %v1419_v28 = vadd.f32 %v4131_v2, %v4192_v54  ;;  %v1428_v12 = vadd.f32 %v4135_v51, %v4195_v48  ;;  %v1580_v23 = vmax.f32 %v1579_v62, %v4192_v54 }
 0x40c   : > { %4724 = vst [vmem:[#allocation58_spill] sm:$0xff] %v4202_v52  ;;  %4725 = vst [vmem:[#allocation59_spill] sm:$0xff] %v4205_v26  ;;  %v1589_v16 = vmax.f32 %v1588_v1, %v4195_v48  ;;  %v4726_v25 = vmax.f32 %v4044_v4, %v4074_v44  ;;  %v4727_v2 = vmax.f32 %v4047_v14, %v4077_v7  ;;  %v3012_v7 = vld [vmem:[%s3395_s8 + $0x1a0] sm:$0xff] }
 0x40d   : > { %v4231_v51 = vadd.f32 %v4202_v52, %v4180_v47  ;;  %v4235_v62 = vadd.f32 %v4205_v26, %v4183_v46  ;;  %v1420_v1 = vrot.slane %v1419_v28, 4  ;;  %v1429_v32 = vrot.slane %v1428_v12, 4 }
 0x40e   : > { %v1597_v18 = vmax.f32 %v4726_v25, %v4186_v5  ;;  %v1606_v39 = vmax.f32 %v4727_v2, %v4189_v55  ;;  %v1581_v63 = vrot.slane %v1580_v23, 4  ;;  %v1590_v27 = vrot.slane %v1589_v16, 4  ;;  %v3011_v25 = vld [vmem:[%s3395_s8 + $0x178] sm:$0xff]  ;;  %v3013_v55 = vld [vmem:[%s3395_s8 + $0x1a8] sm:$0xff] }
 0x40f   : > { %v4238_v44 = vmul.f32 %v3010_v35, %v1242_v41  ;;  %v4241_v5 = vmul.f32 %v3011_v25, %v1242_v41  ;;  %v4244_v2 = vmul.f32 %v3012_v7, %v1257_v15  ;;  %v4247_v14 = vmul.f32 %v3013_v55, %v1257_v15 }
 0x410   : > { %v1421_v4 = vadd.f32 %v1420_v1, %v1419_v28  ;;  %v1430_v48 = vadd.f32 %v1429_v32, %v1428_v12  ;;  %v1582_v54 = vmax.f32 %v1580_v23, %v1581_v63  ;;  %v1591_v60 = vmax.f32 %v1589_v16, %v1590_v27 }
 0x411   : > { %4728 = vst [vmem:[#allocation60_spill] sm:$0xff] %v4238_v44  ;;  %4729 = vst [vmem:[#allocation61_spill] sm:$0xff] %v4241_v5  ;;  %v1437_v22 = vadd.f32 %v1436_v40, %v4238_v44  ;;  %v1446_v21 = vadd.f32 %v1445_v33, %v4241_v5  ;;  %v1598_v35 = vmax.f32 %v1597_v18, %v4238_v44 }
 0x412   : > { %v1607_v30 = vmax.f32 %v1606_v39, %v4241_v5  ;;  %v1422_v41 = vrot.slane %v1421_v4, 2  ;;  %v1431_v25 = vrot.slane %v1430_v48, 2  ;;  %v1583_v34 = vrot.slane %v1582_v54, 2 }
 0x413   : > { %v1592_v7 = vrot.slane %v1591_v60, 2  ;;  %v1438_v38 = vrot.slane %v1437_v22, 4  ;;  %v1447_v29 = vrot.slane %v1446_v21, 4  ;;  %v1599_v55 = vrot.slane %v1598_v35, 4 }
 0x414   : > { %v1608_v15 = vrot.slane %v1607_v30, 4  ;;  %v1423_v28 = vadd.f32 %v1422_v41, %v1421_v4  ;;  %v1432_v12 = vadd.f32 %v1431_v25, %v1430_v48  ;;  %v1584_v23 = vmax.f32 %v1582_v54, %v1583_v34  ;;  %v1276_v41 = vpop.permute.xlu1 %1275 }
 0x415   : > { %v1593_v16 = vmax.f32 %v1591_v60, %v1592_v7  ;;  %v1439_v1 = vadd.f32 %v1438_v38, %v1437_v22  ;;  %v1448_v40 = vadd.f32 %v1447_v29, %v1446_v21  ;;  %v1600_v32 = vmax.f32 %v1598_v35, %v1599_v55  ;;  %v1261_v60 = vpop.permute.xlu0 %1260 }
 0x416   : > { %v1609_v33 = vmax.f32 %v1607_v30, %v1608_v15  ;;  %v1424_v63 = vrot.slane %v1423_v28, 1  ;;  %v1433_v18 = vrot.slane %v1432_v12, 1  ;;  %v1585_v27 = vrot.slane %v1584_v23, 1 }
 0x417   : > { %v1594_v39 = vrot.slane %v1593_v16, 1  ;;  %v1440_v5 = vrot.slane %v1439_v1, 2  ;;  %v1449_v44 = vrot.slane %v1448_v40, 2  ;;  %v1601_v24 = vrot.slane %v1600_v32, 2 }
 0x418   : > { %v1610_v20 = vrot.slane %v1609_v33, 2  ;;  %v1425_v58 = vadd.f32 %v1424_v63, %v1423_v28  ;;  %v1434_v53 = vadd.f32 %v1433_v18, %v1432_v12  ;;  %v1632_v4 = vmax.f32 %v4180_v47, %v4202_v52 }
 0x419   : > { %v1641_v34 = vmax.f32 %v4183_v46, %v4205_v26  ;;  %v1441_v22 = vadd.f32 %v1440_v5, %v1439_v1  ;;  %v1450_v21 = vadd.f32 %v1449_v44, %v1448_v40  ;;  %v1602_v30 = vmax.f32 %v1600_v32, %v1601_v24 }
 0x41a   : > { %v1611_v29 = vmax.f32 %v1609_v33, %v1610_v20  ;;  %v4257_v54 = vmax.f32 %v1584_v23, %v1585_v27  ;;  %v4259_v38 = vmax.f32 %v1593_v16, %v1594_v39  ;;  %v1454_v48 = vadd.f32 %v4169_v42, %v4244_v2  ;;  %v3014_v42 = vld [vmem:[%s3395_s8 + $0x1b0] sm:$0xff] }
 0x41b   : > { %v1463_v35 = vadd.f32 %v4173_v43, %v4247_v14  ;;  %v1442_v25 = vrot.slane %v1441_v22, 1  ;;  %v1451_v7 = vrot.slane %v1450_v21, 1  ;;  %v1603_v5 = vrot.slane %v1602_v30, 1  ;;  %v3015_v43 = vld [vmem:[%s3395_s8 + $0x1b8] sm:$0xff] }
 0x41c   : > { %v1612_v55 = vrot.slane %v1611_v29, 1  ;;  %v4730_v20 = vmax.f32 %v4108_v19, %v4152_v10  ;;  %v4731_v44 = vmax.f32 %v4111_v11, %v4165_v45  ;;  %v4274_v28 = vmul.f32 %v3014_v42, %v1261_v60 }
 0x41d   : > { %v4277_v12 = vmul.f32 %v3015_v43, %v1261_v60  ;;  %v4279_v23 = vmul.f32 0.03125, %v1425_v58  ;;  %v4281_v16 = vmul.f32 0.03125, %v1434_v53  ;;  %v1443_v1 = vadd.f32 %v1442_v25, %v1441_v22  ;;  %v3016_v60 = vld [vmem:[%s3395_s8 + $0x1e0] sm:$0xff]  ;;  %v3017_v58 = vld [vmem:[%s3395_s8 + $0x1e8] sm:$0xff]  ;;  %v1280_v25 = vpop.permute.xlu1 %1279  ;;  %v3018_v43 = vld [vmem:[%s3395_s8 + $0x1f0] sm:$0xff] }
 0x41e   : > { %v1615_v24 = vmax.f32 %v4730_v20, %v4244_v2  ;;  %v1624_v15 = vmax.f32 %v4731_v44, %v4247_v14  ;;  %v1452_v40 = vadd.f32 %v1451_v7, %v1450_v21  ;;  %v1455_v32 = vadd.f32 %v1454_v48, %v4274_v28 }
 0x41f   : > { %4732 = vst [vmem:[#allocation62_spill] sm:$0xff] %v4277_v12  ;;  %v1464_v33 = vadd.f32 %v1463_v35, %v4277_v12  ;;  %v4287_v27 = vmax.f32 %v1602_v30, %v1603_v5  ;;  %v4289_v39 = vmax.f32 %v1611_v29, %v1612_v55  ;;  %v4292_v20 = vmul.f32 %v3016_v60, %v1276_v41 }
 0x420   : > { %v1616_v63 = vmax.f32 %v1615_v24, %v4274_v28  ;;  %v1625_v18 = vmax.f32 %v1624_v15, %v4277_v12  ;;  %v4295_v53 = vmul.f32 %v3017_v58, %v1276_v41  ;;  %v1456_v22 = vrot.slane %v1455_v32, 4 }
 0x421   : > { %4733 = vst [vmem:[#allocation63_spill] sm:$0xff] %v4292_v20  ;;  %v1465_v21 = vrot.slane %v1464_v33, 4  ;;  %v4297_v7 = vmul.f32 0.03125, %v1443_v1  ;;  %v4299_v24 = vmul.f32 0.03125, %v1452_v40  ;;  %v1472_v30 = vadd.f32 %v4231_v51, %v4292_v20  ;;  %v3019_v1 = vld [vmem:[%s3395_s8 + $0x1f8] sm:$0xff] }
 0x422   : > { %4734 = vst [vmem:[#allocation64_spill] sm:$0xff] %v4295_v53  ;;  %v1617_v48 = vrot.slane %v1616_v63, 4  ;;  %v1626_v35 = vrot.slane %v1625_v18, 4  ;;  %v1481_v29 = vadd.f32 %v4235_v62, %v4295_v53  ;;  %v1457_v5 = vadd.f32 %v1456_v22, %v1455_v32 }
 0x423   : > { %v1466_v41 = vadd.f32 %v1465_v21, %v1464_v33  ;;  %v1633_v15 = vmax.f32 %v1632_v4, %v4292_v20  ;;  %v1642_v42 = vmax.f32 %v1641_v34, %v4295_v53  ;;  %v4308_v60 = vmul.f32 %v3018_v43, %v1280_v25 }
 0x424   : > { %v1618_v55 = vmax.f32 %v1616_v63, %v1617_v48  ;;  %v1627_v44 = vmax.f32 %v1625_v18, %v1626_v35  ;;  %v4311_v40 = vmul.f32 %v3019_v1, %v1280_v25  ;;  %v1458_v58 = vrot.slane %v1457_v5, 2 }
 0x425   : > { %v1467_v26 = vrot.slane %v1466_v41, 2  ;;  %v1473_v62 = vadd.f32 %v1472_v30, %v4308_v60  ;;  %v1634_v33 = vmax.f32 %v1633_v15, %v4308_v60 }
 0x426   : > { %v1619_v51 = vrot.slane %v1618_v55, 2  ;;  %v1628_v52 = vrot.slane %v1627_v44, 2  ;;  %v1482_v32 = vadd.f32 %v1481_v29, %v4311_v40  ;;  %v1643_v4 = vmax.f32 %v1642_v42, %v4311_v40 }
 0x427   : > { %v1459_v63 = vadd.f32 %v1458_v58, %v1457_v5  ;;  %v1468_v34 = vadd.f32 %v1467_v26, %v1466_v41  ;;  %v1474_v21 = vrot.slane %v1473_v62, 4  ;;  %v1635_v35 = vrot.slane %v1634_v33, 4 }
 0x428   : > { %v1620_v18 = vmax.f32 %v1618_v55, %v1619_v51  ;;  %v1629_v22 = vmax.f32 %v1627_v44, %v1628_v52  ;;  %v1483_v48 = vrot.slane %v1482_v32, 4  ;;  %v1644_v25 = vrot.slane %v1643_v4, 4 }
 0x429   : > { %v1460_v43 = vrot.slane %v1459_v63, 1  ;;  %v1469_v1 = vrot.slane %v1468_v34, 1  ;;  %v1475_v46 = vadd.f32 %v1474_v21, %v1473_v62  ;;  %v1636_v47 = vmax.f32 %v1634_v33, %v1635_v35 }
 0x42a   : > { %v1621_v53 = vrot.slane %v1620_v18, 1  ;;  %v1630_v20 = vrot.slane %v1629_v22, 1  ;;  %v1484_v30 = vadd.f32 %v1483_v48, %v1482_v32  ;;  %v1645_v29 = vmax.f32 %v1643_v4, %v1644_v25 }
 0x42b   : > { %v1461_v12 = vadd.f32 %v1460_v43, %v1459_v63  ;;  %v1470_v15 = vadd.f32 %v1469_v1, %v1468_v34  ;;  %v1706_v26 = vsel %vm732_vm4, %v4145_v17, %v4089_v61  ;;  %v1700_v52 = vsel %vm734_vm5, %v4197_v37, %v4162_v56 }
 0x42c   : > { %v1476_v5 = vrot.slane %v1475_v46, 2  ;;  %v1485_v41 = vrot.slane %v1484_v30, 2  ;;  %v1637_v55 = vrot.slane %v1636_v47, 2  ;;  %v1646_v44 = vrot.slane %v1645_v29, 2 }
 0x42d   : > { %v1622_v42 = vmax.f32 %v1620_v18, %v1621_v53  ;;  %v1631_v58 = vmax.f32 %v1629_v22, %v1630_v20  ;;  %v1707_v51 = vsel %vm734_vm5, %v4199_v59, %v1706_v26  ;;  %v1701_v62 = vsel %vm736_vm6, %v4257_v54, %v1700_v52 }
 0x42e   : > { %v1477_v32 = vadd.f32 %v1476_v5, %v1475_v46  ;;  %v1486_v33 = vadd.f32 %v1485_v41, %v1484_v30  ;;  %v1638_v4 = vmax.f32 %v1636_v47, %v1637_v55  ;;  %v1647_v61 = vmax.f32 %v1645_v29, %v1646_v44 }
 0x42f   : > { %v1502_v17 = vmul.f32 0.03125, %v1461_v12  ;;  %v1708_v56 = vsel %vm736_vm6, %v4259_v38, %v1707_v51  ;;  %v1702_v37 = vsel %vm738_vm7, %v4287_v27, %v1701_v62  ;;  %v1503_v63 = vmul.f32 0.03125, %v1470_v15 }
 0x430   : > { %v1478_v53 = vrot.slane %v1477_v32, 1  ;;  %v1487_v20 = vrot.slane %v1486_v33, 1  ;;  %v1639_v34 = vrot.slane %v1638_v4, 1  ;;  %v1648_v18 = vrot.slane %v1647_v61, 1 }
 0x431   : > { %v1709_v59 = vsel %vm738_vm7, %v4289_v39, %v1708_v56  ;;  %v1703_v46 = vsel %vm740_vm8, %v1622_v42, %v1702_v37  ;;  %v1674_v47 = vsel %vm732_vm4, %v4154_v13, %v4083_v50  ;;  %v1668_v54 = vsel %vm734_vm5, %v4207_v0, %v4158_v57 }
 0x432   : > { %v1479_v38 = vadd.f32 %v1478_v53, %v1477_v32  ;;  %v1640_v12 = vmax.f32 %v1638_v4, %v1639_v34  ;;  %v1649_v27 = vmax.f32 %v1647_v61, %v1648_v18  ;;  %v1675_v22 = vsel %vm734_vm5, %v4209_v31, %v1674_v47 }
 0x433   : > { %v1710_v21 = vsel %vm740_vm8, %v1631_v58, %v1709_v59  ;;  %v1488_v48 = vadd.f32 %v1487_v20, %v1486_v33  ;;  %v1676_v39 = vsel %vm736_vm6, %v4281_v16, %v1675_v22  ;;  %v1669_v35 = vsel %vm736_vm6, %v4279_v23, %v1668_v54 }
 0x434   : > { %v1504_v50 = vmul.f32 0.03125, %v1479_v38  ;;  %v1711_v13 = vsel %vm742_vm9, %v1649_v27, %v1710_v21  ;;  %v1704_v57 = vsel %vm742_vm9, %v1640_v12, %v1703_v46  ;;  %v1670_v0 = vsel %vm738_vm7, %v4297_v7, %v1669_v35 }
 0x435   : > { %v1717_v25 = vpack.c.bf16 %v1711_v13, %v1711_v13  ;;  %v1716_v43 = vpack.c.bf16 %v1704_v57, %v1704_v57  ;;  %v1505_v31 = vmul.f32 0.03125, %v1488_v48  ;;  %v1677_v1 = vsel %vm738_vm7, %v4299_v24, %v1676_v39 }
 0x436   : > { %v1678_v30 = vsel %vm740_vm8, %v1503_v63, %v1677_v1  ;;  %v1671_v16 = vsel %vm740_vm8, %v1502_v17, %v1670_v0  ;;  %v1783_v5 = vstv %s1782_s22  ;;  %v3185_v53 = vmov 1966171168  }
 0x437   : > { %2177 = vmatprep.mubr.bf16.mxu0 %v1717_v25  ;;  %v1679_v23 = vsel %vm742_vm9, %v1505_v31, %v1678_v30  ;;  %v1672_v29 = vsel %vm742_vm9, %v1504_v50, %v1671_v16  ;;  %v2203_v20 = vunpack.c.l.s4 %v3185_v53 }
 0x438   : > { %2178 = vmatmul.mubr.bf16.vlgmr.msra.gmra.mrb[4].mxu0 %v1716_v43  ;;  %v1715_v15 = vpack.c.bf16 %v1679_v23, %v1679_v23  ;;  %v1714_v26 = vpack.c.bf16 %v1672_v29, %v1672_v29 }
 0x439   : > { %v2204_v34 = vunpack.c.0.s8 %v2203_v20 }
 0x43a   : > { %2136 = vmatprep.mubr.bf16.mxu1 %v1715_v15 }
 0x43b   : > { %2137 = vmatmul.mubr.bf16.vlgmr.msra.gmra.mrb[4].mxu1 %v1714_v26  ;;  %v2207_v59 = vsub.s32 %v2204_v34, %v3669_v8  ;;  %v4744_v34 = vld [vmem:[#allocation24_spill] sm:$0xff] }
 0x50b   : > { %v2179_v7 = vpop.f32.mrb[4].mxu0 }
 0x50c   : > { %v2181_v52 = vpop.f32.mrb[5].mxu0 }
 0x50d   : > { %v2183_v41 = vpop.f32.mrb[6].mxu0 }
 0x50e   : > { %v2138_v24 = vpop.f32.mrb[4].mxu1  ;;  %v2184_v55 = vpop.f32.mrb[7].mxu0 }
 0x50f   : > { %v2139_v44 = vadd.f32 %v2138_v24, %v1783_v5  ;;  %v2140_v42 = vpop.f32.mrb[5].mxu1 }
 0x510   : > { %v2141_v58 = vadd.f32 %v2140_v42, %v1783_v5  ;;  %v2142_v51 = vpop.f32.mrb[6].mxu1 }
 0x511   : > { %v2180_v62 = vadd.f32 %v2179_v7, %v2139_v44  ;;  %v2143_v32 = vpop.f32.mrb[7].mxu1 }
 0x512   : > { %v2182_v33 = vadd.f32 %v2181_v52, %v2141_v58  ;;  %v4735_v58 = vld [vmem:[#allocation13_spill] sm:$0xff] }
 0x513   : > { %v2648_v4 = vmul.f32 -1.442695, %v2180_v62  ;;  %v4736_v62 = vld [vmem:[#allocation16_spill] sm:$0xff] }
 0x514   : > { %v2649_v61 = vmul.f32 -1.442695, %v2182_v33  ;;  %v4737_v33 = vld [vmem:[#allocation17_spill] sm:$0xff] }
 0x515   : > { %2948 = vpow2.f32 %v2648_v4 }
 0x516   : > { %2950 = vpow2.f32 %v2649_v61  ;;  %v4738_v61 = vld [vmem:[#allocation38_spill] sm:$0xff] }
 0x51f   : > { %v2949_v17 = vpop.eup %2948 }
 0x520   : > { %v2951_v56 = vpop.eup %2950  ;;  %v2192_v37 = vadd.f32 1.0, %v2949_v17 }
 0x521   : > { %v2193_v63 = vadd.f32 1.0, %v2951_v56  ;;  %v4739_v56 = vld [vmem:[#allocation39_spill] sm:$0xff] }
 0x522   : > { %2952 = vrcp.f32 %v2192_v37  ;;  %v4740_v37 = vld [vmem:[#allocation18_spill] sm:$0xff] }
 0x523   : > { %2954 = vrcp.f32 %v2193_v63 }
 0x52c   : > { %v2953_v18 = vpop.eup %2952 }
 0x52d   : > { %v2955_v46 = vpop.eup %2954 }
 0x52e   : > { %v2200_v47 = vcombine.low %v2953_v18, %v2955_v46  ;;  %v2201_v54 = vcombine.high %v2953_v18, %v2955_v46 }
 0x530   : > { %v2208_v38 = vrot.slane %v2200_v47, %v2207_v59  ;;  %v2215_v12 = vrot.slane %v2201_v54, %v2207_v59  ;;  %v4746_v47 = vld [vmem:[#allocation36_spill] sm:$0xff] }
 0x532   : > { %v2216_v27 = vcombine.high %v2208_v38, %v2208_v38  ;;  %v2217_v22 = vcombine.high %v2215_v12, %v2215_v12  ;;  %v2224_v21 = vrot.slane %v2208_v38, %v2207_v59  ;;  %v2231_v48 = vrot.slane %v2215_v12, %v2207_v59  ;;  %v4747_v38 = vld [vmem:[#allocation37_spill] sm:$0xff] }
 0x534   : > { %v2238_v39 = vrot.slane %v2216_v27, %v2207_v59  ;;  %v2245_v35 = vrot.slane %v2217_v22, %v2207_v59  ;;  %v2246_v50 = vcombine.high %v2224_v21, %v2224_v21  ;;  %v2247_v13 = vcombine.high %v2231_v48, %v2231_v48  ;;  %v4745_v59 = vld [vmem:[#allocation25_spill] sm:$0xff]  ;;  %v4748_v27 = vld [vmem:[#allocation20_spill] sm:$0xff] }
 0x535   : > { %v2253_v57 = vrot.slane %v2224_v21, %v3842_v49  ;;  %v2257_v0 = vrot.slane %v2224_v21, %v3849_v36  ;;  %v4361_v25 = vrot.slane %v2231_v48, %v3842_v49  ;;  %v4364_v8 = vrot.slane %v2231_v48, %v3849_v36  ;;  %v4749_v21 = vld [vmem:[#allocation21_spill] sm:$0xff] }
 0x536   : > { %v2248_v43 = vcombine.high %v2238_v39, %v2238_v39  ;;  %v2249_v31 = vcombine.high %v2245_v35, %v2245_v35  ;;  %v2261_v1 = vrot.slane %v2238_v39, %v3842_v49  ;;  %v2265_v30 = vrot.slane %v2238_v39, %v3849_v36  ;;  %v4750_v39 = vld [vmem:[#allocation22_spill] sm:$0xff] }
 0x537   : > { %v2269_v16 = vrot.slane %v2246_v50, %v3842_v49  ;;  %v2273_v23 = vrot.slane %v2246_v50, %v3849_v36  ;;  %v4371_v29 = vrot.slane %v2245_v35, %v3842_v49  ;;  %v4374_v15 = vrot.slane %v2245_v35, %v3849_v36  ;;  %v4751_v50 = vld [vmem:[#allocation23_spill] sm:$0xff] }
 0x538   : > { %v2277_v26 = vrot.slane %v2248_v43, %v3842_v49  ;;  %v2281_v7 = vrot.slane %v2248_v43, %v3849_v36  ;;  %v4379_v52 = vrot.slane %v2247_v13, %v3842_v49  ;;  %v4382_v5 = vrot.slane %v2247_v13, %v3849_v36  ;;  %v4753_v43 = vld [vmem:[#allocation27_spill] sm:$0xff] }
 0x539   : > { %v4385_v41 = vrot.slane %v2249_v31, %v3842_v49  ;;  %v4388_v24 = vrot.slane %v2249_v31, %v3849_v36  ;;  %v2330_v55 = vmul.f32 %v2253_v57, %v3872_v6  ;;  %v2331_v44 = vmul.f32 %v2257_v0, %v3875_v9  ;;  %v4741_v36 = vld [vmem:[#allocation19_spill] sm:$0xff] }
 0x53a   : > { %v2332_v42 = vmul.f32 %v2253_v57, %v3866_v3  ;;  %v2333_v51 = vmul.f32 %v2257_v0, %v4735_v58  ;;  %v2334_v32 = vmul.f32 %v2253_v57, %v4736_v62  ;;  %v2335_v4 = vmul.f32 %v2257_v0, %v4737_v33  ;;  %v4742_v3 = vld [vmem:[#allocation14_spill] sm:$0xff]  ;;  %v4743_v9 = vld [vmem:[#allocation15_spill] sm:$0xff] }
 0x53b   : > { %v2336_v17 = vmul.f32 %v2253_v57, %v4738_v61  ;;  %v2337_v49 = vmul.f32 %v2257_v0, %v4739_v56  ;;  %v2338_v63 = vmul.f32 %v2261_v1, %v4740_v37  ;;  %v2339_v53 = vmul.f32 %v2265_v30, %v4741_v36  ;;  %2394 = vst [vmem:[%s4402_s24] sm:$0xff] %v2330_v55  ;;  %v4752_v57 = vld [vmem:[#allocation26_spill] sm:$0xff]  ;;  %v4755_v55 = vld [vmem:[#allocation45_spill] sm:$0xff]  ;;  %v4761_v56 = vld [vmem:[#allocation43_spill] sm:$0xff] }
 0x53c   : > { %2395 = vst [vmem:[%s4402_s24 + $0x8] sm:$0xff] %v2331_v44  ;;  %v2340_v6 = vmul.f32 %v2261_v1, %v4742_v3  ;;  %v2341_v20 = vmul.f32 %v2265_v30, %v4743_v9  ;;  %v2342_v18 = vmul.f32 %v2261_v1, %v4744_v34  ;;  %v2343_v46 = vmul.f32 %v2265_v30, %v4745_v59 }
 0x53d   : > { %2396 = vst [vmem:[%s4402_s24 + $0x10] sm:$0xff] %v2332_v42  ;;  %2397 = vst [vmem:[%s4402_s24 + $0x18] sm:$0xff] %v2333_v51  ;;  %v2344_v54 = vmul.f32 %v2261_v1, %v4746_v47  ;;  %v2345_v12 = vmul.f32 %v2265_v30, %v4747_v38  ;;  %v2346_v22 = vmul.f32 %v2269_v16, %v4748_v27  ;;  %v4754_v1 = vld [vmem:[#allocation44_spill] sm:$0xff]  ;;  %v4757_v51 = vld [vmem:[#allocation29_spill] sm:$0xff] }
 0x53e   : > { %2398 = vst [vmem:[%s4402_s24 + $0x20] sm:$0xff] %v2334_v32  ;;  %2399 = vst [vmem:[%s4402_s24 + $0x28] sm:$0xff] %v2335_v4  ;;  %v2347_v48 = vmul.f32 %v2273_v23, %v4749_v21  ;;  %v2348_v35 = vmul.f32 %v2269_v16, %v4750_v39  ;;  %v2349_v13 = vmul.f32 %v2273_v23, %v4751_v50  ;;  %v4756_v42 = vld [vmem:[#allocation28_spill] sm:$0xff]  ;;  %v4758_v32 = vld [vmem:[#allocation30_spill] sm:$0xff] }
 0x53f   : > { %2400 = vst [vmem:[%s4402_s24 + $0x30] sm:$0xff] %v2336_v17  ;;  %2401 = vst [vmem:[%s4402_s24 + $0x38] sm:$0xff] %v2337_v49  ;;  %v2350_v0 = vmul.f32 %v2269_v16, %v4752_v57  ;;  %v2351_v31 = vmul.f32 %v2273_v23, %v4753_v43  ;;  %v2352_v30 = vmul.f32 %v2269_v16, %v4754_v1  ;;  %v4759_v4 = vld [vmem:[#allocation31_spill] sm:$0xff]  ;;  %v4760_v17 = vld [vmem:[#allocation42_spill] sm:$0xff] }
 0x540   : > { %2402 = vst [vmem:[%s4402_s24 + $0x40] sm:$0xff] %v2338_v63  ;;  %2403 = vst [vmem:[%s4402_s24 + $0x48] sm:$0xff] %v2339_v53  ;;  %v2353_v44 = vmul.f32 %v2273_v23, %v4755_v55  ;;  %v2354_v58 = vmul.f32 %v2277_v26, %v4756_v42  ;;  %v2355_v62 = vmul.f32 %v2281_v7, %v4757_v51  ;;  %v4762_v49 = vld [vmem:[#allocation50_spill] sm:$0xff]  ;;  %v4763_v63 = vld [vmem:[#allocation51_spill] sm:$0xff] }
 0x541   : > { %2404 = vst [vmem:[%s4402_s24 + $0x50] sm:$0xff] %v2340_v6  ;;  %2405 = vst [vmem:[%s4402_s24 + $0x58] sm:$0xff] %v2341_v20  ;;  %v2356_v33 = vmul.f32 %v2277_v26, %v4758_v32  ;;  %v2357_v61 = vmul.f32 %v2281_v7, %v4759_v4  ;;  %v2358_v16 = vmul.f32 %v2277_v26, %v4760_v17  ;;  %v4764_v53 = vld [vmem:[#allocation34_spill] sm:$0xff]  ;;  %v4765_v6 = vld [vmem:[#allocation35_spill] sm:$0xff] }
 0x542   : > { %2406 = vst [vmem:[%s4402_s24 + $0x60] sm:$0xff] %v2342_v18  ;;  %2407 = vst [vmem:[%s4402_s24 + $0x68] sm:$0xff] %v2343_v46  ;;  %v2359_v23 = vmul.f32 %v2281_v7, %v4761_v56  ;;  %v2360_v37 = vmul.f32 %v2277_v26, %v4762_v49  ;;  %v2361_v36 = vmul.f32 %v2281_v7, %v4763_v63  ;;  %v4766_v20 = vld [vmem:[#allocation32_spill] sm:$0xff]  ;;  %v4767_v26 = vld [vmem:[#allocation33_spill] sm:$0xff] }
 0x543   : > { %2408 = vst [vmem:[%s4402_s24 + $0x70] sm:$0xff] %v2344_v54  ;;  %2409 = vst [vmem:[%s4402_s24 + $0x78] sm:$0xff] %v2345_v12  ;;  %v2362_v3 = vmul.f32 %v4361_v25, %v4764_v53  ;;  %v2363_v9 = vmul.f32 %v4364_v8, %v4765_v6  ;;  %v2364_v34 = vmul.f32 %v4361_v25, %v4766_v20  ;;  %v4768_v18 = vld [vmem:[#allocation48_spill] sm:$0xff]  ;;  %v4769_v46 = vld [vmem:[#allocation49_spill] sm:$0xff] }
 0x544   : > { %2410 = vst [vmem:[%s4402_s24 + $0x80] sm:$0xff] %v2346_v22  ;;  %2411 = vst [vmem:[%s4402_s24 + $0x88] sm:$0xff] %v2347_v48  ;;  %v2365_v7 = vmul.f32 %v4364_v8, %v4767_v26  ;;  %v2366_v59 = vmul.f32 %v4361_v25, %v4768_v18  ;;  %v2367_v47 = vmul.f32 %v4364_v8, %v4769_v46  ;;  %v4770_v54 = vld [vmem:[#allocation56_spill] sm:$0xff]  ;;  %v4771_v12 = vld [vmem:[#allocation57_spill] sm:$0xff] }
 0x545   : > { %2412 = vst [vmem:[%s4402_s24 + $0x90] sm:$0xff] %v2348_v35  ;;  %2413 = vst [vmem:[%s4402_s24 + $0x98] sm:$0xff] %v2349_v13  ;;  %v2368_v38 = vmul.f32 %v4361_v25, %v4770_v54  ;;  %v2369_v27 = vmul.f32 %v4364_v8, %v4771_v12  ;;  %v4772_v22 = vld [vmem:[#allocation40_spill] sm:$0xff]  ;;  %v4773_v48 = vld [vmem:[#allocation41_spill] sm:$0xff]  ;;  %v2379_v42 = vmul.f32 %v4382_v5, %v4111_v11 }
 0x546   : > { %2414 = vst [vmem:[%s4402_s24 + $0xa0] sm:$0xff] %v2350_v0  ;;  %2415 = vst [vmem:[%s4402_s24 + $0xa8] sm:$0xff] %v2351_v31  ;;  %v2370_v21 = vmul.f32 %v4371_v29, %v4772_v22  ;;  %v2371_v39 = vmul.f32 %v4374_v15, %v4773_v48  ;;  %v4774_v35 = vld [vmem:[#allocation46_spill] sm:$0xff]  ;;  %v4775_v50 = vld [vmem:[#allocation47_spill] sm:$0xff]  ;;  %v2383_v11 = vmul.f32 %v4382_v5, %v4247_v14 }
 0x547   : > { %2416 = vst [vmem:[%s4402_s24 + $0xb0] sm:$0xff] %v2352_v30  ;;  %2417 = vst [vmem:[%s4402_s24 + $0xb8] sm:$0xff] %v2353_v44  ;;  %v2372_v25 = vmul.f32 %v4371_v29, %v4774_v35  ;;  %v2373_v8 = vmul.f32 %v4374_v15, %v4775_v50  ;;  %v4776_v13 = vld [vmem:[#allocation54_spill] sm:$0xff]  ;;  %v4777_v0 = vld [vmem:[#allocation55_spill] sm:$0xff]  ;;  %v2378_v44 = vmul.f32 %v4379_v52, %v4108_v19 }
 0x548   : > { %2418 = vst [vmem:[%s4402_s24 + $0xc0] sm:$0xff] %v2354_v58  ;;  %2419 = vst [vmem:[%s4402_s24 + $0xc8] sm:$0xff] %v2355_v62  ;;  %v2374_v57 = vmul.f32 %v4371_v29, %v4776_v13  ;;  %v2375_v43 = vmul.f32 %v4374_v15, %v4777_v0  ;;  %v4778_v31 = vld [vmem:[#allocation60_spill] sm:$0xff]  ;;  %v4779_v30 = vld [vmem:[#allocation61_spill] sm:$0xff]  ;;  %v2382_v19 = vmul.f32 %v4379_v52, %v4244_v2 }
 0x549   : > { %2420 = vst [vmem:[%s4402_s24 + $0xd0] sm:$0xff] %v2356_v33  ;;  %2421 = vst [vmem:[%s4402_s24 + $0xd8] sm:$0xff] %v2357_v61  ;;  %v2376_v1 = vmul.f32 %v4371_v29, %v4778_v31  ;;  %v2377_v55 = vmul.f32 %v4374_v15, %v4779_v30  ;;  %v2380_v29 = vmul.f32 %v4379_v52, %v4152_v10  ;;  %v4780_v58 = vld [vmem:[#allocation62_spill] sm:$0xff]  ;;  %v4781_v51 = vld [vmem:[#allocation52_spill] sm:$0xff] }
 0x54a   : > { %2422 = vst [vmem:[%s4402_s24 + $0xe0] sm:$0xff] %v2358_v16  ;;  %2423 = vst [vmem:[%s4402_s24 + $0xe8] sm:$0xff] %v2359_v23  ;;  %v2381_v15 = vmul.f32 %v4382_v5, %v4165_v45  ;;  %v2384_v10 = vmul.f32 %v4379_v52, %v4274_v28  ;;  %v2385_v45 = vmul.f32 %v4382_v5, %v4780_v58  ;;  %v4782_v62 = vld [vmem:[#allocation53_spill] sm:$0xff]  ;;  %v4783_v32 = vld [vmem:[#allocation58_spill] sm:$0xff] }
 0x54b   : > { %2424 = vst [vmem:[%s4402_s24 + $0xf0] sm:$0xff] %v2360_v37  ;;  %2425 = vst [vmem:[%s4402_s24 + $0xf8] sm:$0xff] %v2361_v36  ;;  %v2386_v2 = vmul.f32 %v4385_v41, %v4781_v51  ;;  %v2387_v14 = vmul.f32 %v4388_v24, %v4782_v62  ;;  %v2388_v28 = vmul.f32 %v4385_v41, %v4783_v32  ;;  %v4784_v52 = vld [vmem:[#allocation59_spill] sm:$0xff]  ;;  %v4786_v61 = vld [vmem:[#allocation64_spill] sm:$0xff] }
 0x54c   : > { %2426 = vst [vmem:[%s4402_s24 + $0x100] sm:$0xff] %v2362_v3  ;;  %2427 = vst [vmem:[%s4402_s24 + $0x108] sm:$0xff] %v2363_v9  ;;  %v2389_v5 = vmul.f32 %v4388_v24, %v4784_v52  ;;  %v4785_v33 = vld [vmem:[#allocation63_spill] sm:$0xff]  ;;  %v2391_v17 = vmul.f32 %v4388_v24, %v4786_v61  ;;  %v2392_v16 = vmul.f32 %v4385_v41, %v4308_v60 }
 0x54d   : > { %2428 = vst [vmem:[%s4402_s24 + $0x110] sm:$0xff] %v2364_v34  ;;  %2429 = vst [vmem:[%s4402_s24 + $0x118] sm:$0xff] %v2365_v7  ;;  %v2390_v4 = vmul.f32 %v4385_v41, %v4785_v33  ;;  %v2393_v56 = vmul.f32 %v4388_v24, %v4311_v40 }
 0x54e   : > { %2430 = vst [vmem:[%s4402_s24 + $0x120] sm:$0xff] %v2366_v59  ;;  %2431 = vst [vmem:[%s4402_s24 + $0x128] sm:$0xff] %v2367_v47 }
 0x54f   : > { %2432 = vst [vmem:[%s4402_s24 + $0x130] sm:$0xff] %v2368_v38  ;;  %2433 = vst [vmem:[%s4402_s24 + $0x138] sm:$0xff] %v2369_v27 }
 0x550   : > { %2434 = vst [vmem:[%s4402_s24 + $0x140] sm:$0xff] %v2370_v21  ;;  %2435 = vst [vmem:[%s4402_s24 + $0x148] sm:$0xff] %v2371_v39 }
 0x551   : > { %2436 = vst [vmem:[%s4402_s24 + $0x150] sm:$0xff] %v2372_v25  ;;  %2437 = vst [vmem:[%s4402_s24 + $0x158] sm:$0xff] %v2373_v8 }
 0x552   : > { %2438 = vst [vmem:[%s4402_s24 + $0x160] sm:$0xff] %v2374_v57  ;;  %2439 = vst [vmem:[%s4402_s24 + $0x168] sm:$0xff] %v2375_v43 }
 0x553   : > { %2440 = vst [vmem:[%s4402_s24 + $0x170] sm:$0xff] %v2376_v1  ;;  %2441 = vst [vmem:[%s4402_s24 + $0x178] sm:$0xff] %v2377_v55 }
 0x554   : > { %2442 = vst [vmem:[%s4402_s24 + $0x180] sm:$0xff] %v2378_v44  ;;  %2443 = vst [vmem:[%s4402_s24 + $0x188] sm:$0xff] %v2379_v42 }
 0x555   : > { %2444 = vst [vmem:[%s4402_s24 + $0x190] sm:$0xff] %v2380_v29  ;;  %2445 = vst [vmem:[%s4402_s24 + $0x198] sm:$0xff] %v2381_v15 }
 0x556   : > { %2446 = vst [vmem:[%s4402_s24 + $0x1a0] sm:$0xff] %v2382_v19  ;;  %2447 = vst [vmem:[%s4402_s24 + $0x1a8] sm:$0xff] %v2383_v11 }
 0x557   : > { %2448 = vst [vmem:[%s4402_s24 + $0x1b0] sm:$0xff] %v2384_v10  ;;  %2449 = vst [vmem:[%s4402_s24 + $0x1b8] sm:$0xff] %v2385_v45 }
 0x558   : > { %2450 = vst [vmem:[%s4402_s24 + $0x1c0] sm:$0xff] %v2386_v2  ;;  %2451 = vst [vmem:[%s4402_s24 + $0x1c8] sm:$0xff] %v2387_v14 }
 0x559   : > { %2452 = vst [vmem:[%s4402_s24 + $0x1d0] sm:$0xff] %v2388_v28  ;;  %2453 = vst [vmem:[%s4402_s24 + $0x1d8] sm:$0xff] %v2389_v5 }
 0x55a   : > { %2454 = vst [vmem:[%s4402_s24 + $0x1e0] sm:$0xff] %v2390_v4  ;;  %2455 = vst [vmem:[%s4402_s24 + $0x1e8] sm:$0xff] %v2391_v17 }
 0x55b   : > { %2456 = vst [vmem:[%s4402_s24 + $0x1f0] sm:$0xff] %v2392_v16  ;;  %2457 = vst [vmem:[%s4402_s24 + $0x1f8] sm:$0xff] %v2393_v56 }
 0x55c   : > { %3119 = shalt.err (!%p3116_p2)
}
 0x55d   : > { %s3120_s12 = scalar_lea.hbm %s4545_s5, 8192  ;;  %s3124_s26 = scalar_lea.hbm %s4609_s4, 16384 }
 0x55e   : > { %p3121_p13 = scmp.ne.s32.totalorder %s4545_s5, %s3120_s12  ;;  %p3125_p4 = scmp.lt.u32.totalorder %s4545_s5, %s4609_s4 }
 0x55f   : > { %p3126_p5 = scmp.lt.u32.totalorder %s3124_s26, %s3120_s12  ;;  %p3128_p11 = scmp.lt.u32.totalorder %s3120_s12, %s4545_s5 }
 0x560   : > { %p3122_p6 = pnand %p3121_p13, %p4787_p0 }
 0x561   : > { %p3127_p8 = por %p3126_p5, %p3125_p4 }
 0x562   : > { %p3123_p10 = pneg %p3122_p6 }
 0x563   : > { %p3129_p1 = por %p3128_p11, %p3127_p8 }
 0x565   : > { %p3130_p3 = pnand %p3129_p1, %p3123_p10 }
 0x567   : > { %3133 = shalt.err (!%p3130_p3)
}
 0x568   : > { %s3187_s22 = smov 256   ;;  %s3188_s24 = smov 16  }
 0x569   : > { %2784 = dma.vmem_to_hbm [thread:$0]  (%p4787_p0), %s4547_s28, 8192, %s4545_s5, %s2459_s27, %s3187_s22, %s3187_s22, %s3188_s24  }
 0x56a PF: > { %s2488_s21 = sand.u32 1, %s3164_s17   ;;  %p4788_p7 = scmp.ne.s32.totalorder %s4666_s23, 0 }
 0x56b   : > { %p4789_p9 = scmp.ge.s32.totalorder %s3176_s20, 2  ;;  %s2489_s3 = scalar_lea.sflag [#allocation5], %s2488_s21 }
 0x56d   : > { %p2798_p12 = pnand %p4789_p9, %p4788_p7 }
 0x56f   : > { %3159 = dma.done.wait (!%p2798_p12), %s2489_s3, 8192  }
 0x570   : > { %3161 = vsyncadd (!%p2798_p12), %s2489_s3, 4294959104  ;;  %p19_p2 = scmp.ge.s32.totalorder %s3327_s9, 4   ;;  %s4790_s17 = smov %s3168_s18 }
 0x571   : > { %s4791_s18 = smov %s3172_s19  ;;  %s4792_s19 = smov %s3343_s14 }
 0x572   : > { %s4793_s20 = smov %s3327_s9  ;;  %21 = sbr.rel (!%p19_p2) target bundleno = 8 (0x8), region = 89 }
 0x579   :  { %2494 = vsyncpa [#allocation4], 1 }
 0x57a   :  { %2496 = vsyncpa [#allocation4 + $0x1], 1 }
 0x57b   :  { %2497 = vsyncpa [#allocation7], 1 }
 0x57c   :  { %2498 = vsyncpa [#allocation5], 1 }
 0x57d   :  { %2500 = vsyncpa [#allocation5 + $0x1], 1 }

// kernel: tpu_custom_call.1
= control target key start
LH: loop header
LB: loop body
LE: loop exit
PB: predicated region body
PF: predicated region fallthrough
CT: control target
= control target key end

     0   :  { %s4605_s0 = inlined_call_operand.hbm [shape: f32[16,32,256], index: 0, kind: input, shape index: {}]   ;;  %s4606_s1 = inlined_call_operand.hbm [shape: f32[176,128], index: 1, kind: input, shape index: {}]   ;;  %s4607_s2 = inlined_call_operand.hbm [shape: bf16[512,256], index: 2, kind: input, shape index: {}]   ;;  %s4608_s3 = inlined_call_operand.<no memory space> [shape: f32[1], index: 3, kind: input, shape index: {}]   ;;  %s4609_s4 = inlined_call_operand.hbm [shape: f32[16,32,256], index: 4, kind: output, shape index: {}]  }
   0x1   :  { %9 = sst [smem:[#allocation2]] %s4608_s3 }
   0x2   :  { %10 = vsyncpa [#allocation4], 0 }
   0x3   :  { %12 = vsyncpa [#allocation4 + $0x1], 0 }
   0x4   :  { %13 = vsyncpa [#allocation7], 0 }
   0x5   :  { %14 = vsyncpa [#allocation5], 0 }
   0x6   :  { %16 = vsyncpa [#allocation5 + $0x1], 0  ;;  %s3217_s17 = smov 0   ;;  %s3219_s18 = smov 0  }
   0x7   :  { %s3221_s19 = smov 0   ;;  %s3223_s20 = smov 0  }
   0x8 LB: > { %s3238_s3 = sadd.s32 4294967295, %s3176_s20   ;;  %s2565_s21 = sadd.s32 4294967294, %s3176_s20   ;;  %s3176_s20 = sphi %s3223_s20, %s4793_s20   ;;  %s3172_s19 = sphi %s3221_s19, %s4792_s19   ;;  %s3168_s18 = sphi %s3219_s18, %s4791_s18   ;;  %s3164_s17 = sphi %s3217_s17, %s4790_s17  }
   0x9   : > { %p42_p0 = scmp.ne.s32.totalorder %s3168_s18, %s3164_s17  ;;  %p4610_p1 = scmp.eq.s32.totalorder %s3238_s3, 0 }
   0xa   : > { %p135_p3 = scmp.eq.s32.totalorder %s2565_s21, 1  ;;  %p2566_p5 = scmp.ge.s32.totalorder %s3176_s20, 1 }
   0xb   : > { %p3247_p4 = por %p4610_p1, %p42_p0  ;;  %p142_p7 = scmp.lt.s32.totalorder %s3176_s20, 3 }
   0xc   : > { %p3252_p6 = por %p135_p3, %p42_p0  ;;  %s3178_s25 = smov [#allocation6]  }
   0xd   : > { %s4665_s22 = scalar_select %p3247_p4, 1, 0 }
   0xe   : > { %s4666_s23 = scalar_select %p3252_p6, 1, 0 }
   0xf   : > { %p3257_p8 = pnand %p2566_p5, %p142_p7  ;;  %s154_s26 = sshll.u32 %s3178_s25, 4  ;;  %s3261_s26 = int_to_ptr.vmem [resolvable:$true] %s154_s26 }
  0x10   : > { %s3179_s28 = smov [#allocation8]   ;;  %s3020_s6 = scalar_lea.hbm %s4606_s1, 2816 }
  0x11   : > { %p2786_p9 = pneg %p3257_p8  ;;  %s167_s29 = sshll.u32 %s3179_s28, 4  ;;  %s3272_s29 = int_to_ptr.vmem [resolvable:$true] %s167_s29 }
  0x12   : > { %p3021_p12 = scmp.ne.s32.totalorder %s4606_s1, %s3020_s6  ;;  %p3027_p5 = scmp.lt.u32.totalorder %s3020_s6, %s4606_s1 }
  0x13   : > { %p3268_p11 = pnand %p2786_p9, %p4610_p1 }
  0x15   : > { %p3022_p13 = pneg %p3268_p11 }
  0x17   : > { %p3023_p0 = pnand %p3022_p13, %p3021_p12 }
  0x19   : > { %p3024_p3 = pneg %p3023_p0 }
  0x1b   : > { %p3029_p7 = pnand %p3027_p5, %p3024_p3 }
  0x1d   : > { %3032 = shalt.err (!%p3029_p7)
}
  0x1e   : > { %s3033_s11 = scalar_lea.vmem %s3261_s26, 2816  ;;  %p3041_p2 = scmp.lt.s32.totalorder %s3261_s26, %s3261_s26 }
  0x1f   : > { %p3034_p9 = scmp.ne.s32.totalorder %s3261_s26, %s3033_s11  ;;  %p3042_p12 = scmp.lt.s32.totalorder %s3033_s11, %s3033_s11 }
  0x21   : > { %p3036_p10 = pnand %p3034_p9, %p3022_p13  ;;  %p3043_p0 = por %p3042_p12, %p3041_p2 }
  0x23   : > { %p3037_p1 = pneg %p3036_p10 }
  0x25   : > { %p3044_p6 = pnand %p3043_p0, %p3037_p1 }
  0x27   : > { %3047 = shalt.err (!%p3044_p6)
}
  0x28   : > { %s3180_s12 = smov 128   ;;  %s3181_s13 = smov 8  }
  0x29   : > { %2789 = dma.hbm_to_vmem [thread:$0]  (!%p3268_p11), %s4606_s1, 2816, %s3261_s26, [#allocation7], %s3180_s12, %s3180_s12, %s3181_s13  }
  0x2a   : > { %s3048_s25 = scalar_lea.hbm %s4607_s2, 8192 }
  0x2b   : > { %p3049_p2 = scmp.ne.s32.totalorder %s4607_s2, %s3048_s25  ;;  %p3055_p10 = scmp.lt.u32.totalorder %s3048_s25, %s4607_s2 }
  0x2d   : > { %p3051_p1 = pnand %p3049_p2, %p3022_p13 }
  0x2f   : > { %p3052_p6 = pneg %p3051_p1 }
  0x31   : > { %p3057_p3 = pnand %p3055_p10, %p3052_p6 }
  0x33   : > { %3060 = shalt.err (!%p3057_p3)
}
  0x34   : > { %s3061_s26 = scalar_lea.vmem %s3272_s29, 8192  ;;  %p3069_p12 = scmp.lt.s32.totalorder %s3272_s29, %s3272_s29 }
  0x35   : > { %p3062_p5 = scmp.ne.s32.totalorder %s3272_s29, %s3061_s26  ;;  %p3070_p0 = scmp.lt.s32.totalorder %s3061_s26, %s3061_s26 }
  0x37   : > { %p3064_p7 = pnand %p3062_p5, %p3022_p13  ;;  %p3071_p2 = por %p3070_p0, %p3069_p12 }
  0x39   : > { %p3065_p9 = pneg %p3064_p7 }
  0x3b   : > { %p3072_p1 = pnand %p3071_p2, %p3065_p9 }
  0x3d   : > { %3075 = shalt.err (!%p3072_p1)
}
  0x3e   : > { %2792 = dma.hbm_to_vmem [thread:$0]  (!%p3268_p11), %s4607_s2, 8192, %s3272_s29, [#allocation7], %s3180_s12, %s3180_s12, %s3181_s13  }
  0x3f   : > { %s3327_s9 = sadd.s32 1, %s3176_s20   ;;  %s29_s27 = sadd.s32 1, %s3172_s19 }
  0x40   : > { %s26_s10 = ssub.s32 %s3176_s20, %s3327_s9  ;;  %p36_p13 = scmp.ne.s32.totalorder %s3172_s19, %s3168_s18 }
  0x41   : > { %p27_p6 = scmp.eq.s32.totalorder %s26_s10, 0  ;;  %p37_p10 = scmp.eq.s32.totalorder %s3176_s20, 0 }
  0x42   : > { %p4669_p3 = scmp.eq.s32.totalorder %s3238_s3, 1  ;;  %p2803_p7 = scmp.lt.s32.totalorder %s3176_s20, 2 }
  0x43   : > { %s3343_s14 = scalar_select %p27_p6, %s3172_s19, %s29_s27  }
  0x44   : > { %p3337_p5 = por %p4669_p3, %p36_p13  ;;  %p38_p9 = por %p37_p10, %p36_p13 }
  0x45   : > { %s184_s15 = sand.u32 1, %s3172_s19   ;;  %s2657_s29 = sshll.u32 %s3176_s20, 13 }
  0x46   : > { %s4670_s11 = scalar_select %p3337_p5, 1, 0 }
  0x47   : > { %s2570_s16 = sshll.u32 %s184_s15, 9  ;;  %s3350_s21 = scalar_lea.hbm %s4605_s0, %s2657_s29 }
  0x48   : > { %s188_s25 = scalar_lea.vmem [#allocation3], %s2570_s16  ;;  %p3354_p11 = pnand %p2803_p7, %p38_p9 }
  0x49   : > { %s196_s28 = sshll.u32 %s188_s25, 4  ;;  %s3358_s5 = scalar_lea.sflag [#allocation4], %s184_s15  ;;  %s3352_s28 = int_to_ptr.vmem [resolvable:$true] %s196_s28 }
  0x4a   : > { %s3076_s6 = scalar_lea.hbm %s3350_s21, 8192  ;;  %p3078_p0 = pneg %p3354_p11 }
  0x4b   : > { %p3077_p12 = scmp.ne.s32.totalorder %s3350_s21, %s3076_s6  ;;  %s3081_s8 = scalar_lea.hbm %s4605_s0, 16384 }
  0x4c   : > { %p3082_p13 = scmp.lt.u32.totalorder %s3350_s21, %s4605_s0  ;;  %p3083_p6 = scmp.lt.u32.totalorder %s3081_s8, %s3076_s6 }
  0x4d   : > { %p3079_p2 = pnand %p3078_p0, %p3077_p12  ;;  %p3085_p3 = scmp.lt.u32.totalorder %s3076_s6, %s3350_s21 }
  0x4e   : > { %p3084_p10 = por %p3083_p6, %p3082_p13 }
  0x4f   : > { %p3080_p1 = pneg %p3079_p2 }
  0x50   : > { %p3086_p7 = por %p3085_p3, %p3084_p10 }
  0x52   : > { %p3087_p9 = pnand %p3086_p7, %p3080_p1 }
  0x54   : > { %3090 = shalt.err (!%p3087_p9)
}
  0x55   : > { %s3091_s15 = scalar_lea.vmem %s3352_s28, 8192  ;;  %s3182_s16 = smov [#allocation3]  }
  0x56   : > { %p3092_p12 = scmp.ne.s32.totalorder %s3352_s28, %s3091_s15  ;;  %s3096_s29 = sshll.u32 %s3182_s16, 4  ;;  %s3097_s29 = int_to_ptr.vmem [resolvable:$false] %s3096_s29 }
  0x57   : > { %s3098_s12 = scalar_lea.vmem %s3097_s29, 16384  ;;  %p3099_p4 = scmp.lt.s32.totalorder %s3352_s28, %s3097_s29 }
  0x58   : > { %p3094_p2 = pnand %p3092_p12, %p3078_p0  ;;  %p3100_p13 = scmp.lt.s32.totalorder %s3098_s12, %s3091_s15 }
  0x5a   : > { %p3095_p5 = pneg %p3094_p2  ;;  %p3101_p6 = por %p3100_p13, %p3099_p4 }
  0x5c   : > { %p3102_p10 = pnand %p3101_p6, %p3095_p5 }
  0x5e   : > { %3105 = shalt.err (!%p3102_p10)
}
  0x5f   : > { %s3183_s13 = smov 256   ;;  %s3184_s25 = smov 16  }
  0x60   : > { %2796 = dma.hbm_to_vmem [thread:$0]  (!%p3354_p11), %s3350_s21, 8192, %s3352_s28, %s3358_s5, %s3183_s13, %s3183_s13, %s3184_s25  }
  0x61   : > { %208 = sbr.rel (%p3257_p8) target bundleno = 1386 (0x56a), region = 36 }
  0x68   : > { %s3389_s6 = sand.u32 1, %s3168_s18   ;;  %p4672_p4 = scmp.ne.s32.totalorder %s4665_s22, 0 }
  0x69   : > { %s2575_s26 = sshll.u32 %s3389_s6, 9  ;;  %s211_s7 = scalar_lea.sflag [#allocation4], %s3389_s6 }
  0x6a   : > { %s3395_s8 = scalar_lea.vmem [#allocation3], %s2575_s26 }
  0x6b   : > { %3151 = dma.done.wait (%p4672_p4), %s211_s7, 8192  }
  0x6c   : > { %3153 = vsyncadd (%p4672_p4), %s211_s7, 4294959104  ;;  %p4673_p5 = scmp.eq.s32.totalorder %s3238_s3, 0 }
  0x6e   : > { %3155 = dma.done.wait (%p4673_p5), [#allocation7], 11008   ;;  %p4674_p8 = pmov %p4673_p5 }
  0x6f   : > { %v3406_v0 = vld [vmem:[%s3395_s8 + $0x40] sm:$0xff]  ;;  %v3409_v1 = vld [vmem:[%s3395_s8 + $0x48] sm:$0xff]  ;;  %v3420_v5 = vld [vmem:[%s3395_s8 + $0x50] sm:$0xff]  ;;  %vm581_vm0 = vcmask 130112   ;;  %vm588_vm1 = vcmask 195712   ;;  %vm595_vm2 = vcmask 261312  }
  0x70   : > { %3157 = vsyncadd (%p4674_p8), [#allocation7], 4294956288  ;;  %v3412_v2 = vld [vmem:[%s3395_s8] sm:$0xff]  ;;  %v325_v3 = vadd.f32 %v3409_v1, %v3406_v0  ;;  %v3417_v4 = vld [vmem:[%s3395_s8 + $0x8] sm:$0xff]  ;;  %v454_v54 = vmax.f32 %v3406_v0, %v3409_v1  ;;  %vm730_vm3 = vcmask 1041409   ;;  %vm732_vm4 = vcmask 1042434  }
  0x71   : > { %v3423_v6 = vld [vmem:[%s3395_s8 + $0x58] sm:$0xff]  ;;  %v313_v7 = vadd.f32 %v3417_v4, %v3412_v2  ;;  %v3428_v8 = vld [vmem:[%s3395_s8 + $0x10] sm:$0xff]  ;;  %v3438_v12 = vld [vmem:[%s3395_s8 + $0x60] sm:$0xff]  ;;  %v442_v50 = vmax.f32 %v3412_v2, %v3417_v4  ;;  %vm734_vm5 = vcmask 1043459   ;;  %vm736_vm6 = vcmask 1044484   ;;  %s1782_s22 = sld [smem:[#allocation2]] }
  0x72   : > { %v3431_v9 = vld [vmem:[%s3395_s8 + $0x18] sm:$0xff]  ;;  %326 = vadd.xlane.f32.xlu1 %v325_v3  ;;  %v328_v10 = vadd.f32 %v3423_v6, %v3420_v5  ;;  %v3441_v13 = vld [vmem:[%s3395_s8 + $0x68] sm:$0xff]  ;;  %v3444_v14 = vld [vmem:[%s3395_s8 + $0x20] sm:$0xff]  ;;  %v457_v61 = vmax.f32 %v3420_v5, %v3423_v6  ;;  %vm738_vm7 = vcmask 1045509   ;;  %vm740_vm8 = vcmask 1046534   ;;  %s4402_s24 = scalar_lea.vmem [#allocation9], %s2575_s26 }
  0x73   : > { %314 = vadd.xlane.f32.xlu0 %v313_v7  ;;  %v316_v11 = vadd.f32 %v3431_v9, %v3428_v8  ;;  %v3447_v15 = vld [vmem:[%s3395_s8 + $0x28] sm:$0xff]  ;;  %v331_v16 = vadd.f32 %v3441_v13, %v3438_v12  ;;  %v3454_v18 = vld [vmem:[%s3395_s8 + $0x90] sm:$0xff]  ;;  %v3457_v19 = vld [vmem:[%s3395_s8 + $0x98] sm:$0xff]  ;;  %v445_v55 = vmax.f32 %v3428_v8, %v3431_v9  ;;  %v460_v5 = vmax.f32 %v3438_v12, %v3441_v13  ;;  %s2659_s21 = sshll.u32 %s3238_s3, 13  ;;  %s2473_s28 = sshll.u32 %s4402_s24, 4  ;;  %s4547_s28 = int_to_ptr.vmem [resolvable:$true] %s2473_s28 }
  0x74   : > { %v319_v17 = vadd.f32 %v3447_v15, %v3444_v14  ;;  %v3460_v20 = vld [vmem:[%s3395_s8 + $0x80] sm:$0xff]  ;;  %v3463_v21 = vld [vmem:[%s3395_s8 + $0x88] sm:$0xff]  ;;  %v340_v22 = vadd.f32 %v3457_v19, %v3454_v18  ;;  %v3470_v24 = vld [vmem:[%s3395_s8 + $0x70] sm:$0xff]  ;;  %v448_v2 = vmax.f32 %v3444_v14, %v3447_v15  ;;  %v469_v9 = vmax.f32 %v3454_v18, %v3457_v19  ;;  %s4545_s5 = scalar_lea.hbm %s4609_s4, %s2659_s21  ;;  %s2459_s27 = scalar_lea.sflag [#allocation5], %s3389_s6 }
  0x75   : > { %v337_v23 = vadd.f32 %v3463_v21, %v3460_v20  ;;  %v3473_v25 = vld [vmem:[%s3395_s8 + $0x78] sm:$0xff]  ;;  %v3476_v26 = vld [vmem:[%s3395_s8 + $0x30] sm:$0xff]  ;;  %v3486_v30 = vld [vmem:[%s3395_s8 + $0xc0] sm:$0xff]  ;;  %v466_v4 = vmax.f32 %v3460_v20, %v3463_v21  ;;  %vm742_vm9 = vcmask 1047559   ;;  %vm961_vm10 = vcmask 261120   ;;  %s3106_s10 = scalar_lea.vmem %s4547_s28, 8192 }
  0x76   : > { %329 = vadd.xlane.f32.xlu1 %v328_v10  ;;  %v3479_v27 = vld [vmem:[%s3395_s8 + $0x38] sm:$0xff]  ;;  %v334_v28 = vadd.f32 %v3473_v25, %v3470_v24  ;;  %v3489_v31 = vld [vmem:[%s3395_s8 + $0xc8] sm:$0xff]  ;;  %v3492_v32 = vld [vmem:[%s3395_s8 + $0xa0] sm:$0xff]  ;;  %v463_v21 = vmax.f32 %v3470_v24, %v3473_v25  ;;  %p3107_p11 = scmp.ne.s32.totalorder %s4547_s28, %s3106_s10  ;;  %p4787_p0 = scmp.ne.s32.totalorder %s4670_s11, 0 }
  0x77   : > { %317 = vadd.xlane.f32.xlu0 %v316_v11  ;;  %v322_v29 = vadd.f32 %v3479_v27, %v3476_v26  ;;  %v3495_v33 = vld [vmem:[%s3395_s8 + $0xa8] sm:$0xff]  ;;  %v349_v34 = vadd.f32 %v3489_v31, %v3486_v30  ;;  %v3502_v36 = vld [vmem:[%s3395_s8 + $0xb0] sm:$0xff]  ;;  %v3505_v37 = vld [vmem:[%s3395_s8 + $0xb8] sm:$0xff]  ;;  %v451_v18 = vmax.f32 %v3476_v26, %v3479_v27  ;;  %s3186_s15 = smov [#allocation9]  }
  0x78   : > { %v343_v35 = vadd.f32 %v3495_v33, %v3492_v32  ;;  %v3508_v38 = vld [vmem:[%s3395_s8 + $0xd0] sm:$0xff]  ;;  %v3511_v39 = vld [vmem:[%s3395_s8 + $0xd8] sm:$0xff]  ;;  %v3514_v40 = vld [vmem:[%s3395_s8 + $0x100] sm:$0xff]  ;;  %v346_v42 = vadd.f32 %v3505_v37, %v3502_v36  ;;  %v472_v20 = vmax.f32 %v3492_v32, %v3495_v33  ;;  %p3108_p1 = pnand %p3107_p11, %p4787_p0  ;;  %s3110_s16 = sshll.u32 %s3186_s15, 4  ;;  %s3111_s16 = int_to_ptr.vmem [resolvable:$false] %s3110_s16 }
  0x79   : > { %v3517_v41 = vld [vmem:[%s3395_s8 + $0x108] sm:$0xff]  ;;  %v3522_v43 = vld [vmem:[%s3395_s8 + $0xe0] sm:$0xff]  ;;  %v352_v45 = vadd.f32 %v3511_v39, %v3508_v38  ;;  %v3532_v47 = vld [vmem:[%s3395_s8 + $0x110] sm:$0xff]  ;;  %s3112_s29 = scalar_lea.vmem %s3111_s16, 16384  ;;  %p3113_p7 = scmp.lt.s32.totalorder %s4547_s28, %s3111_s16 }
  0x7a   : > { %332 = vadd.xlane.f32.xlu1 %v331_v16  ;;  %v3525_v44 = vld [vmem:[%s3395_s8 + $0xe8] sm:$0xff]  ;;  %v361_v46 = vadd.f32 %v3517_v41, %v3514_v40  ;;  %v3535_v48 = vld [vmem:[%s3395_s8 + $0x118] sm:$0xff]  ;;  %v3544_v52 = vld [vmem:[%s3395_s8 + $0xf0] sm:$0xff]  ;;  %p3109_p3 = pneg %p3108_p1  ;;  %p3114_p9 = scmp.lt.s32.totalorder %s3112_s29, %s3106_s10 }
  0x7b   : > { %320 = vadd.xlane.f32.xlu0 %v319_v17  ;;  %v355_v49 = vadd.f32 %v3525_v44, %v3522_v43  ;;  %v364_v51 = vadd.f32 %v3535_v48, %v3532_v47  ;;  %v3547_v53 = vld [vmem:[%s3395_s8 + $0xf8] sm:$0xff]  ;;  %v3554_v56 = vld [vmem:[%s3395_s8 + $0x140] sm:$0xff]  ;;  %v3557_v57 = vld [vmem:[%s3395_s8 + $0x148] sm:$0xff] }
  0x7c   : > { %v358_v58 = vadd.f32 %v3547_v53, %v3544_v52  ;;  %v3562_v59 = vld [vmem:[%s3395_s8 + $0x120] sm:$0xff]  ;;  %v3565_v60 = vld [vmem:[%s3395_s8 + $0x128] sm:$0xff]  ;;  %v373_v62 = vadd.f32 %v3557_v57, %v3554_v56  ;;  %v3574_v0 = vld [vmem:[%s3395_s8 + $0x150] sm:$0xff]  ;;  %p3115_p12 = por %p3114_p9, %p3113_p7 }
  0x7d   : > { %v367_v63 = vadd.f32 %v3565_v60, %v3562_v59  ;;  %v3577_v1 = vld [vmem:[%s3395_s8 + $0x158] sm:$0xff]  ;;  %v3588_v6 = vld [vmem:[%s3395_s8 + $0x130] sm:$0xff]  ;;  %v3598_v10 = vld [vmem:[%s3395_s8 + $0x180] sm:$0xff] }
  0x7e   : > { %341 = vadd.xlane.f32.xlu1 %v340_v22  ;;  %v376_v3 = vadd.f32 %v3577_v1, %v3574_v0  ;;  %v3591_v7 = vld [vmem:[%s3395_s8 + $0x138] sm:$0xff]  ;;  %v3601_v11 = vld [vmem:[%s3395_s8 + $0x188] sm:$0xff]  ;;  %v3604_v14 = vld [vmem:[%s3395_s8 + $0x160] sm:$0xff]  ;;  %v481_v22 = vmax.f32 %v3508_v38, %v3511_v39  ;;  %v475_v39 = vmax.f32 %v3502_v36, %v3505_v37  ;;  %v496_v36 = vmax.f32 %v3562_v59, %v3565_v60  ;;  %p3116_p2 = pnand %p3115_p12, %p3109_p3 }
  0x7f   : > { %338 = vadd.xlane.f32.xlu0 %v337_v23  ;;  %v370_v8 = vadd.f32 %v3591_v7, %v3588_v6  ;;  %v3607_v12 = vld [vmem:[%s3395_s8 + $0x168] sm:$0xff]  ;;  %v385_v13 = vadd.f32 %v3601_v11, %v3598_v10  ;;  %v3614_v16 = vld [vmem:[%s3395_s8 + $0x190] sm:$0xff]  ;;  %v3617_v17 = vld [vmem:[%s3395_s8 + $0x198] sm:$0xff]  ;;  %v478_v23 = vmax.f32 %v3486_v30, %v3489_v31  ;;  %v484_v31 = vmax.f32 %v3522_v43, %v3525_v44 }
  0x80   : > { %v379_v15 = vadd.f32 %v3607_v12, %v3604_v14  ;;  %v388_v19 = vadd.f32 %v3617_v17, %v3614_v16  ;;  %v301_v26 = vld [vmem:[%s3395_s8 + $0x1a0] sm:$0xff]  ;;  %v302_v27 = vld [vmem:[%s3395_s8 + $0x1a8] sm:$0xff]  ;;  %v308_v24 = vld [vmem:[%s3395_s8 + $0x1d8] sm:$0xff]  ;;  %v487_v37 = vmax.f32 %v3544_v52, %v3547_v53  ;;  %v514_v52 = vmax.f32 %v3598_v10, %v3601_v11 }
  0x81   : > { %v391_v32 = vadd.f32 %v302_v27, %v301_v26  ;;  %v305_v25 = vld [vmem:[%s3395_s8 + $0x1c0] sm:$0xff]  ;;  %v508_v53 = vmax.f32 %v3604_v14, %v3607_v12  ;;  %v520_v59 = vmax.f32 %v301_v26, %v302_v27 }
  0x82   : > { %335 = vadd.xlane.f32.xlu1 %v334_v28  ;;  %v295_v28 = vld [vmem:[%s3395_s8 + $0x170] sm:$0xff] }
  0x83   : > { %323 = vadd.xlane.f32.xlu0 %v322_v29  ;;  %v296_v29 = vld [vmem:[%s3395_s8 + $0x178] sm:$0xff] }
  0x84   : > { %v382_v33 = vadd.f32 %v296_v29, %v295_v28 }
  0x86   : > { %350 = vadd.xlane.f32.xlu1 %v349_v34  ;;  %v307_v34 = vld [vmem:[%s3395_s8 + $0x1d0] sm:$0xff] }
  0x87   : > { %344 = vadd.xlane.f32.xlu0 %v343_v35  ;;  %v306_v35 = vld [vmem:[%s3395_s8 + $0x1c8] sm:$0xff]  ;;  %v400_v38 = vadd.f32 %v308_v24, %v307_v34 }
  0x88   : > { %v397_v30 = vadd.f32 %v306_v35, %v305_v25 }
  0x8a   : > { %347 = vadd.xlane.f32.xlu1 %v346_v42  ;;  %v493_v42 = vmax.f32 %v3532_v47, %v3535_v48  ;;  %v311_v47 = vld [vmem:[%s3395_s8 + $0x1f0] sm:$0xff]  ;;  %v312_v48 = vld [vmem:[%s3395_s8 + $0x1f8] sm:$0xff] }
  0x8b   : > { %353 = vadd.xlane.f32.xlu0 %v352_v45  ;;  %v490_v45 = vmax.f32 %v3514_v40, %v3517_v41  ;;  %v505_v40 = vmax.f32 %v3574_v0, %v3577_v1  ;;  %v502_v41 = vmax.f32 %v3554_v56, %v3557_v57  ;;  %v517_v56 = vmax.f32 %v3614_v16, %v3617_v17  ;;  %v935_v0 = vld [vmem:[#allocation6] sm:$0xff]  ;;  %v936_v1 = vld [vmem:[#allocation6 + $0x8] sm:$0xff]  ;;  %v941_v17 = vld [vmem:[#allocation6 + $0x30] sm:$0xff] }
  0x8c   : > { %v526_v57 = vmax.f32 %v305_v25, %v306_v35  ;;  %v940_v16 = vld [vmem:[#allocation6 + $0x28] sm:$0xff] }
  0x8e   : > { %362 = vadd.xlane.f32.xlu1 %v361_v46  ;;  %v309_v46 = vld [vmem:[%s3395_s8 + $0x1e0] sm:$0xff] }
  0x8f   : > { %356 = vadd.xlane.f32.xlu0 %v355_v49  ;;  %v310_v49 = vld [vmem:[%s3395_s8 + $0x1e8] sm:$0xff] }
  0x90   : > { %v403_v43 = vadd.f32 %v310_v49, %v309_v46 }
  0x92   : > { %443 = vmax.xlane.f32.xlu1 %v442_v50  ;;  %v303_v50 = vld [vmem:[%s3395_s8 + $0x1b0] sm:$0xff] }
  0x93   : > { %365 = vadd.xlane.f32.xlu0 %v364_v51  ;;  %v304_v51 = vld [vmem:[%s3395_s8 + $0x1b8] sm:$0xff] }
  0x94   : > { %v394_v44 = vadd.f32 %v304_v51, %v303_v50  ;;  %v523_v60 = vmax.f32 %v303_v50, %v304_v51 }
  0x96   : > { %455 = vmax.xlane.f32.xlu1 %v454_v54  ;;  %v499_v54 = vmax.f32 %v3588_v6, %v3591_v7 }
  0x97   : > { %446 = vmax.xlane.f32.xlu0 %v445_v55  ;;  %v406_v55 = vadd.f32 %v312_v48, %v311_v47 }
  0x9a   : > { %359 = vadd.xlane.f32.xlu1 %v358_v58  ;;  %v511_v58 = vmax.f32 %v295_v28, %v296_v29  ;;  %v944_v28 = vld [vmem:[#allocation6 + $0x48] sm:$0xff]  ;;  %v945_v29 = vld [vmem:[#allocation6 + $0x50] sm:$0xff] }
  0x9b   : > { %458 = vmax.xlane.f32.xlu0 %v457_v61  ;;  %v529_v61 = vmax.f32 %v307_v34, %v308_v24 }
  0x9e   : > { %374 = vadd.xlane.f32.xlu1 %v373_v62  ;;  %v535_v62 = vmax.f32 %v311_v47, %v312_v48  ;;  %v948_v48 = vld [vmem:[#allocation6 + $0x68] sm:$0xff] }
  0x9f   : > { %368 = vadd.xlane.f32.xlu0 %v367_v63  ;;  %v532_v63 = vmax.f32 %v309_v46, %v310_v49  ;;  %v947_v46 = vld [vmem:[#allocation6 + $0x60] sm:$0xff] }
  0xa2   : > { %449 = vmax.xlane.f32.xlu1 %v448_v2  ;;  %v570_v2 = vlaneseq }
  0xa3   : > { %377 = vadd.xlane.f32.xlu0 %v376_v3  ;;  %v2730_v3 = vpack.c.bf16 %v936_v1, %v935_v0 }
  0xa4   : > { %v571_v6 = vand.u32 127, %v570_v2 }
  0xa5   : > { %2731 = vmatprep.subr.bf16.mxu0 %v2730_v3 }
  0xa6   : > { %467 = vmax.xlane.f32.xlu1 %v466_v4  ;;  %2733 = vmatpush3.bf16.msra.mxu0 %v2730_v3  ;;  %v937_v4 = vld [vmem:[#allocation6 + $0x10] sm:$0xff] }
  0xa7   : > { %461 = vmax.xlane.f32.xlu0 %v460_v5  ;;  %v938_v5 = vld [vmem:[#allocation6 + $0x18] sm:$0xff] }
  0xa8   : > { %v2734_v7 = vpack.c.bf16 %v938_v5, %v937_v4 }
  0xaa   : > { %371 = vadd.xlane.f32.xlu1 %v370_v8  ;;  %v3669_v8 = vshrl.u32 %v570_v2, 7  ;;  %2735 = vmatprep.subr.bf16.mxu0 %v2734_v7 }
  0xab   : > { %470 = vmax.xlane.f32.xlu0 %v469_v9  ;;  %v576_v9 = vadd.s32 4294967288, %v571_v6  ;;  %2737 = vmatpush3.bf16.msra.mxu0 %v2734_v7 }
  0xac   : > { %v3672_v14 = vsub.s32 %v571_v6, %v3669_v8 }
  0xae   : > { %386 = vadd.xlane.f32.xlu1 %v385_v13  ;;  %v3675_v13 = vsub.s32 %v576_v9, %v3669_v8  ;;  %v952_v9 = vld [vmem:[#allocation6 + $0x88] sm:$0xff] }
  0xaf   : > { %380 = vadd.xlane.f32.xlu0 %v379_v15  ;;  %v583_v15 = vadd.s32 4294967280, %v571_v6 }
  0xb1   : > { %v3680_v24 = vsub.s32 %v583_v15, %v3669_v8 }
  0xb2   : > { %452 = vmax.xlane.f32.xlu1 %v451_v18  ;;  %v942_v18 = vld [vmem:[#allocation6 + $0x38] sm:$0xff] }
  0xb3   : > { %389 = vadd.xlane.f32.xlu0 %v388_v19 }
  0xb6   : > { %473 = vmax.xlane.f32.xlu1 %v472_v20 }
  0xb7   : > { %464 = vmax.xlane.f32.xlu0 %v463_v21  ;;  %v2738_v21 = vpack.c.bf16 %v941_v17, %v940_v16 }
  0xb9   : > { %2739 = vmatprep.subr.bf16.mxu1 %v2738_v21 }
  0xba   : > { %482 = vmax.xlane.f32.xlu1 %v481_v22  ;;  %v943_v22 = vld [vmem:[#allocation6 + $0x40] sm:$0xff]  ;;  %2741 = vmatpush3.bf16.msra.mxu1 %v2738_v21 }
  0xbb   : > { %479 = vmax.xlane.f32.xlu0 %v478_v23  ;;  %v2742_v27 = vpack.c.bf16 %v943_v22, %v942_v18 }
  0xbd   : > { %2743 = vmatprep.subr.bf16.mxu1 %v2742_v27 }
  0xbe   : > { %392 = vadd.xlane.f32.xlu1 %v391_v32  ;;  %2745 = vmatpush3.bf16.msra.mxu1 %v2742_v27 }
  0xbf   : > { %383 = vadd.xlane.f32.xlu0 %v382_v33 }
  0xc2   : > { %401 = vadd.xlane.f32.xlu1 %v400_v38 }
  0xc3   : > { %398 = vadd.xlane.f32.xlu0 %v397_v30  ;;  %v2746_v30 = vpack.c.bf16 %v945_v29, %v944_v28 }
  0xc5   : > { %2747 = vmatprep.subr.bf16.mxu1 %v2746_v30 }
  0xc6   : > { %485 = vmax.xlane.f32.xlu1 %v484_v31  ;;  %2749 = vmatpush3.bf16.msra.mxu1 %v2746_v30 }
  0xc7   : > { %476 = vmax.xlane.f32.xlu0 %v475_v39 }
  0xca   : > { %494 = vmax.xlane.f32.xlu1 %v493_v42 }
  0xcb   : > { %491 = vmax.xlane.f32.xlu0 %v490_v45  ;;  %v946_v45 = vld [vmem:[#allocation6 + $0x58] sm:$0xff] }
  0xce   : > { %404 = vadd.xlane.f32.xlu1 %v403_v43  ;;  %v590_v43 = vadd.s32 4294967272, %v571_v6 }
  0xcf   : > { %395 = vadd.xlane.f32.xlu0 %v394_v44 }
  0xd2   : > { %497 = vmax.xlane.f32.xlu1 %v496_v36 }
  0xd3   : > { %488 = vmax.xlane.f32.xlu0 %v487_v37  ;;  %v2750_v37 = vpack.c.bf16 %v947_v46, %v946_v45 }
  0xd5   : > { %2751 = vmatprep.subr.bf16.mxu1 %v2750_v37 }
  0xd6   : > { %506 = vmax.xlane.f32.xlu1 %v505_v40  ;;  %2753 = vmatpush3.bf16.msra.mxu1 %v2750_v37 }
  0xd7   : > { %503 = vmax.xlane.f32.xlu0 %v502_v41 }
  0xda   : > { %500 = vmax.xlane.f32.xlu1 %v499_v54  ;;  %v949_v54 = vld [vmem:[#allocation6 + $0x70] sm:$0xff] }
  0xdb   : > { %407 = vadd.xlane.f32.xlu0 %v406_v55 }
  0xde   : > { %515 = vmax.xlane.f32.xlu1 %v514_v52 }
  0xdf   : > { %509 = vmax.xlane.f32.xlu0 %v508_v53 }
  0xe2   : > { %512 = vmax.xlane.f32.xlu1 %v511_v58  ;;  %v3692_v58 = vsub.s32 %v590_v43, %v3669_v8 }
  0xe3   : > { %518 = vmax.xlane.f32.xlu0 %v517_v56 }
  0xe6   : > { %527 = vmax.xlane.f32.xlu1 %v526_v57 }
  0xe7   : > { %521 = vmax.xlane.f32.xlu0 %v520_v59  ;;  %v2754_v59 = vpack.c.bf16 %v949_v54, %v948_v48 }
  0xe9   : > { %2755 = vmatprep.subr.bf16.mxu1 %v2754_v59 }
  0xea   : > { %524 = vmax.xlane.f32.xlu1 %v523_v60  ;;  %2757 = vmatpush3.bf16.msra.mxu1 %v2754_v59 }
  0xeb   : > { %530 = vmax.xlane.f32.xlu0 %v529_v61 }
  0xee   : > { %536 = vmax.xlane.f32.xlu1 %v535_v62  ;;  %v950_v62 = vld [vmem:[#allocation6 + $0x78] sm:$0xff] }
  0xef   : > { %533 = vmax.xlane.f32.xlu0 %v532_v63  ;;  %v951_v63 = vld [vmem:[#allocation6 + $0x80] sm:$0xff] }
  0xf0   : > { %v2758_v5 = vpack.c.bf16 %v951_v63, %v950_v62 }
  0xf2   : > { %2759 = vmatprep.subr.bf16.mxu1 %v2758_v5 }
  0xf3   : > { %2761 = vmatpush3.bf16.msra.mxu1 %v2758_v5 }
  0xff   : > { %v327_v10 = vpop.xlane.xlu1 %326 }
 0x100   : > { %v315_v11 = vpop.xlane.xlu0 %314  ;;  %v414_v12 = vmul.f32 0.00390625, %v327_v10  ;;  %v953_v10 = vld [vmem:[#allocation6 + $0x90] sm:$0xff] }
 0x101   : > { %v410_v19 = vmul.f32 0.00390625, %v315_v11 }
 0x102   : > { %v600_v33 = vrot.slane %v414_v12, %v3672_v14 }
 0x103   : > { %v330_v20 = vpop.xlane.xlu1 %329  ;;  %v575_v25 = vrot.slane %v410_v19, %v3672_v14  ;;  %v2762_v19 = vpack.c.bf16 %v953_v10, %v952_v9 }
 0x104   : > { %v415_v23 = vmul.f32 0.00390625, %v330_v20  ;;  %v318_v26 = vpop.xlane.xlu0 %317 }
 0x105   : > { %v411_v32 = vmul.f32 0.00390625, %v318_v26  ;;  %2763 = vmatprep.subr.bf16.mxu1 %v2762_v19 }
 0x106   : > { %v604_v34 = vrot.slane %v415_v23, %v3675_v13  ;;  %2765 = vmatpush3.bf16.msra.mxu1 %v2762_v19 }
 0x107   : > { %v580_v35 = vrot.slane %v411_v32, %v3675_v13  ;;  %v333_v38 = vpop.xlane.xlu1 %332 }
 0x108   : > { %v605_v31 = vsel %vm581_vm0, %v604_v34, %v600_v33  ;;  %v416_v39 = vmul.f32 0.00390625, %v333_v38  ;;  %v321_v42 = vpop.xlane.xlu0 %320 }
 0x109   : > { %v582_v49 = vsel %vm581_vm0, %v580_v35, %v575_v25  ;;  %v412_v50 = vmul.f32 0.00390625, %v321_v42 }
 0x10a   : > { %v609_v51 = vrot.slane %v416_v39, %v3680_v24 }
 0x10b   : > { %v587_v44 = vrot.slane %v412_v50, %v3680_v24  ;;  %v342_v36 = vpop.xlane.xlu1 %341 }
 0x10c   : > { %v610_v40 = vsel %vm588_vm1, %v609_v51, %v605_v31  ;;  %v419_v41 = vmul.f32 0.00390625, %v342_v36  ;;  %v339_v47 = vpop.xlane.xlu0 %338 }
 0x10d   : > { %v589_v55 = vsel %vm588_vm1, %v587_v44, %v582_v49  ;;  %v418_v52 = vmul.f32 0.00390625, %v339_v47 }
 0x10e   : > { %v623_v53 = vrot.slane %v419_v41, %v3675_v13 }
 0x10f   : > { %v619_v56 = vrot.slane %v418_v52, %v3672_v14  ;;  %v336_v57 = vpop.xlane.xlu1 %335 }
 0x110   : > { %v417_v60 = vmul.f32 0.00390625, %v336_v57  ;;  %v324_v61 = vpop.xlane.xlu0 %323 }
 0x111   : > { %v624_v0 = vsel %vm581_vm0, %v623_v53, %v619_v56  ;;  %v413_v1 = vmul.f32 0.00390625, %v324_v61 }
 0x112   : > { %v614_v2 = vrot.slane %v417_v60, %v3692_v58 }
 0x113   : > { %v594_v3 = vrot.slane %v413_v1, %v3692_v58  ;;  %v351_v4 = vpop.xlane.xlu1 %350 }
 0x114   : > { %v615_v6 = vsel %vm595_vm2, %v614_v2, %v610_v40  ;;  %v345_v7 = vpop.xlane.xlu0 %344  ;;  %v422_v16 = vmul.f32 0.00390625, %v351_v4 }
 0x115   : > { %v596_v11 = vsel %vm595_vm2, %v594_v3, %v589_v55  ;;  %v420_v12 = vmul.f32 0.00390625, %v345_v7 }
 0x116   : > { %v731_v15 = vsel %vm730_vm3, %v615_v6, %v596_v11  ;;  %v638_v27 = vrot.slane %v422_v16, %v3672_v14 }
 0x117   : > { %v628_v17 = vrot.slane %v420_v12, %v3680_v24  ;;  %v348_v18 = vpop.xlane.xlu1 %347 }
 0x118   : > { %v421_v20 = vmul.f32 0.00390625, %v348_v18  ;;  %v354_v21 = vpop.xlane.xlu0 %353 }
 0x119   : > { %v629_v22 = vsel %vm588_vm1, %v628_v17, %v624_v0  ;;  %v423_v23 = vmul.f32 0.00390625, %v354_v21 }
 0x11a   : > { %v633_v26 = vrot.slane %v421_v20, %v3692_v58 }
 0x11b   : > { %v642_v28 = vrot.slane %v423_v23, %v3675_v13  ;;  %v363_v29 = vpop.xlane.xlu1 %362 }
 0x11c   : > { %v634_v32 = vsel %vm595_vm2, %v633_v26, %v629_v22  ;;  %v357_v33 = vpop.xlane.xlu0 %356  ;;  %v426_v38 = vmul.f32 0.00390625, %v363_v29 }
 0x11d   : > { %v733_v34 = vsel %vm732_vm4, %v634_v32, %v731_v15  ;;  %v643_v25 = vsel %vm581_vm0, %v642_v28, %v638_v27  ;;  %v424_v35 = vmul.f32 0.00390625, %v357_v33 }
 0x11e   : > { %v657_v46 = vrot.slane %v426_v38, %v3672_v14 }
 0x11f   : > { %v647_v30 = vrot.slane %v424_v35, %v3680_v24  ;;  %v444_v31 = vpop.xlane.xlu1 %443 }
 0x120   : > { %v366_v39 = vpop.xlane.xlu0 %365  ;;  %v779_v43 = vrot.slane %v444_v31, %v3672_v14 }
 0x121   : > { %v648_v42 = vsel %vm588_vm1, %v647_v30, %v643_v25  ;;  %v427_v45 = vmul.f32 0.00390625, %v366_v39 }
 0x123   : > { %v661_v49 = vrot.slane %v427_v45, %v3675_v13  ;;  %v456_v50 = vpop.xlane.xlu1 %455 }
 0x124   : > { %v447_v51 = vpop.xlane.xlu0 %446  ;;  %v798_v48 = vrot.slane %v456_v50, %v3672_v14 }
 0x125   : > { %v662_v44 = vsel %vm581_vm0, %v661_v49, %v657_v46  ;;  %v783_v36 = vrot.slane %v447_v51, %v3675_v13 }
 0x127   : > { %v784_v37 = vsel %vm581_vm0, %v783_v36, %v779_v43  ;;  %v360_v40 = vpop.xlane.xlu1 %359 }
 0x128   : > { %v425_v41 = vmul.f32 0.00390625, %v360_v40  ;;  %v459_v47 = vpop.xlane.xlu0 %458 }
 0x129   : > { %v802_v54 = vrot.slane %v459_v47, %v3675_v13 }
 0x12a   : > { %v652_v55 = vrot.slane %v425_v41, %v3692_v58 }
 0x12b   : > { %v803_v52 = vsel %vm581_vm0, %v802_v54, %v798_v48  ;;  %v375_v53 = vpop.xlane.xlu1 %374 }
 0x12c   : > { %v653_v56 = vsel %vm595_vm2, %v652_v55, %v648_v42  ;;  %v369_v57 = vpop.xlane.xlu0 %368  ;;  %v430_v55 = vmul.f32 0.00390625, %v375_v53 }
 0x12d   : > { %v735_v59 = vsel %vm734_vm5, %v653_v56, %v733_v34  ;;  %v428_v0 = vmul.f32 0.00390625, %v369_v57 }
 0x12f   : > { %v450_v60 = vpop.xlane.xlu1 %449  ;;  %v666_v4 = vrot.slane %v428_v0, %v3680_v24 }
 0x130   : > { %v788_v61 = vrot.slane %v450_v60, %v3680_v24  ;;  %v378_v62 = vpop.xlane.xlu0 %377 }
 0x131   : > { %v667_v11 = vsel %vm588_vm1, %v666_v4, %v662_v44  ;;  %v431_v40 = vmul.f32 0.00390625, %v378_v62  ;;  %v676_v4 = vrot.slane %v430_v55, %v3672_v14 }
 0x132   : > { %v789_v63 = vsel %vm588_vm1, %v788_v61, %v784_v37 }
 0x133   : > { %v468_v1 = vpop.xlane.xlu1 %467  ;;  %v680_v60 = vrot.slane %v431_v40, %v3675_v13 }
 0x134   : > { %v462_v2 = vpop.xlane.xlu0 %461  ;;  %v817_v31 = vrot.slane %v468_v1, %v3672_v14 }
 0x135   : > { %v807_v3 = vrot.slane %v462_v2, %v3680_v24 }
 0x137   : > { %v808_v5 = vsel %vm588_vm1, %v807_v3, %v803_v52  ;;  %v372_v6 = vpop.xlane.xlu1 %371 }
 0x138   : > { %v429_v7 = vmul.f32 0.00390625, %v372_v6  ;;  %v471_v9 = vpop.xlane.xlu0 %470 }
 0x139   : > { %v821_v38 = vrot.slane %v471_v9, %v3675_v13  ;;  %v681_v9 = vsel %vm581_vm0, %v680_v60, %v676_v4 }
 0x13a   : > { %v671_v10 = vrot.slane %v429_v7, %v3692_v58 }
 0x13b   : > { %v387_v12 = vpop.xlane.xlu1 %386  ;;  %v822_v45 = vsel %vm581_vm0, %v821_v38, %v817_v31 }
 0x13c   : > { %v672_v15 = vsel %vm595_vm2, %v671_v10, %v667_v11  ;;  %v381_v16 = vpop.xlane.xlu0 %380  ;;  %v434_v57 = vmul.f32 0.00390625, %v387_v12 }
 0x13d   : > { %v3732_v17 = vsel %vm736_vm6, %v672_v15, %v735_v59  ;;  %v432_v47 = vmul.f32 0.00390625, %v381_v16 }
 0x13e   : > { %v695_v6 = vrot.slane %v434_v57, %v3672_v14 }
 0x13f   : > { %v453_v18 = vpop.xlane.xlu1 %452  ;;  %v685_v1 = vrot.slane %v432_v47, %v3680_v24 }
 0x140   : > { %v390_v19 = vpop.xlane.xlu0 %389  ;;  %v793_v20 = vrot.slane %v453_v18, %v3692_v58 }
 0x141   : > { %v435_v48 = vmul.f32 0.00390625, %v390_v19  ;;  %v686_v15 = vsel %vm588_vm1, %v685_v1, %v681_v9 }
 0x142   : > { %v794_v26 = vsel %vm595_vm2, %v793_v20, %v789_v63 }
 0x143   : > { %v474_v21 = vpop.xlane.xlu1 %473  ;;  %v699_v62 = vrot.slane %v435_v48, %v3675_v13 }
 0x144   : > { %v465_v22 = vpop.xlane.xlu0 %464  ;;  %v826_v30 = vrot.slane %v474_v21, %v3680_v24 }
 0x145   : > { %v812_v23 = vrot.slane %v465_v22, %v3692_v58  ;;  %v700_v16 = vsel %vm581_vm0, %v699_v62, %v695_v6 }
 0x146   : > { %v827_v49 = vsel %vm588_vm1, %v826_v30, %v822_v45 }
 0x147   : > { %v813_v27 = vsel %vm595_vm2, %v812_v23, %v808_v5  ;;  %v3738_v28 = vpop.xlane.xlu1 %482 }
 0x148   : > { %v928_v29 = vsel %vm730_vm3, %v813_v27, %v794_v26  ;;  %v3741_v32 = vpop.xlane.xlu0 %479 }
 0x14b   : > { %v393_v33 = vpop.xlane.xlu1 %392 }
 0x14c   : > { %v384_v34 = vpop.xlane.xlu0 %383  ;;  %v436_v52 = vmul.f32 0.00390625, %v393_v33 }
 0x14d   : > { %v433_v56 = vmul.f32 0.00390625, %v384_v34 }
 0x14e   : > { %v704_v53 = vrot.slane %v436_v52, %v3680_v24 }
 0x14f   : > { %v402_v25 = vpop.xlane.xlu1 %401  ;;  %v690_v5 = vrot.slane %v433_v56, %v3692_v58 }
 0x150   : > { %v399_v35 = vpop.xlane.xlu0 %398  ;;  %v439_v61 = vmul.f32 0.00390625, %v402_v25  ;;  %v705_v20 = vsel %vm588_vm1, %v704_v53, %v700_v16 }
 0x151   : > { %v438_v63 = vmul.f32 0.00390625, %v399_v35  ;;  %v691_v21 = vsel %vm595_vm2, %v690_v5, %v686_v15 }
 0x152   : > { %v718_v10 = vrot.slane %v439_v61, %v3675_v13  ;;  %v739_v25 = vsel %vm738_vm7, %v691_v21, %v3732_v17 }
 0x153   : > { %v3746_v39 = vpop.xlane.xlu1 %485  ;;  %v714_v11 = vrot.slane %v438_v63, %v3672_v14 }
 0x154   : > { %v477_v42 = vpop.xlane.xlu0 %476  ;;  %v845_v17 = vrot.slane %v3746_v39, %v3680_v24 }
 0x155   : > { %v831_v46 = vrot.slane %v477_v42, %v3692_v58  ;;  %v719_v26 = vsel %vm581_vm0, %v718_v10, %v714_v11 }
 0x157   : > { %v832_v50 = vsel %vm595_vm2, %v831_v46, %v827_v49  ;;  %v3752_v51 = vpop.xlane.xlu1 %494  ;;  %v840_v46 = vrot.slane %v3738_v28, %v3675_v13  ;;  %v836_v49 = vrot.slane %v3741_v32, %v3672_v14 }
 0x158   : > { %v3755_v43 = vsel %vm732_vm4, %v832_v50, %v928_v29  ;;  %v3757_v44 = vpop.xlane.xlu0 %491 }
 0x15b   : > { %v405_v36 = vpop.xlane.xlu1 %404 }
 0x15c   : > { %v396_v37 = vpop.xlane.xlu0 %395  ;;  %v440_v2 = vmul.f32 0.00390625, %v405_v36  ;;  %v859_v36 = vrot.slane %v3752_v51, %v3675_v13 }
 0x15d   : > { %v437_v59 = vmul.f32 0.00390625, %v396_v37  ;;  %v855_v37 = vrot.slane %v3757_v44, %v3672_v14  ;;  %v841_v44 = vsel %vm581_vm0, %v840_v46, %v836_v49  ;;  %v3842_v49 = vsub.s32 0, %v3669_v8 }
 0x15e   : > { %v723_v18 = vrot.slane %v440_v2, %v3680_v24 }
 0x15f   : > { %v3759_v41 = vpop.xlane.xlu1 %497  ;;  %v709_v7 = vrot.slane %v437_v59, %v3692_v58  ;;  %v860_v57 = vsel %vm581_vm0, %v859_v36, %v855_v37  ;;  %v3849_v36 = vsub.s32 1, %v3669_v8  ;;  %v1169_v37 = vsub.s32 2, %v3669_v8 }
 0x160   : > { %v3761_v54 = vpop.xlane.xlu0 %488  ;;  %v724_v34 = vsel %vm588_vm1, %v723_v18, %v719_v26  ;;  %v864_v40 = vrot.slane %v3759_v41, %v3680_v24 }
 0x161   : > { %v710_v23 = vsel %vm595_vm2, %v709_v7, %v705_v20  ;;  %v850_v47 = vrot.slane %v3761_v54, %v3692_v58  ;;  %v846_v54 = vsel %vm588_vm1, %v845_v17, %v841_v44  ;;  %v955_v20 = vld [vmem:[#allocation6 + $0xa0] sm:$0xff] }
 0x162   : > { %v741_v38 = vsel %vm740_vm8, %v710_v23, %v739_v25  ;;  %v865_v61 = vsel %vm588_vm1, %v864_v40, %v860_v57  ;;  %v2856_v44 = vld [vmem:[#allocation8 + $0x114] ss:$8 sps:$4 sm:$0xff]   ;;  %v2862_v57 = vld [vmem:[#allocation8 + $0x124] ss:$8 sps:$4 sm:$0xff]  }
 0x163   : > { %v3764_v0 = vpop.xlane.xlu1 %506  ;;  %v851_v63 = vsel %vm595_vm2, %v850_v47, %v846_v54  ;;  %v1207_v54 = vsub.s32 4, %v3669_v8 }
 0x164   : > { %v504_v3 = vpop.xlane.xlu0 %503  ;;  %v878_v28 = vrot.slane %v3764_v0, %v3675_v13  ;;  %v930_v10 = vsel %vm734_vm5, %v851_v63, %v3755_v43  ;;  %v954_v43 = vld [vmem:[#allocation6 + $0x98] sm:$0xff] }
 0x165   : > { %v874_v32 = vrot.slane %v504_v3, %v3672_v14  ;;  %v2766_v21 = vpack.c.bf16 %v955_v20, %v954_v43  ;;  %v2887_v43 = vld [vmem:[#allocation8 + $0x60] ss:$8 sps:$4 sm:$0xff]   ;;  %v2892_v20 = vld [vmem:[#allocation8 + $0x174] ss:$8 sps:$4 sm:$0xff]  }
 0x167   : > { %v501_v12 = vpop.xlane.xlu1 %500  ;;  %v879_v0 = vsel %vm581_vm0, %v878_v28, %v874_v32  ;;  %2767 = vmatprep.subr.bf16.mxu1 %v2766_v21  ;;  %v1188_v28 = vsub.s32 3, %v3669_v8  ;;  %v2850_v32 = vld [vmem:[#allocation8 + $0x104] ss:$8 sps:$4 sm:$0xff]  }
 0x168   : > { %v408_v19 = vpop.xlane.xlu0 %407  ;;  %v869_v48 = vrot.slane %v501_v12, %v3692_v58  ;;  %2769 = vmatpush3.bf16.msra.mxu1 %v2766_v21  ;;  %2145 = vmatprep.subr.bf16.mxu0 %v2850_v32  ;;  %v2890_v21 = vld [vmem:[#allocation8 + $0x170] ss:$8 sps:$4 sm:$0xff]   ;;  %v2928_v32 = vld [vmem:[#allocation8 + $0x1d4] ss:$8 sps:$4 sm:$0xff]  }
 0x169   : > { %v441_v22 = vmul.f32 0.00390625, %v408_v19 }
 0x16a   : > { %v870_v62 = vsel %vm595_vm2, %v869_v48, %v865_v61  ;;  %v2848_v48 = vld [vmem:[#allocation8 + $0x100] ss:$8 sps:$4 sm:$0xff]  }
 0x16b   : > { %v728_v27 = vrot.slane %v441_v22, %v3692_v58  ;;  %v516_v29 = vpop.xlane.xlu1 %515  ;;  %v931_v12 = vsel %vm736_vm6, %v870_v62, %v930_v10  ;;  %v2863_v61 = vld [vmem:[#allocation8 + $0x20] ss:$8 sps:$4 sm:$0xff]   ;;  %v1245_v62 = vsub.s32 6, %v3669_v8 }
 0x16c   : > { %v510_v33 = vpop.xlane.xlu0 %509  ;;  %v893_v59 = vrot.slane %v516_v29, %v3672_v14  ;;  %v2875_v10 = vld [vmem:[#allocation8 + $0x40] ss:$8 sps:$4 sm:$0xff]  }
 0x16d   : > { %v729_v35 = vsel %vm595_vm2, %v728_v27, %v724_v34  ;;  %v883_v39 = vrot.slane %v510_v33, %v3680_v24  ;;  %v2582_v34 = vld [vmem:[#allocation6 + $0xa8] ss:$0 sm:$0xff] }
 0x16e   : > { %v743_v30 = vsel %vm742_vm9, %v729_v35, %v741_v38 }
 0x16f   : > { %2692 = vmatprep.mubr.msk.f32.mxu0 %vm961_vm10, %v743_v30  ;;  %v513_v31 = vpop.xlane.xlu1 %512  ;;  %v884_v2 = vsel %vm588_vm1, %v883_v39, %v879_v0  ;;  %v2853_v39 = vld [vmem:[#allocation8 + $0x4] ss:$8 sps:$4 sm:$0xff]   ;;  %v1226_v0 = vsub.s32 5, %v3669_v8 }
 0x170   : > { %v519_v42 = vpop.xlane.xlu0 %518  ;;  %v888_v52 = vrot.slane %v513_v31, %v3692_v58  ;;  %2104 = vmatprep.subr.bf16.mxu1 %v2853_v39  ;;  %v2931_v39 = vld [vmem:[#allocation8 + $0xd4] ss:$8 sps:$4 sm:$0xff]  }
 0x171   : > { %v897_v51 = vrot.slane %v519_v42, %v3675_v13 }
 0x172   : > { %v889_v53 = vsel %vm595_vm2, %v888_v52, %v884_v2  ;;  %v2854_v52 = vld [vmem:[#allocation8 + $0x110] ss:$8 sps:$4 sm:$0xff]   ;;  %v2868_v2 = vld [vmem:[#allocation8 + $0x134] ss:$8 sps:$4 sm:$0xff]  }
 0x173   : > { %v528_v45 = vpop.xlane.xlu1 %527  ;;  %v898_v3 = vsel %vm581_vm0, %v897_v51, %v893_v59  ;;  %v932_v16 = vsel %vm738_vm7, %v889_v53, %v931_v12  ;;  %v2851_v51 = vld [vmem:[#allocation8] ss:$8 sps:$4 sm:$0xff]   ;;  %v2869_v53 = vld [vmem:[#allocation8 + $0x30] ss:$8 sps:$4 sm:$0xff]  }
 0x174   : > { %v522_v50 = vpop.xlane.xlu0 %521  ;;  %v912_v5 = vrot.slane %v528_v45, %v3672_v14  ;;  %v2860_v59 = vld [vmem:[#allocation8 + $0x120] ss:$8 sps:$4 sm:$0xff]   ;;  %v2878_v12 = vld [vmem:[#allocation8 + $0x150] ss:$8 sps:$4 sm:$0xff]  }
 0x175   : > { %v902_v41 = vrot.slane %v522_v50, %v3680_v24 }
 0x177   : > { %v525_v55 = vpop.xlane.xlu1 %524  ;;  %v903_v6 = vsel %vm588_vm1, %v902_v41, %v898_v3  ;;  %v2859_v41 = vld [vmem:[#allocation8 + $0x14] ss:$8 sps:$4 sm:$0xff]   ;;  %v2866_v3 = vld [vmem:[#allocation8 + $0x130] ss:$8 sps:$4 sm:$0xff]  }
 0x178   : > { %v531_v56 = vpop.xlane.xlu0 %530  ;;  %v907_v60 = vrot.slane %v525_v55, %v3692_v58 }
 0x179   : > { %v916_v1 = vrot.slane %v531_v56, %v3675_v13  ;;  %v2857_v56 = vld [vmem:[#allocation8 + $0x10] ss:$8 sps:$4 sm:$0xff]  }
 0x17a   : > { %v908_v13 = vsel %vm595_vm2, %v907_v60, %v903_v6  ;;  %v2865_v60 = vld [vmem:[#allocation8 + $0x24] ss:$8 sps:$4 sm:$0xff]  }
 0x17b   : > { %v537_v4 = vpop.xlane.xlu1 %536  ;;  %v917_v15 = vsel %vm581_vm0, %v916_v1, %v912_v5  ;;  %v933_v19 = vsel %vm740_vm8, %v908_v13, %v932_v16  ;;  %v2874_v6 = vld [vmem:[#allocation8 + $0x144] ss:$8 sps:$4 sm:$0xff]   ;;  %v1264_v13 = vsub.s32 7, %v3669_v8  ;;  %v2881_v16 = vld [vmem:[#allocation8 + $0x50] ss:$8 sps:$4 sm:$0xff]  }
 0x17c   : > { %v534_v7 = vpop.xlane.xlu0 %533  ;;  %v926_v9 = vrot.slane %v537_v4, %v3692_v58  ;;  %v2871_v4 = vld [vmem:[#allocation8 + $0x34] ss:$8 sps:$4 sm:$0xff]  }
 0x17d   : > { %v921_v11 = vrot.slane %v534_v7, %v3680_v24  ;;  %v2579_v24 = vld [vmem:[#allocation6 + $0x20] ss:$0 sm:$0xff]  ;;  %v2872_v7 = vld [vmem:[#allocation8 + $0x140] ss:$8 sps:$4 sm:$0xff]  }
 0x17f   : > { %v922_v14 = vsel %vm588_vm1, %v921_v11, %v917_v15  ;;  %v2880_v11 = vld [vmem:[#allocation8 + $0x154] ss:$8 sps:$4 sm:$0xff]  }
 0x180   : > { %v927_v18 = vsel %vm595_vm2, %v926_v9, %v922_v14  ;;  %v2877_v9 = vld [vmem:[#allocation8 + $0x44] ss:$8 sps:$4 sm:$0xff]   ;;  %v2883_v15 = vld [vmem:[#allocation8 + $0x54] ss:$8 sps:$4 sm:$0xff]  }
 0x181   : > { %v934_v58 = vsel %vm742_vm9, %v927_v18, %v933_v19  ;;  %v2886_v18 = vld [vmem:[#allocation8 + $0x164] ss:$8 sps:$4 sm:$0xff]   ;;  %v2884_v19 = vld [vmem:[#allocation8 + $0x160] ss:$8 sps:$4 sm:$0xff]  }
 0x182   : > { %2693 = vmatmul.mubr.msk.f32.vlgmr.msra.gmra.mrb[0].mxu0 %vm961_vm10, %v934_v58  ;;  %v2889_v58 = vld [vmem:[#allocation8 + $0x64] ss:$8 sps:$4 sm:$0xff]  }
 0x183   : > { %2146 = vmatpush1.bf16.msra.mxu0 %v2848_v48  ;;  %v2926_v48 = vld [vmem:[#allocation8 + $0x1d0] ss:$8 sps:$4 sm:$0xff]  }
 0x184   : > { %2147 = vmatprep.subr.bf16.mxu0 %v2856_v44  ;;  %v2932_v44 = vld [vmem:[#allocation8 + $0x1e0] ss:$8 sps:$4 sm:$0xff]  }
 0x187   : > { %2148 = vmatpush1.bf16.msra.mxu0 %v2854_v52  ;;  %v2937_v52 = vld [vmem:[#allocation8 + $0xe4] ss:$8 sps:$4 sm:$0xff]  }
 0x188   : > { %2149 = vmatprep.subr.bf16.mxu0 %v2862_v57  ;;  %v2941_v57 = vld [vmem:[#allocation8 + $0xf0] ss:$8 sps:$4 sm:$0xff]  }
 0x18b   : > { %2150 = vmatpush1.bf16.msra.mxu0 %v2860_v59  ;;  %v2943_v59 = vld [vmem:[#allocation8 + $0xf4] ss:$8 sps:$4 sm:$0xff]  }
 0x18c   : > { %2151 = vmatprep.subr.bf16.mxu0 %v2868_v2  ;;  %v2956_v2 = vld [vmem:[%s3395_s8 + $0x10] sm:$0xff] }
 0x18f   : > { %2152 = vmatpush1.bf16.msra.mxu0 %v2866_v3 }
 0x190   : > { %2153 = vmatprep.subr.bf16.mxu0 %v2874_v6 }
 0x193   : > { %2154 = vmatpush1.bf16.msra.mxu0 %v2872_v7  ;;  %v2959_v7 = vld [vmem:[%s3395_s8 + $0x8] sm:$0xff] }
 0x194   : > { %2155 = vmatprep.subr.bf16.mxu0 %v2880_v11  ;;  %v2960_v11 = vld [vmem:[%s3395_s8 + $0x50] sm:$0xff] }
 0x197   : > { %2156 = vmatpush1.bf16.msra.mxu0 %v2878_v12 }
 0x198   : > { %2157 = vmatprep.subr.bf16.mxu0 %v2886_v18 }
 0x19b   : > { %2158 = vmatpush1.bf16.msra.mxu0 %v2884_v19  ;;  %v2962_v19 = vld [vmem:[%s3395_s8 + $0x20] sm:$0xff] }
 0x19c   : > { %2159 = vmatprep.subr.bf16.mxu0 %v2892_v20 }
 0x19f   : > { %2160 = vmatpush1.bf16.msra.mxu0 %v2890_v21 }
 0x255   : > { %v2694_v22 = vpop.f32.mrb[0].mxu0 }
 0x256   : > { %v1038_v23 = vadd.f32 %v2694_v22, %v2579_v24  ;;  %v1032_v26 = vpop.f32.mrb[1].mxu0  ;;  %v2893_v22 = vld [vmem:[#allocation8 + $0x70] ss:$8 sps:$4 sm:$0xff]  }
 0x257   : > { %v1033_v27 = vadd.f32 %v2579_v24, %v1032_v26  ;;  %v2895_v24 = vld [vmem:[#allocation8 + $0x74] ss:$8 sps:$4 sm:$0xff]   ;;  %v2896_v26 = vld [vmem:[#allocation8 + $0x180] ss:$8 sps:$4 sm:$0xff]  }
 0x258   : > { %v1042_v33 = vmax.f32 %v1038_v23, 0.0  ;;  %v2898_v23 = vld [vmem:[#allocation8 + $0x184] ss:$8 sps:$4 sm:$0xff]  }
 0x259   : > { %v1041_v29 = vmax.f32 %v1033_v27, 0.0  ;;  %2161 = vmatprep.subr.bf16.mxu0 %v2898_v23  ;;  %v2901_v27 = vld [vmem:[#allocation8 + $0x84] ss:$8 sps:$4 sm:$0xff]  }
 0x25a   : > { %2162 = vmatpush1.bf16.msra.mxu0 %v2896_v26  ;;  %v2965_v26 = vld [vmem:[%s3395_s8 + $0x48] sm:$0xff] }
 0x25b   : > { %2727 = vmatprep.mubr.f32.mxu1 %v1041_v29  ;;  %v2899_v29 = vld [vmem:[#allocation8 + $0x80] ss:$8 sps:$4 sm:$0xff]  }
 0x25c   : > { %2728 = vmatmul.mubr.f32.vlgmr.msra.gmra.mrb[0].mxu1 %v1042_v33  ;;  %v2904_v33 = vld [vmem:[#allocation8 + $0x194] ss:$8 sps:$4 sm:$0xff]  }
 0x25d   : > { %2105 = vmatpush1.bf16.msra.mxu1 %v2851_v51  ;;  %2163 = vmatprep.subr.bf16.mxu0 %v2904_v33  ;;  %v2929_v51 = vld [vmem:[#allocation8 + $0xd0] ss:$8 sps:$4 sm:$0xff]  }
 0x25e   : > { %2106 = vmatprep.subr.bf16.mxu1 %v2859_v41  ;;  %v2935_v41 = vld [vmem:[#allocation8 + $0xe0] ss:$8 sps:$4 sm:$0xff]  }
 0x261   : > { %2107 = vmatpush1.bf16.msra.mxu1 %v2857_v56  ;;  %v2940_v56 = vld [vmem:[#allocation8 + $0x1f4] ss:$8 sps:$4 sm:$0xff]  }
 0x262   : > { %2108 = vmatprep.subr.bf16.mxu1 %v2865_v60 }
 0x265   : > { %2109 = vmatpush1.bf16.msra.mxu1 %v2863_v61 }
 0x266   : > { %2110 = vmatprep.subr.bf16.mxu1 %v2871_v4  ;;  %v2957_v4 = vld [vmem:[%s3395_s8 + $0x18] sm:$0xff] }
 0x269   : > { %2111 = vmatpush1.bf16.msra.mxu1 %v2869_v53 }
 0x26a   : > { %2112 = vmatprep.subr.bf16.mxu1 %v2877_v9 }
 0x26d   : > { %2113 = vmatpush1.bf16.msra.mxu1 %v2875_v10 }
 0x26e   : > { %2114 = vmatprep.subr.bf16.mxu1 %v2883_v15  ;;  %v2961_v15 = vld [vmem:[%s3395_s8 + $0x58] sm:$0xff] }
 0x271   : > { %2115 = vmatpush1.bf16.msra.mxu1 %v2881_v16 }
 0x272   : > { %2116 = vmatprep.subr.bf16.mxu1 %v2889_v58 }
 0x275   : > { %2117 = vmatpush1.bf16.msra.mxu1 %v2887_v43  ;;  %v2963_v43 = vld [vmem:[%s3395_s8 + $0x28] sm:$0xff] }
 0x276   : > { %2118 = vmatprep.subr.bf16.mxu1 %v2895_v24 }
 0x279   : > { %2119 = vmatpush1.bf16.msra.mxu1 %v2893_v22  ;;  %v2964_v22 = vld [vmem:[%s3395_s8 + $0x40] sm:$0xff] }
 0x27a   : > { %2120 = vmatprep.subr.bf16.mxu1 %v2901_v27 }
 0x27d   : > { %2121 = vmatpush1.bf16.msra.mxu1 %v2899_v29 }
 0x32f   : > { %v2729_v25 = vpop.f32.mrb[0].mxu1 }
 0x330   : > { %v1119_v35 = vadd.f32 %v2729_v25, %v2582_v34  ;;  %v1113_v38 = vpop.f32.mrb[1].mxu1  ;;  %v2907_v25 = vld [vmem:[#allocation8 + $0x94] ss:$8 sps:$4 sm:$0xff]  }
 0x331   : > { %v1114_v30 = vadd.f32 %v2582_v34, %v1113_v38  ;;  %v2902_v34 = vld [vmem:[#allocation8 + $0x190] ss:$8 sps:$4 sm:$0xff]   ;;  %2122 = vmatprep.subr.bf16.mxu1 %v2907_v25  ;;  %v2910_v38 = vld [vmem:[#allocation8 + $0x1a4] ss:$8 sps:$4 sm:$0xff]  }
 0x332   : > { %2164 = vmatpush1.bf16.msra.mxu0 %v2902_v34  ;;  %v2966_v34 = vld [vmem:[%s3395_s8 + $0x80] sm:$0xff] }
 0x333   : > { %v1122_v31 = vadd.f32 %v1119_v35, %v1114_v30  ;;  %v2905_v35 = vld [vmem:[#allocation8 + $0x90] ss:$8 sps:$4 sm:$0xff]   ;;  %v2908_v30 = vld [vmem:[#allocation8 + $0x1a0] ss:$8 sps:$4 sm:$0xff]   ;;  %2165 = vmatprep.subr.bf16.mxu0 %v2910_v38 }
 0x334   : > { %2123 = vmatpush1.bf16.msra.mxu1 %v2905_v35  ;;  %v2967_v35 = vld [vmem:[%s3395_s8 + $0x88] sm:$0xff] }
 0x335   : > { %v2583_v42 = vmul.f32 -1.442695, %v1122_v31  ;;  %v2913_v31 = vld [vmem:[#allocation8 + $0xa4] ss:$8 sps:$4 sm:$0xff]  }
 0x336   : > { %2166 = vmatpush1.bf16.msra.mxu0 %v2908_v30  ;;  %2124 = vmatprep.subr.bf16.mxu1 %v2913_v31  ;;  %v2968_v30 = vld [vmem:[%s3395_s8 + $0x90] sm:$0xff] }
 0x337   : > { %2944 = vpow2.f32 %v2583_v42  ;;  %v2911_v42 = vld [vmem:[#allocation8 + $0xa0] ss:$8 sps:$4 sm:$0xff]  }
 0x338   : > { %2125 = vmatpush1.bf16.msra.mxu1 %v2911_v42  ;;  %v2969_v42 = vld [vmem:[%s3395_s8 + $0x98] sm:$0xff] }
 0x341   : > { %v2945_v45 = vpop.eup %2944 }
 0x342   : > { %v1126_v46 = vadd.f32 1.0, %v2945_v45  ;;  %v2916_v45 = vld [vmem:[#allocation8 + $0x1b4] ss:$8 sps:$4 sm:$0xff]  }
 0x343   : > { %2167 = vmatprep.subr.bf16.mxu0 %v2916_v45 }
 0x344   : > { %2946 = vrcp.f32 %v1126_v46  ;;  %v2914_v46 = vld [vmem:[#allocation8 + $0x1b0] ss:$8 sps:$4 sm:$0xff]  }
 0x345   : > { %2168 = vmatpush1.bf16.msra.mxu0 %v2914_v46 }
 0x34e   : > { %v3844_v50 = vpop.eup %2946 }
 0x34f   : > { %v1132_v17 = vrot.slane %v3844_v50, %v3842_v49  ;;  %v1151_v40 = vrot.slane %v3844_v50, %v3849_v36  ;;  %v1170_v47 = vrot.slane %v3844_v50, %v1169_v37  ;;  %v1189_v55 = vrot.slane %v3844_v50, %v1188_v28  ;;  %v2922_v37 = vld [vmem:[#allocation8 + $0x1c4] ss:$8 sps:$4 sm:$0xff]   ;;  %v2923_v28 = vld [vmem:[#allocation8 + $0xc0] ss:$8 sps:$4 sm:$0xff]  }
 0x350   : > { %v1208_v63 = vrot.slane %v3844_v50, %v1207_v54  ;;  %v1227_v1 = vrot.slane %v3844_v50, %v1226_v0  ;;  %v1246_v5 = vrot.slane %v3844_v50, %v1245_v62  ;;  %v1265_v14 = vrot.slane %v3844_v50, %v1264_v13  ;;  %v2919_v50 = vld [vmem:[#allocation8 + $0xb4] ss:$8 sps:$4 sm:$0xff]   ;;  %2169 = vmatprep.subr.bf16.mxu0 %v2922_v37  ;;  %v2938_v54 = vld [vmem:[#allocation8 + $0x1f0] ss:$8 sps:$4 sm:$0xff]  }
 0x351   : > { %1138 = vbcast.lane.b32.xlu1 %v1132_v17, 264  ;;  %1134 = vbcast.lane.b32.xlu0 %v1132_v17, 256 }
 0x352   : > { %2126 = vmatprep.subr.bf16.mxu1 %v2919_v50 }
 0x355   : > { %1153 = vbcast.lane.b32.xlu1 %v1151_v40, 256  ;;  %1172 = vbcast.lane.b32.xlu0 %v1170_v47, 256 }
 0x359   : > { %1157 = vbcast.lane.b32.xlu1 %v1151_v40, 264  ;;  %1142 = vbcast.lane.b32.xlu0 %v1132_v17, 272 }
 0x35d   : > { %1176 = vbcast.lane.b32.xlu1 %v1170_v47, 264  ;;  %1191 = vbcast.lane.b32.xlu0 %v1189_v55, 256 }
 0x361   : > { %1161 = vbcast.lane.b32.xlu1 %v1151_v40, 272  ;;  %1180 = vbcast.lane.b32.xlu0 %v1170_v47, 272 }
 0x365   : > { %1195 = vbcast.lane.b32.xlu1 %v1189_v55, 264  ;;  %1214 = vbcast.lane.b32.xlu0 %v1208_v63, 264 }
 0x369   : > { %1210 = vbcast.lane.b32.xlu1 %v1208_v63, 256  ;;  %1165 = vbcast.lane.b32.xlu0 %v1151_v40, 280  ;;  %v2920_v40 = vld [vmem:[#allocation8 + $0x1c0] ss:$8 sps:$4 sm:$0xff]  }
 0x36a   : > { %2170 = vmatpush1.bf16.msra.mxu0 %v2920_v40 }
 0x36b   : > { %2171 = vmatprep.subr.bf16.mxu0 %v2928_v32 }
 0x36d   : > { %1146 = vbcast.lane.b32.xlu1 %v1132_v17, 280  ;;  %1229 = vbcast.lane.b32.xlu0 %v1227_v1, 256  ;;  %v2917_v17 = vld [vmem:[#allocation8 + $0xb0] ss:$8 sps:$4 sm:$0xff]  }
 0x36e   : > { %2127 = vmatpush1.bf16.msra.mxu1 %v2917_v17  ;;  %2172 = vmatpush1.bf16.msra.mxu0 %v2926_v48  ;;  %v2971_v48 = vld [vmem:[%s3395_s8 + $0x68] sm:$0xff] }
 0x371   : > { %1199 = vbcast.lane.b32.xlu1 %v1189_v55, 272  ;;  %1184 = vbcast.lane.b32.xlu0 %v1170_v47, 280  ;;  %v2925_v47 = vld [vmem:[#allocation8 + $0xc4] ss:$8 sps:$4 sm:$0xff]  }
 0x372   : > { %2128 = vmatprep.subr.bf16.mxu1 %v2925_v47 }
 0x373   : > { %2129 = vmatpush1.bf16.msra.mxu1 %v2923_v28  ;;  %v2970_v28 = vld [vmem:[%s3395_s8 + $0x60] sm:$0xff] }
 0x374   : > { %2130 = vmatprep.subr.bf16.mxu1 %v2931_v39 }
 0x375   : > { %1233 = vbcast.lane.b32.xlu1 %v1227_v1, 264  ;;  %1248 = vbcast.lane.b32.xlu0 %v1246_v5, 256 }
 0x377   : > { %2131 = vmatpush1.bf16.msra.mxu1 %v2929_v51 }
 0x378   : > { %2132 = vmatprep.subr.bf16.mxu1 %v2937_v52 }
 0x379   : > { %1218 = vbcast.lane.b32.xlu1 %v1208_v63, 272  ;;  %1203 = vbcast.lane.b32.xlu0 %v1189_v55, 280  ;;  %v2934_v55 = vld [vmem:[#allocation8 + $0x1e4] ss:$8 sps:$4 sm:$0xff]  }
 0x37a   : > { %2173 = vmatprep.subr.bf16.mxu0 %v2934_v55 }
 0x37b   : > { %2174 = vmatpush1.bf16.msra.mxu0 %v2932_v44  ;;  %2133 = vmatpush1.bf16.msra.mxu1 %v2935_v41  ;;  %v2972_v44 = vld [vmem:[%s3395_s8 + $0xa0] sm:$0xff]  ;;  %v2973_v41 = vld [vmem:[%s3395_s8 + $0xa8] sm:$0xff] }
 0x37c   : > { %2175 = vmatprep.subr.bf16.mxu0 %v2940_v56  ;;  %2134 = vmatprep.subr.bf16.mxu1 %v2943_v59 }
 0x37d   : > { %1252 = vbcast.lane.b32.xlu1 %v1246_v5, 264  ;;  %1267 = vbcast.lane.b32.xlu0 %v1265_v14, 256 }
 0x37f   : > { %2176 = vmatpush1.bf16.msra.mxu0 %v2938_v54  ;;  %2135 = vmatpush1.bf16.msra.mxu1 %v2941_v57 }
 0x381   : > { %1237 = vbcast.lane.b32.xlu1 %v1227_v1, 272  ;;  %1222 = vbcast.lane.b32.xlu0 %v1208_v63, 280 }
 0x385   : > { %1271 = vbcast.lane.b32.xlu1 %v1265_v14, 264  ;;  %1241 = vbcast.lane.b32.xlu0 %v1227_v1, 280 }
 0x389   : > { %1256 = vbcast.lane.b32.xlu1 %v1246_v5, 272  ;;  %1260 = vbcast.lane.b32.xlu0 %v1246_v5, 280  ;;  %v2958_v5 = vld [vmem:[%s3395_s8] sm:$0xff] }
 0x38d   : > { %1275 = vbcast.lane.b32.xlu1 %v1265_v14, 272 }
 0x391   : > { %1279 = vbcast.lane.b32.xlu1 %v1265_v14, 280 }
 0x3c3   : > { %v1139_v60 = vpop.permute.xlu1 %1138  ;;  %v1135_v61 = vpop.permute.xlu0 %1134 }
 0x3c4   : > { %v3866_v3 = vmul.f32 %v2956_v2, %v1139_v60  ;;  %v3869_v53 = vmul.f32 %v2957_v4, %v1139_v60  ;;  %v3872_v6 = vmul.f32 %v2958_v5, %v1135_v61  ;;  %v3875_v9 = vmul.f32 %v2959_v7, %v1135_v61  ;;  %v2974_v61 = vld [vmem:[%s3395_s8 + $0xc0] sm:$0xff]  ;;  %v2976_v4 = vld [vmem:[%s3395_s8 + $0xd0] sm:$0xff]  ;;  %v2977_v7 = vld [vmem:[%s3395_s8 + $0xd8] sm:$0xff] }
 0x3c6   : > { %4675 = vst [vmem:[#allocation13_spill] sm:$0xff] %v3869_v53  ;;  %v1345_v14 = vadd.f32 %v3866_v3, %v3872_v6  ;;  %v1354_v18 = vadd.f32 %v3869_v53, %v3875_v9  ;;  %v1506_v21 = vmax.f32 %v3872_v6, %v3866_v3  ;;  %v1515_v24 = vmax.f32 %v3875_v9, %v3869_v53 }
 0x3c7   : > { %v1154_v63 = vpop.permute.xlu1 %1153  ;;  %v1173_v0 = vpop.permute.xlu0 %1172 }
 0x3c8   : > { %v3898_v23 = vmul.f32 %v2964_v22, %v1154_v63  ;;  %v3901_v27 = vmul.f32 %v2965_v26, %v1154_v63  ;;  %v3904_v25 = vmul.f32 %v2966_v34, %v1173_v0  ;;  %v3907_v38 = vmul.f32 %v2967_v35, %v1173_v0  ;;  %v2975_v0 = vld [vmem:[%s3395_s8 + $0xc8] sm:$0xff] }
 0x3c9   : > { %v2981_v35 = vld [vmem:[%s3395_s8 + $0x108] sm:$0xff] }
 0x3ca   : > { %4680 = vst [vmem:[#allocation18_spill] sm:$0xff] %v3898_v23  ;;  %4681 = vst [vmem:[#allocation19_spill] sm:$0xff] %v3901_v27 }
 0x3cb   : > { %v1158_v1 = vpop.permute.xlu1 %1157  ;;  %v1143_v62 = vpop.permute.xlu0 %1142  ;;  %4682 = vst [vmem:[#allocation20_spill] sm:$0xff] %v3904_v25  ;;  %4683 = vst [vmem:[#allocation21_spill] sm:$0xff] %v3907_v38 }
 0x3cc   : > { %v3878_v12 = vmul.f32 %v2960_v11, %v1158_v1  ;;  %v3881_v16 = vmul.f32 %v2961_v15, %v1158_v1  ;;  %v3888_v58 = vmul.f32 %v2962_v19, %v1143_v62  ;;  %v3891_v20 = vmul.f32 %v2963_v43, %v1143_v62  ;;  %v2978_v43 = vld [vmem:[%s3395_s8 + $0x110] sm:$0xff] }
 0x3ce   : > { %4676 = vst [vmem:[#allocation14_spill] sm:$0xff] %v3878_v12  ;;  %4677 = vst [vmem:[#allocation15_spill] sm:$0xff] %v3881_v16  ;;  %v1363_v46 = vadd.f32 %v3878_v12, %v3898_v23  ;;  %v1372_v50 = vadd.f32 %v3881_v16, %v3901_v27  ;;  %v1524_v17 = vmax.f32 %v3898_v23, %v3878_v12 }
 0x3cf   : > { %v1177_v10 = vpop.permute.xlu1 %1176  ;;  %v1192_v13 = vpop.permute.xlu0 %1191  ;;  %4678 = vst [vmem:[#allocation16_spill] sm:$0xff] %v3888_v58  ;;  %4679 = vst [vmem:[#allocation17_spill] sm:$0xff] %v3891_v20  ;;  %v1533_v37 = vmax.f32 %v3901_v27, %v3881_v16  ;;  %v3924_v40 = vadd.f32 %v1345_v14, %v3888_v58  ;;  %v3927_v47 = vadd.f32 %v1354_v18, %v3891_v20 }
 0x3d0   : > { %v3910_v31 = vmul.f32 %v2968_v30, %v1177_v10  ;;  %v3913_v45 = vmul.f32 %v2969_v42, %v1177_v10  ;;  %v3936_v51 = vmax.f32 %v1506_v21, %v3888_v58  ;;  %v3939_v55 = vmax.f32 %v1515_v24, %v3891_v20  ;;  %v2979_v24 = vld [vmem:[%s3395_s8 + $0x118] sm:$0xff]  ;;  %v2982_v42 = vld [vmem:[%s3395_s8 + $0x70] sm:$0xff] }
 0x3d1   : > { %v3952_v63 = vmul.f32 %v2974_v61, %v1192_v13  ;;  %v3955_v1 = vmul.f32 %v2975_v0, %v1192_v13 }
 0x3d2   : > { %4684 = vst [vmem:[#allocation22_spill] sm:$0xff] %v3910_v31  ;;  %4685 = vst [vmem:[#allocation23_spill] sm:$0xff] %v3913_v45  ;;  %v1381_v59 = vadd.f32 %v3910_v31, %v3904_v25  ;;  %v1390_v60 = vadd.f32 %v3913_v45, %v3907_v38  ;;  %v1542_v62 = vmax.f32 %v3904_v25, %v3910_v31 }
 0x3d3   : > { %v1162_v29 = vpop.permute.xlu1 %1161  ;;  %v1181_v33 = vpop.permute.xlu0 %1180  ;;  %4690 = vst [vmem:[#allocation28_spill] sm:$0xff] %v3952_v63  ;;  %4691 = vst [vmem:[#allocation29_spill] sm:$0xff] %v3955_v1  ;;  %v1551_v2 = vmax.f32 %v3907_v38, %v3913_v45 }
 0x3d4   : > { %v3930_v32 = vmul.f32 %v2970_v28, %v1162_v29  ;;  %v3933_v39 = vmul.f32 %v2971_v48, %v1162_v29  ;;  %v3942_v52 = vmul.f32 %v2972_v44, %v1181_v33  ;;  %v3945_v56 = vmul.f32 %v2973_v41, %v1181_v33  ;;  %v2980_v33 = vld [vmem:[%s3395_s8 + $0x100] sm:$0xff] }
 0x3d6   : > { %4686 = vst [vmem:[#allocation24_spill] sm:$0xff] %v3930_v32  ;;  %4687 = vst [vmem:[#allocation25_spill] sm:$0xff] %v3933_v39  ;;  %v1364_v11 = vadd.f32 %v1363_v46, %v3930_v32  ;;  %v1373_v13 = vadd.f32 %v1372_v50, %v3933_v39  ;;  %v1525_v15 = vmax.f32 %v1524_v17, %v3930_v32  ;;  %v2983_v50 = vld [vmem:[%s3395_s8 + $0x78] sm:$0xff] }
 0x3d7   : > { %4688 = vst [vmem:[#allocation26_spill] sm:$0xff] %v3942_v52  ;;  %4689 = vst [vmem:[#allocation27_spill] sm:$0xff] %v3945_v56  ;;  %v1196_v54 = vpop.permute.xlu1 %1195  ;;  %v1215_v57 = vpop.permute.xlu0 %1214  ;;  %v1534_v14 = vmax.f32 %v1533_v37, %v3933_v39  ;;  %v3972_v18 = vadd.f32 %v1381_v59, %v3942_v52  ;;  %v3975_v19 = vadd.f32 %v1390_v60, %v3945_v56 }
 0x3d8   : > { %v3962_v5 = vmul.f32 %v2976_v4, %v1196_v54  ;;  %v3965_v10 = vmul.f32 %v2977_v7, %v1196_v54  ;;  %v3978_v21 = vmul.f32 %v2978_v43, %v1215_v57  ;;  %v3981_v22 = vmul.f32 %v2979_v24, %v1215_v57  ;;  %v2984_v43 = vld [vmem:[%s3395_s8 + $0x30] sm:$0xff] }
 0x3d9   : > { %v3996_v37 = vmax.f32 %v1542_v62, %v3942_v52  ;;  %v3999_v28 = vmax.f32 %v1551_v2, %v3945_v56 }
 0x3da   : > { %4692 = vst [vmem:[#allocation30_spill] sm:$0xff] %v3962_v5  ;;  %4693 = vst [vmem:[#allocation31_spill] sm:$0xff] %v3965_v10  ;;  %v4003_v48 = vadd.f32 %v3962_v5, %v3952_v63  ;;  %v4007_v44 = vadd.f32 %v3965_v10, %v3955_v1 }
 0x3db   : > { %4694 = vst [vmem:[#allocation32_spill] sm:$0xff] %v3978_v21  ;;  %4695 = vst [vmem:[#allocation33_spill] sm:$0xff] %v3981_v22  ;;  %v1211_v26 = vpop.permute.xlu1 %1210  ;;  %v1166_v29 = vpop.permute.xlu0 %1165 }
 0x3dc   : > { %v3984_v34 = vmul.f32 %v2980_v33, %v1211_v26  ;;  %v3987_v30 = vmul.f32 %v2981_v35, %v1211_v26  ;;  %v3990_v46 = vmul.f32 %v2982_v42, %v1166_v29  ;;  %v3993_v17 = vmul.f32 %v2983_v50, %v1166_v29  ;;  %v2985_v26 = vld [vmem:[%s3395_s8 + $0x38] sm:$0xff] }
 0x3de   : > { %4696 = vst [vmem:[#allocation34_spill] sm:$0xff] %v3984_v34  ;;  %4697 = vst [vmem:[#allocation35_spill] sm:$0xff] %v3987_v30  ;;  %v4015_v57 = vadd.f32 %v3978_v21, %v3984_v34  ;;  %v4019_v59 = vadd.f32 %v3981_v22, %v3987_v30  ;;  %v1365_v60 = vadd.f32 %v1364_v11, %v3990_v46 }
 0x3df   : > { %4698 = vst [vmem:[#allocation36_spill] sm:$0xff] %v3990_v46  ;;  %4699 = vst [vmem:[#allocation37_spill] sm:$0xff] %v3993_v17  ;;  %v1374_v61 = vadd.f32 %v1373_v13, %v3993_v17  ;;  %v1526_v0 = vmax.f32 %v1525_v15, %v3990_v46  ;;  %v1535_v62 = vmax.f32 %v1534_v14, %v3993_v17  ;;  %v1147_v2 = vpop.permute.xlu1 %1146  ;;  %v1230_v15 = vpop.permute.xlu0 %1229 }
 0x3e0   : > { %v4030_v24 = vmul.f32 %v2984_v43, %v1147_v2  ;;  %v4033_v29 = vmul.f32 %v2985_v26, %v1147_v2  ;;  %v1366_v11 = vrot.slane %v1365_v60, 4 }
 0x3e1   : > { %v1375_v33 = vrot.slane %v1374_v61, 4  ;;  %v1527_v13 = vrot.slane %v1526_v0, 4  ;;  %v1536_v35 = vrot.slane %v1535_v62, 4 }
 0x3e2   : > { %4700 = vst [vmem:[#allocation38_spill] sm:$0xff] %v4030_v24  ;;  %4701 = vst [vmem:[#allocation39_spill] sm:$0xff] %v4033_v29  ;;  %v1347_v14 = vadd.f32 %v3924_v40, %v4030_v24  ;;  %v1356_v42 = vadd.f32 %v3927_v47, %v4033_v29  ;;  %v1508_v50 = vmax.f32 %v3936_v51, %v4030_v24 }
 0x3e3   : > { %v1517_v43 = vmax.f32 %v3939_v55, %v4033_v29  ;;  %v1367_v7 = vadd.f32 %v1366_v11, %v1365_v60  ;;  %v1376_v2 = vadd.f32 %v1375_v33, %v1374_v61  ;;  %v1528_v26 = vmax.f32 %v1526_v0, %v1527_v13  ;;  %v1200_v51 = vpop.permute.xlu1 %1199  ;;  %v1185_v61 = vpop.permute.xlu0 %1184 }
 0x3e4   : > { %v1537_v4 = vmax.f32 %v1535_v62, %v1536_v35  ;;  %v1348_v54 = vrot.slane %v1347_v14, 4  ;;  %v1357_v41 = vrot.slane %v1356_v42, 4  ;;  %v1509_v56 = vrot.slane %v1508_v50, 4 }
 0x3e5   : > { %v1518_v52 = vrot.slane %v1517_v43, 4  ;;  %v1368_v45 = vrot.slane %v1367_v7, 2  ;;  %v1377_v31 = vrot.slane %v1376_v2, 2  ;;  %v1529_v40 = vrot.slane %v1528_v26, 2 }
 0x3e6   : > { %v1538_v38 = vrot.slane %v1537_v4, 2  ;;  %v1349_v25 = vadd.f32 %v1348_v54, %v1347_v14  ;;  %v1358_v47 = vadd.f32 %v1357_v41, %v1356_v42  ;;  %v1510_v17 = vmax.f32 %v1508_v50, %v1509_v56 }
 0x3e7   : > { %v1519_v46 = vmax.f32 %v1517_v43, %v1518_v52  ;;  %v1369_v39 = vadd.f32 %v1368_v45, %v1367_v7  ;;  %v1378_v32 = vadd.f32 %v1377_v31, %v1376_v2  ;;  %v1530_v55 = vmax.f32 %v1528_v26, %v1529_v40  ;;  %v2987_v7 = vld [vmem:[%s3395_s8 + $0x148] sm:$0xff]  ;;  %v1234_v26 = vpop.permute.xlu1 %1233 }
 0x3e8   : > { %v1539_v60 = vmax.f32 %v1537_v4, %v1538_v38  ;;  %v1350_v0 = vrot.slane %v1349_v25, 2  ;;  %v1359_v62 = vrot.slane %v1358_v47, 2  ;;  %v1511_v11 = vrot.slane %v1510_v17, 2  ;;  %v2986_v38 = vld [vmem:[%s3395_s8 + $0x140] sm:$0xff] }
 0x3e9   : > { %v1520_v33 = vrot.slane %v1519_v46, 2  ;;  %v1370_v13 = vrot.slane %v1369_v39, 1  ;;  %v1379_v35 = vrot.slane %v1378_v32, 1  ;;  %v1531_v16 = vrot.slane %v1530_v55, 1 }
 0x3ea   : > { %v1540_v12 = vrot.slane %v1539_v60, 1  ;;  %v1351_v54 = vadd.f32 %v1350_v0, %v1349_v25  ;;  %v1360_v41 = vadd.f32 %v1359_v62, %v1358_v47  ;;  %v1512_v52 = vmax.f32 %v1510_v17, %v1511_v11  ;;  %v2988_v47 = vld [vmem:[%s3395_s8 + $0xe0] sm:$0xff] }
 0x3eb   : > { %v1521_v56 = vmax.f32 %v1519_v46, %v1520_v33  ;;  %v1371_v31 = vadd.f32 %v1370_v13, %v1369_v39  ;;  %v1380_v45 = vadd.f32 %v1379_v35, %v1378_v32  ;;  %v4044_v4 = vmul.f32 %v2986_v38, %v1230_v15  ;;  %v2989_v46 = vld [vmem:[%s3395_s8 + $0xe8] sm:$0xff]  ;;  %v1249_v32 = vpop.permute.xlu0 %1248  ;;  %v2993_v38 = vld [vmem:[%s3395_s8 + $0x158] sm:$0xff] }
 0x3ec   : > { %v4047_v14 = vmul.f32 %v2987_v7, %v1230_v15  ;;  %v1352_v42 = vrot.slane %v1351_v54, 1  ;;  %v1361_v50 = vrot.slane %v1360_v41, 1  ;;  %v1513_v43 = vrot.slane %v1512_v52, 1 }
 0x3ed   : > { %4702 = vst [vmem:[#allocation40_spill] sm:$0xff] %v4044_v4  ;;  %v1522_v2 = vrot.slane %v1521_v56, 1  ;;  %v1532_v40 = vmax.f32 %v1530_v55, %v1531_v16  ;;  %v1541_v25 = vmax.f32 %v1539_v60, %v1540_v12  ;;  %v4050_v0 = vmul.f32 %v2988_v47, %v1200_v51 }
 0x3ee   : > { %4703 = vst [vmem:[#allocation41_spill] sm:$0xff] %v4047_v14  ;;  %v4053_v39 = vmul.f32 %v2989_v46, %v1200_v51  ;;  %v1353_v17 = vadd.f32 %v1352_v42, %v1351_v54  ;;  %v1362_v15 = vadd.f32 %v1361_v50, %v1360_v41  ;;  %v1514_v62 = vmax.f32 %v1512_v52, %v1513_v43  ;;  %v2990_v52 = vld [vmem:[%s3395_s8 + $0xb0] sm:$0xff] }
 0x3ef   : > { %4704 = vst [vmem:[#allocation42_spill] sm:$0xff] %v4050_v0  ;;  %v1523_v11 = vmax.f32 %v1521_v56, %v1522_v2  ;;  %v1492_v33 = vmul.f32 0.03125, %v1371_v31  ;;  %v1493_v13 = vmul.f32 0.03125, %v1380_v45  ;;  %v1400_v12 = vadd.f32 %v4003_v48, %v4050_v0  ;;  %v2991_v31 = vld [vmem:[%s3395_s8 + $0xb8] sm:$0xff]  ;;  %v2992_v45 = vld [vmem:[%s3395_s8 + $0x150] sm:$0xff]  ;;  %v1219_v2 = vpop.permute.xlu1 %1218 }
 0x3f0   : > { %4705 = vst [vmem:[#allocation43_spill] sm:$0xff] %v4053_v39  ;;  %v1409_v16 = vadd.f32 %v4007_v44, %v4053_v39  ;;  %v1490_v55 = vmul.f32 0.03125, %v1353_v17  ;;  %v1491_v60 = vmul.f32 0.03125, %v1362_v15  ;;  %v4706_v51 = vmax.f32 %v3952_v63, %v3962_v5  ;;  %v2994_v15 = vld [vmem:[%s3395_s8 + $0x180] sm:$0xff] }
 0x3f1   : > { %v4707_v54 = vmax.f32 %v3955_v1, %v3965_v10  ;;  %v4068_v56 = vmul.f32 %v2990_v52, %v1185_v61  ;;  %v4071_v48 = vmul.f32 %v2991_v31, %v1185_v61  ;;  %v4074_v44 = vmul.f32 %v2992_v45, %v1234_v26  ;;  %v2998_v52 = vld [vmem:[%s3395_s8 + $0xf0] sm:$0xff]  ;;  %v2999_v45 = vld [vmem:[%s3395_s8 + $0xf8] sm:$0xff] }
 0x3f2   : > { %v1561_v35 = vmax.f32 %v4706_v51, %v4050_v0  ;;  %v4077_v7 = vmul.f32 %v2993_v38, %v1234_v26  ;;  %v4080_v42 = vsel %vm730_vm3, %v1492_v33, %v1490_v55  ;;  %v4083_v50 = vsel %vm730_vm3, %v1493_v13, %v1491_v60  ;;  %v2996_v55 = vld [vmem:[%s3395_s8 + $0x120] sm:$0xff]  ;;  %v2997_v51 = vld [vmem:[%s3395_s8 + $0x128] sm:$0xff] }
 0x3f3   : > { %v1570_v41 = vmax.f32 %v4707_v54, %v4053_v39  ;;  %4708 = vst [vmem:[#allocation44_spill] sm:$0xff] %v4068_v56  ;;  %4709 = vst [vmem:[#allocation45_spill] sm:$0xff] %v4071_v48  ;;  %v4086_v43 = vsel %vm730_vm3, %v1532_v40, %v1514_v62  ;;  %v4089_v61 = vsel %vm730_vm3, %v1541_v25, %v1523_v11  ;;  %v1204_v40 = vpop.permute.xlu0 %1203  ;;  %v2995_v62 = vld [vmem:[%s3395_s8 + $0x188] sm:$0xff] }
 0x3f4   : > { %4710 = vst [vmem:[#allocation46_spill] sm:$0xff] %v4074_v44  ;;  %4711 = vst [vmem:[#allocation47_spill] sm:$0xff] %v4077_v7  ;;  %v1383_v47 = vadd.f32 %v3972_v18, %v4068_v56  ;;  %v1392_v26 = vadd.f32 %v3975_v19, %v4071_v48  ;;  %v1544_v46 = vmax.f32 %v3996_v37, %v4068_v56 }
 0x3f5   : > { %v1553_v17 = vmax.f32 %v3999_v28, %v4071_v48  ;;  %v4101_v25 = vadd.f32 %v4074_v44, %v4044_v4  ;;  %v4105_v18 = vadd.f32 %v4077_v7, %v4047_v14  ;;  %v4108_v19 = vmul.f32 %v2994_v15, %v1249_v32 }
 0x3f6   : > { %v4111_v11 = vmul.f32 %v2995_v62, %v1249_v32  ;;  %v1384_v37 = vrot.slane %v1383_v47, 4  ;;  %v1393_v33 = vrot.slane %v1392_v26, 4  ;;  %v1545_v28 = vrot.slane %v1544_v46, 4 }
 0x3f7   : > { %v1554_v13 = vrot.slane %v1553_v17, 4  ;;  %v4114_v60 = vmul.f32 %v2996_v55, %v1219_v2  ;;  %v4117_v54 = vmul.f32 %v2997_v51, %v1219_v2  ;;  %v4120_v31 = vmul.f32 %v2998_v52, %v1204_v40 }
 0x3f8   : > { %v4123_v38 = vmul.f32 %v2999_v45, %v1204_v40  ;;  %v1385_v15 = vadd.f32 %v1384_v37, %v1383_v47  ;;  %v1394_v39 = vadd.f32 %v1393_v33, %v1392_v26  ;;  %v1546_v32 = vmax.f32 %v1544_v46, %v1545_v28  ;;  %v1253_v40 = vpop.permute.xlu1 %1252 }
 0x3f9   : > { %4712 = vst [vmem:[#allocation48_spill] sm:$0xff] %v4114_v60  ;;  %4713 = vst [vmem:[#allocation49_spill] sm:$0xff] %v4117_v54  ;;  %v1555_v62 = vmax.f32 %v1553_v17, %v1554_v13  ;;  %v4131_v2 = vadd.f32 %v4015_v57, %v4114_v60  ;;  %v4135_v51 = vadd.f32 %v4019_v59, %v4117_v54 }
 0x3fa   : > { %4714 = vst [vmem:[#allocation50_spill] sm:$0xff] %v4120_v31  ;;  %4715 = vst [vmem:[#allocation51_spill] sm:$0xff] %v4123_v38  ;;  %v1386_v52 = vrot.slane %v1385_v15, 2  ;;  %v1395_v47 = vrot.slane %v1394_v39, 2  ;;  %v1547_v26 = vrot.slane %v1546_v32, 2  ;;  %v1401_v17 = vadd.f32 %v1400_v12, %v4120_v31 }
 0x3fb   : > { %v1556_v46 = vrot.slane %v1555_v62, 2  ;;  %v1410_v37 = vadd.f32 %v1409_v16, %v4123_v38  ;;  %v1562_v33 = vmax.f32 %v1561_v35, %v4120_v31  ;;  %v1571_v28 = vmax.f32 %v1570_v41, %v4123_v38  ;;  %v1268_v35 = vpop.permute.xlu0 %1267 }
 0x3fc   : > { %v1387_v13 = vadd.f32 %v1386_v52, %v1385_v15  ;;  %v1396_v57 = vadd.f32 %v1395_v47, %v1394_v39  ;;  %v1548_v45 = vmax.f32 %v1546_v32, %v1547_v26  ;;  %v1402_v0 = vrot.slane %v1401_v17, 4  ;;  %v1238_v31 = vpop.permute.xlu1 %1237 }
 0x3fd   : > { %v1557_v55 = vmax.f32 %v1555_v62, %v1556_v46  ;;  %v1411_v59 = vrot.slane %v1410_v37, 4  ;;  %v1563_v10 = vrot.slane %v1562_v33, 4  ;;  %v1572_v5 = vrot.slane %v1571_v28, 4 }
 0x3fe   : > { %v1388_v1 = vrot.slane %v1387_v13, 1  ;;  %v1397_v63 = vrot.slane %v1396_v57, 1  ;;  %v1549_v48 = vrot.slane %v1548_v45, 1  ;;  %v1403_v27 = vadd.f32 %v1402_v0, %v1401_v17 }
 0x3ff   : > { %v1558_v56 = vrot.slane %v1557_v55, 1  ;;  %v1412_v12 = vadd.f32 %v1411_v59, %v1410_v37  ;;  %v1564_v16 = vmax.f32 %v1562_v33, %v1563_v10  ;;  %v1573_v23 = vmax.f32 %v1571_v28, %v1572_v5 }
 0x400   : > { %v1389_v41 = vadd.f32 %v1388_v1, %v1387_v13  ;;  %v1398_v15 = vadd.f32 %v1397_v63, %v1396_v57  ;;  %v1550_v39 = vmax.f32 %v1548_v45, %v1549_v48  ;;  %v4716_v32 = vmax.f32 %v3984_v34, %v3978_v21  ;;  %v3000_v63 = vld [vmem:[%s3395_s8 + $0x190] sm:$0xff] }
 0x401   : > { %v1404_v52 = vrot.slane %v1403_v27, 2  ;;  %v1413_v47 = vrot.slane %v1412_v12, 2  ;;  %v1565_v26 = vrot.slane %v1564_v16, 2  ;;  %v1574_v46 = vrot.slane %v1573_v23, 2 }
 0x402   : > { %v1579_v62 = vmax.f32 %v4716_v32, %v4114_v60  ;;  %v1494_v0 = vmul.f32 0.03125, %v1389_v41  ;;  %v4145_v17 = vmax.f32 %v1557_v55, %v1558_v56  ;;  %v4717_v5 = vmax.f32 %v3987_v30, %v3981_v22  ;;  %v3001_v55 = vld [vmem:[%s3395_s8 + $0x198] sm:$0xff]  ;;  %v1272_v41 = vpop.permute.xlu1 %1271 }
 0x403   : > { %v4152_v10 = vmul.f32 %v3000_v63, %v1253_v40  ;;  %v1405_v48 = vadd.f32 %v1404_v52, %v1403_v27  ;;  %v1414_v37 = vadd.f32 %v1413_v47, %v1412_v12  ;;  %v1566_v33 = vmax.f32 %v1564_v16, %v1565_v26  ;;  %v1223_v16 = vpop.permute.xlu0 %1222  ;;  %v3002_v52 = vld [vmem:[%s3395_s8 + $0x1c0] sm:$0xff]  ;;  %v3003_v26 = vld [vmem:[%s3395_s8 + $0x1c8] sm:$0xff] }
 0x404   : > { %v1588_v1 = vmax.f32 %v4717_v5, %v4117_v54  ;;  %v1575_v28 = vmax.f32 %v1573_v23, %v1574_v46  ;;  %v4154_v13 = vmul.f32 0.03125, %v1398_v15  ;;  %v4158_v57 = vsel %vm732_vm4, %v1494_v0, %v4080_v42  ;;  %v3004_v0 = vld [vmem:[%s3395_s8 + $0x160] sm:$0xff]  ;;  %v3005_v63 = vld [vmem:[%s3395_s8 + $0x168] sm:$0xff]  ;;  %v3007_v15 = vld [vmem:[%s3395_s8 + $0x138] sm:$0xff] }
 0x405   : > { %v4162_v56 = vsel %vm732_vm4, %v1550_v39, %v4086_v43  ;;  %v4165_v45 = vmul.f32 %v3001_v55, %v1253_v40  ;;  %v1406_v59 = vrot.slane %v1405_v48, 1  ;;  %v1415_v27 = vrot.slane %v1414_v37, 1  ;;  %v3006_v40 = vld [vmem:[%s3395_s8 + $0x130] sm:$0xff] }
 0x406   : > { %v1567_v12 = vrot.slane %v1566_v33, 1  ;;  %v1576_v23 = vrot.slane %v1575_v28, 1  ;;  %v4169_v42 = vadd.f32 %v4152_v10, %v4108_v19  ;;  %v4180_v47 = vmul.f32 %v3002_v52, %v1268_v35 }
 0x407   : > { %v4173_v43 = vadd.f32 %v4165_v45, %v4111_v11  ;;  %v1407_v39 = vadd.f32 %v1406_v59, %v1405_v48  ;;  %v1416_v32 = vadd.f32 %v1415_v27, %v1414_v37  ;;  %v4183_v46 = vmul.f32 %v3003_v26, %v1268_v35  ;;  %v3008_v27 = vld [vmem:[%s3395_s8 + $0x1d0] sm:$0xff]  ;;  %v3009_v35 = vld [vmem:[%s3395_s8 + $0x1d8] sm:$0xff] }
 0x408   : > { %4718 = vst [vmem:[#allocation52_spill] sm:$0xff] %v4180_v47  ;;  %v4186_v5 = vmul.f32 %v3004_v0, %v1238_v31  ;;  %v4189_v55 = vmul.f32 %v3005_v63, %v1238_v31  ;;  %v4192_v54 = vmul.f32 %v3006_v40, %v1223_v16  ;;  %v4195_v48 = vmul.f32 %v3007_v15, %v1223_v16  ;;  %v1257_v15 = vpop.permute.xlu1 %1256 }
 0x409   : > { %4719 = vst [vmem:[#allocation53_spill] sm:$0xff] %v4183_v46  ;;  %v4197_v37 = vmax.f32 %v1566_v33, %v1567_v12  ;;  %v4199_v59 = vmax.f32 %v1575_v28, %v1576_v23  ;;  %v4202_v52 = vmul.f32 %v3008_v27, %v1272_v41  ;;  %v4205_v26 = vmul.f32 %v3009_v35, %v1272_v41  ;;  %v1242_v41 = vpop.permute.xlu0 %1241  ;;  %v3010_v35 = vld [vmem:[%s3395_s8 + $0x170] sm:$0xff] }
 0x40a   : > { %4720 = vst [vmem:[#allocation54_spill] sm:$0xff] %v4186_v5  ;;  %4721 = vst [vmem:[#allocation55_spill] sm:$0xff] %v4189_v55  ;;  %v4207_v0 = vmul.f32 0.03125, %v1407_v39  ;;  %v4209_v31 = vmul.f32 0.03125, %v1416_v32  ;;  %v1436_v40 = vadd.f32 %v4101_v25, %v4186_v5  ;;  %v1445_v33 = vadd.f32 %v4105_v18, %v4189_v55 }
 0x40b   : > { %4722 = vst [vmem:[#allocation56_spill] sm:$0xff] %v4192_v54  ;;  %4723 = vst [vmem:[#allocation57_spill] sm:$0xff] %v4195_v48  ;;  %v1419_v28 = vadd.f32 %v4131_v2, %v4192_v54  ;;  %v1428_v12 = vadd.f32 %v4135_v51, %v4195_v48  ;;  %v1580_v23 = vmax.f32 %v1579_v62, %v4192_v54 }
 0x40c   : > { %4724 = vst [vmem:[#allocation58_spill] sm:$0xff] %v4202_v52  ;;  %4725 = vst [vmem:[#allocation59_spill] sm:$0xff] %v4205_v26  ;;  %v1589_v16 = vmax.f32 %v1588_v1, %v4195_v48  ;;  %v4726_v25 = vmax.f32 %v4044_v4, %v4074_v44  ;;  %v4727_v2 = vmax.f32 %v4047_v14, %v4077_v7  ;;  %v3012_v7 = vld [vmem:[%s3395_s8 + $0x1a0] sm:$0xff] }
 0x40d   : > { %v4231_v51 = vadd.f32 %v4202_v52, %v4180_v47  ;;  %v4235_v62 = vadd.f32 %v4205_v26, %v4183_v46  ;;  %v1420_v1 = vrot.slane %v1419_v28, 4  ;;  %v1429_v32 = vrot.slane %v1428_v12, 4 }
 0x40e   : > { %v1597_v18 = vmax.f32 %v4726_v25, %v4186_v5  ;;  %v1606_v39 = vmax.f32 %v4727_v2, %v4189_v55  ;;  %v1581_v63 = vrot.slane %v1580_v23, 4  ;;  %v1590_v27 = vrot.slane %v1589_v16, 4  ;;  %v3011_v25 = vld [vmem:[%s3395_s8 + $0x178] sm:$0xff]  ;;  %v3013_v55 = vld [vmem:[%s3395_s8 + $0x1a8] sm:$0xff] }
 0x40f   : > { %v4238_v44 = vmul.f32 %v3010_v35, %v1242_v41  ;;  %v4241_v5 = vmul.f32 %v3011_v25, %v1242_v41  ;;  %v4244_v2 = vmul.f32 %v3012_v7, %v1257_v15  ;;  %v4247_v14 = vmul.f32 %v3013_v55, %v1257_v15 }
 0x410   : > { %v1421_v4 = vadd.f32 %v1420_v1, %v1419_v28  ;;  %v1430_v48 = vadd.f32 %v1429_v32, %v1428_v12  ;;  %v1582_v54 = vmax.f32 %v1580_v23, %v1581_v63  ;;  %v1591_v60 = vmax.f32 %v1589_v16, %v1590_v27 }
 0x411   : > { %4728 = vst [vmem:[#allocation60_spill] sm:$0xff] %v4238_v44  ;;  %4729 = vst [vmem:[#allocation61_spill] sm:$0xff] %v4241_v5  ;;  %v1437_v22 = vadd.f32 %v1436_v40, %v4238_v44  ;;  %v1446_v21 = vadd.f32 %v1445_v33, %v4241_v5  ;;  %v1598_v35 = vmax.f32 %v1597_v18, %v4238_v44 }
 0x412   : > { %v1607_v30 = vmax.f32 %v1606_v39, %v4241_v5  ;;  %v1422_v41 = vrot.slane %v1421_v4, 2  ;;  %v1431_v25 = vrot.slane %v1430_v48, 2  ;;  %v1583_v34 = vrot.slane %v1582_v54, 2 }
 0x413   : > { %v1592_v7 = vrot.slane %v1591_v60, 2  ;;  %v1438_v38 = vrot.slane %v1437_v22, 4  ;;  %v1447_v29 = vrot.slane %v1446_v21, 4  ;;  %v1599_v55 = vrot.slane %v1598_v35, 4 }
 0x414   : > { %v1608_v15 = vrot.slane %v1607_v30, 4  ;;  %v1423_v28 = vadd.f32 %v1422_v41, %v1421_v4  ;;  %v1432_v12 = vadd.f32 %v1431_v25, %v1430_v48  ;;  %v1584_v23 = vmax.f32 %v1582_v54, %v1583_v34  ;;  %v1276_v41 = vpop.permute.xlu1 %1275 }
 0x415   : > { %v1593_v16 = vmax.f32 %v1591_v60, %v1592_v7  ;;  %v1439_v1 = vadd.f32 %v1438_v38, %v1437_v22  ;;  %v1448_v40 = vadd.f32 %v1447_v29, %v1446_v21  ;;  %v1600_v32 = vmax.f32 %v1598_v35, %v1599_v55  ;;  %v1261_v60 = vpop.permute.xlu0 %1260 }
 0x416   : > { %v1609_v33 = vmax.f32 %v1607_v30, %v1608_v15  ;;  %v1424_v63 = vrot.slane %v1423_v28, 1  ;;  %v1433_v18 = vrot.slane %v1432_v12, 1  ;;  %v1585_v27 = vrot.slane %v1584_v23, 1 }
 0x417   : > { %v1594_v39 = vrot.slane %v1593_v16, 1  ;;  %v1440_v5 = vrot.slane %v1439_v1, 2  ;;  %v1449_v44 = vrot.slane %v1448_v40, 2  ;;  %v1601_v24 = vrot.slane %v1600_v32, 2 }
 0x418   : > { %v1610_v20 = vrot.slane %v1609_v33, 2  ;;  %v1425_v58 = vadd.f32 %v1424_v63, %v1423_v28  ;;  %v1434_v53 = vadd.f32 %v1433_v18, %v1432_v12  ;;  %v1632_v4 = vmax.f32 %v4180_v47, %v4202_v52 }
 0x419   : > { %v1641_v34 = vmax.f32 %v4183_v46, %v4205_v26  ;;  %v1441_v22 = vadd.f32 %v1440_v5, %v1439_v1  ;;  %v1450_v21 = vadd.f32 %v1449_v44, %v1448_v40  ;;  %v1602_v30 = vmax.f32 %v1600_v32, %v1601_v24 }
 0x41a   : > { %v1611_v29 = vmax.f32 %v1609_v33, %v1610_v20  ;;  %v4257_v54 = vmax.f32 %v1584_v23, %v1585_v27  ;;  %v4259_v38 = vmax.f32 %v1593_v16, %v1594_v39  ;;  %v1454_v48 = vadd.f32 %v4169_v42, %v4244_v2  ;;  %v3014_v42 = vld [vmem:[%s3395_s8 + $0x1b0] sm:$0xff] }
 0x41b   : > { %v1463_v35 = vadd.f32 %v4173_v43, %v4247_v14  ;;  %v1442_v25 = vrot.slane %v1441_v22, 1  ;;  %v1451_v7 = vrot.slane %v1450_v21, 1  ;;  %v1603_v5 = vrot.slane %v1602_v30, 1  ;;  %v3015_v43 = vld [vmem:[%s3395_s8 + $0x1b8] sm:$0xff] }
 0x41c   : > { %v1612_v55 = vrot.slane %v1611_v29, 1  ;;  %v4730_v20 = vmax.f32 %v4108_v19, %v4152_v10  ;;  %v4731_v44 = vmax.f32 %v4111_v11, %v4165_v45  ;;  %v4274_v28 = vmul.f32 %v3014_v42, %v1261_v60 }
 0x41d   : > { %v4277_v12 = vmul.f32 %v3015_v43, %v1261_v60  ;;  %v4279_v23 = vmul.f32 0.03125, %v1425_v58  ;;  %v4281_v16 = vmul.f32 0.03125, %v1434_v53  ;;  %v1443_v1 = vadd.f32 %v1442_v25, %v1441_v22  ;;  %v3016_v60 = vld [vmem:[%s3395_s8 + $0x1e0] sm:$0xff]  ;;  %v3017_v58 = vld [vmem:[%s3395_s8 + $0x1e8] sm:$0xff]  ;;  %v1280_v25 = vpop.permute.xlu1 %1279  ;;  %v3018_v43 = vld [vmem:[%s3395_s8 + $0x1f0] sm:$0xff] }
 0x41e   : > { %v1615_v24 = vmax.f32 %v4730_v20, %v4244_v2  ;;  %v1624_v15 = vmax.f32 %v4731_v44, %v4247_v14  ;;  %v1452_v40 = vadd.f32 %v1451_v7, %v1450_v21  ;;  %v1455_v32 = vadd.f32 %v1454_v48, %v4274_v28 }
 0x41f   : > { %4732 = vst [vmem:[#allocation62_spill] sm:$0xff] %v4277_v12  ;;  %v1464_v33 = vadd.f32 %v1463_v35, %v4277_v12  ;;  %v4287_v27 = vmax.f32 %v1602_v30, %v1603_v5  ;;  %v4289_v39 = vmax.f32 %v1611_v29, %v1612_v55  ;;  %v4292_v20 = vmul.f32 %v3016_v60, %v1276_v41 }
 0x420   : > { %v1616_v63 = vmax.f32 %v1615_v24, %v4274_v28  ;;  %v1625_v18 = vmax.f32 %v1624_v15, %v4277_v12  ;;  %v4295_v53 = vmul.f32 %v3017_v58, %v1276_v41  ;;  %v1456_v22 = vrot.slane %v1455_v32, 4 }
 0x421   : > { %4733 = vst [vmem:[#allocation63_spill] sm:$0xff] %v4292_v20  ;;  %v1465_v21 = vrot.slane %v1464_v33, 4  ;;  %v4297_v7 = vmul.f32 0.03125, %v1443_v1  ;;  %v4299_v24 = vmul.f32 0.03125, %v1452_v40  ;;  %v1472_v30 = vadd.f32 %v4231_v51, %v4292_v20  ;;  %v3019_v1 = vld [vmem:[%s3395_s8 + $0x1f8] sm:$0xff] }
 0x422   : > { %4734 = vst [vmem:[#allocation64_spill] sm:$0xff] %v4295_v53  ;;  %v1617_v48 = vrot.slane %v1616_v63, 4  ;;  %v1626_v35 = vrot.slane %v1625_v18, 4  ;;  %v1481_v29 = vadd.f32 %v4235_v62, %v4295_v53  ;;  %v1457_v5 = vadd.f32 %v1456_v22, %v1455_v32 }
 0x423   : > { %v1466_v41 = vadd.f32 %v1465_v21, %v1464_v33  ;;  %v1633_v15 = vmax.f32 %v1632_v4, %v4292_v20  ;;  %v1642_v42 = vmax.f32 %v1641_v34, %v4295_v53  ;;  %v4308_v60 = vmul.f32 %v3018_v43, %v1280_v25 }
 0x424   : > { %v1618_v55 = vmax.f32 %v1616_v63, %v1617_v48  ;;  %v1627_v44 = vmax.f32 %v1625_v18, %v1626_v35  ;;  %v4311_v40 = vmul.f32 %v3019_v1, %v1280_v25  ;;  %v1458_v58 = vrot.slane %v1457_v5, 2 }
 0x425   : > { %v1467_v26 = vrot.slane %v1466_v41, 2  ;;  %v1473_v62 = vadd.f32 %v1472_v30, %v4308_v60  ;;  %v1634_v33 = vmax.f32 %v1633_v15, %v4308_v60 }
 0x426   : > { %v1619_v51 = vrot.slane %v1618_v55, 2  ;;  %v1628_v52 = vrot.slane %v1627_v44, 2  ;;  %v1482_v32 = vadd.f32 %v1481_v29, %v4311_v40  ;;  %v1643_v4 = vmax.f32 %v1642_v42, %v4311_v40 }
 0x427   : > { %v1459_v63 = vadd.f32 %v1458_v58, %v1457_v5  ;;  %v1468_v34 = vadd.f32 %v1467_v26, %v1466_v41  ;;  %v1474_v21 = vrot.slane %v1473_v62, 4  ;;  %v1635_v35 = vrot.slane %v1634_v33, 4 }
 0x428   : > { %v1620_v18 = vmax.f32 %v1618_v55, %v1619_v51  ;;  %v1629_v22 = vmax.f32 %v1627_v44, %v1628_v52  ;;  %v1483_v48 = vrot.slane %v1482_v32, 4  ;;  %v1644_v25 = vrot.slane %v1643_v4, 4 }
 0x429   : > { %v1460_v43 = vrot.slane %v1459_v63, 1  ;;  %v1469_v1 = vrot.slane %v1468_v34, 1  ;;  %v1475_v46 = vadd.f32 %v1474_v21, %v1473_v62  ;;  %v1636_v47 = vmax.f32 %v1634_v33, %v1635_v35 }
 0x42a   : > { %v1621_v53 = vrot.slane %v1620_v18, 1  ;;  %v1630_v20 = vrot.slane %v1629_v22, 1  ;;  %v1484_v30 = vadd.f32 %v1483_v48, %v1482_v32  ;;  %v1645_v29 = vmax.f32 %v1643_v4, %v1644_v25 }
 0x42b   : > { %v1461_v12 = vadd.f32 %v1460_v43, %v1459_v63  ;;  %v1470_v15 = vadd.f32 %v1469_v1, %v1468_v34  ;;  %v1706_v26 = vsel %vm732_vm4, %v4145_v17, %v4089_v61  ;;  %v1700_v52 = vsel %vm734_vm5, %v4197_v37, %v4162_v56 }
 0x42c   : > { %v1476_v5 = vrot.slane %v1475_v46, 2  ;;  %v1485_v41 = vrot.slane %v1484_v30, 2  ;;  %v1637_v55 = vrot.slane %v1636_v47, 2  ;;  %v1646_v44 = vrot.slane %v1645_v29, 2 }
 0x42d   : > { %v1622_v42 = vmax.f32 %v1620_v18, %v1621_v53  ;;  %v1631_v58 = vmax.f32 %v1629_v22, %v1630_v20  ;;  %v1707_v51 = vsel %vm734_vm5, %v4199_v59, %v1706_v26  ;;  %v1701_v62 = vsel %vm736_vm6, %v4257_v54, %v1700_v52 }
 0x42e   : > { %v1477_v32 = vadd.f32 %v1476_v5, %v1475_v46  ;;  %v1486_v33 = vadd.f32 %v1485_v41, %v1484_v30  ;;  %v1638_v4 = vmax.f32 %v1636_v47, %v1637_v55  ;;  %v1647_v61 = vmax.f32 %v1645_v29, %v1646_v44 }
 0x42f   : > { %v1502_v17 = vmul.f32 0.03125, %v1461_v12  ;;  %v1708_v56 = vsel %vm736_vm6, %v4259_v38, %v1707_v51  ;;  %v1702_v37 = vsel %vm738_vm7, %v4287_v27, %v1701_v62  ;;  %v1503_v63 = vmul.f32 0.03125, %v1470_v15 }
 0x430   : > { %v1478_v53 = vrot.slane %v1477_v32, 1  ;;  %v1487_v20 = vrot.slane %v1486_v33, 1  ;;  %v1639_v34 = vrot.slane %v1638_v4, 1  ;;  %v1648_v18 = vrot.slane %v1647_v61, 1 }
 0x431   : > { %v1709_v59 = vsel %vm738_vm7, %v4289_v39, %v1708_v56  ;;  %v1703_v46 = vsel %vm740_vm8, %v1622_v42, %v1702_v37  ;;  %v1674_v47 = vsel %vm732_vm4, %v4154_v13, %v4083_v50  ;;  %v1668_v54 = vsel %vm734_vm5, %v4207_v0, %v4158_v57 }
 0x432   : > { %v1479_v38 = vadd.f32 %v1478_v53, %v1477_v32  ;;  %v1640_v12 = vmax.f32 %v1638_v4, %v1639_v34  ;;  %v1649_v27 = vmax.f32 %v1647_v61, %v1648_v18  ;;  %v1675_v22 = vsel %vm734_vm5, %v4209_v31, %v1674_v47 }
 0x433   : > { %v1710_v21 = vsel %vm740_vm8, %v1631_v58, %v1709_v59  ;;  %v1488_v48 = vadd.f32 %v1487_v20, %v1486_v33  ;;  %v1676_v39 = vsel %vm736_vm6, %v4281_v16, %v1675_v22  ;;  %v1669_v35 = vsel %vm736_vm6, %v4279_v23, %v1668_v54 }
 0x434   : > { %v1504_v50 = vmul.f32 0.03125, %v1479_v38  ;;  %v1711_v13 = vsel %vm742_vm9, %v1649_v27, %v1710_v21  ;;  %v1704_v57 = vsel %vm742_vm9, %v1640_v12, %v1703_v46  ;;  %v1670_v0 = vsel %vm738_vm7, %v4297_v7, %v1669_v35 }
 0x435   : > { %v1717_v25 = vpack.c.bf16 %v1711_v13, %v1711_v13  ;;  %v1716_v43 = vpack.c.bf16 %v1704_v57, %v1704_v57  ;;  %v1505_v31 = vmul.f32 0.03125, %v1488_v48  ;;  %v1677_v1 = vsel %vm738_vm7, %v4299_v24, %v1676_v39 }
 0x436   : > { %v1678_v30 = vsel %vm740_vm8, %v1503_v63, %v1677_v1  ;;  %v1671_v16 = vsel %vm740_vm8, %v1502_v17, %v1670_v0  ;;  %v1783_v5 = vstv %s1782_s22  ;;  %v3185_v53 = vmov 1966171168  }
 0x437   : > { %2177 = vmatprep.mubr.bf16.mxu0 %v1717_v25  ;;  %v1679_v23 = vsel %vm742_vm9, %v1505_v31, %v1678_v30  ;;  %v1672_v29 = vsel %vm742_vm9, %v1504_v50, %v1671_v16  ;;  %v2203_v20 = vunpack.c.l.s4 %v3185_v53 }
 0x438   : > { %2178 = vmatmul.mubr.bf16.vlgmr.msra.gmra.mrb[4].mxu0 %v1716_v43  ;;  %v1715_v15 = vpack.c.bf16 %v1679_v23, %v1679_v23  ;;  %v1714_v26 = vpack.c.bf16 %v1672_v29, %v1672_v29 }
 0x439   : > { %v2204_v34 = vunpack.c.0.s8 %v2203_v20 }
 0x43a   : > { %2136 = vmatprep.mubr.bf16.mxu1 %v1715_v15 }
 0x43b   : > { %2137 = vmatmul.mubr.bf16.vlgmr.msra.gmra.mrb[4].mxu1 %v1714_v26  ;;  %v2207_v59 = vsub.s32 %v2204_v34, %v3669_v8  ;;  %v4744_v34 = vld [vmem:[#allocation24_spill] sm:$0xff] }
 0x50b   : > { %v2179_v7 = vpop.f32.mrb[4].mxu0 }
 0x50c   : > { %v2181_v52 = vpop.f32.mrb[5].mxu0 }
 0x50d   : > { %v2183_v41 = vpop.f32.mrb[6].mxu0 }
 0x50e   : > { %v2138_v24 = vpop.f32.mrb[4].mxu1  ;;  %v2184_v55 = vpop.f32.mrb[7].mxu0 }
 0x50f   : > { %v2139_v44 = vadd.f32 %v2138_v24, %v1783_v5  ;;  %v2140_v42 = vpop.f32.mrb[5].mxu1 }
 0x510   : > { %v2141_v58 = vadd.f32 %v2140_v42, %v1783_v5  ;;  %v2142_v51 = vpop.f32.mrb[6].mxu1 }
 0x511   : > { %v2180_v62 = vadd.f32 %v2179_v7, %v2139_v44  ;;  %v2143_v32 = vpop.f32.mrb[7].mxu1 }
 0x512   : > { %v2182_v33 = vadd.f32 %v2181_v52, %v2141_v58  ;;  %v4735_v58 = vld [vmem:[#allocation13_spill] sm:$0xff] }
 0x513   : > { %v2648_v4 = vmul.f32 -1.442695, %v2180_v62  ;;  %v4736_v62 = vld [vmem:[#allocation16_spill] sm:$0xff] }
 0x514   : > { %v2649_v61 = vmul.f32 -1.442695, %v2182_v33  ;;  %v4737_v33 = vld [vmem:[#allocation17_spill] sm:$0xff] }
 0x515   : > { %2948 = vpow2.f32 %v2648_v4 }
 0x516   : > { %2950 = vpow2.f32 %v2649_v61  ;;  %v4738_v61 = vld [vmem:[#allocation38_spill] sm:$0xff] }
 0x51f   : > { %v2949_v17 = vpop.eup %2948 }
 0x520   : > { %v2951_v56 = vpop.eup %2950  ;;  %v2192_v37 = vadd.f32 1.0, %v2949_v17 }
 0x521   : > { %v2193_v63 = vadd.f32 1.0, %v2951_v56  ;;  %v4739_v56 = vld [vmem:[#allocation39_spill] sm:$0xff] }
 0x522   : > { %2952 = vrcp.f32 %v2192_v37  ;;  %v4740_v37 = vld [vmem:[#allocation18_spill] sm:$0xff] }
 0x523   : > { %2954 = vrcp.f32 %v2193_v63 }
 0x52c   : > { %v2953_v18 = vpop.eup %2952 }
 0x52d   : > { %v2955_v46 = vpop.eup %2954 }
 0x52e   : > { %v2200_v47 = vcombine.low %v2953_v18, %v2955_v46  ;;  %v2201_v54 = vcombine.high %v2953_v18, %v2955_v46 }
 0x530   : > { %v2208_v38 = vrot.slane %v2200_v47, %v2207_v59  ;;  %v2215_v12 = vrot.slane %v2201_v54, %v2207_v59  ;;  %v4746_v47 = vld [vmem:[#allocation36_spill] sm:$0xff] }
 0x532   : > { %v2216_v27 = vcombine.high %v2208_v38, %v2208_v38  ;;  %v2217_v22 = vcombine.high %v2215_v12, %v2215_v12  ;;  %v2224_v21 = vrot.slane %v2208_v38, %v2207_v59  ;;  %v2231_v48 = vrot.slane %v2215_v12, %v2207_v59  ;;  %v4747_v38 = vld [vmem:[#allocation37_spill] sm:$0xff] }
 0x534   : > { %v2238_v39 = vrot.slane %v2216_v27, %v2207_v59  ;;  %v2245_v35 = vrot.slane %v2217_v22, %v2207_v59  ;;  %v2246_v50 = vcombine.high %v2224_v21, %v2224_v21  ;;  %v2247_v13 = vcombine.high %v2231_v48, %v2231_v48  ;;  %v4745_v59 = vld [vmem:[#allocation25_spill] sm:$0xff]  ;;  %v4748_v27 = vld [vmem:[#allocation20_spill] sm:$0xff] }
 0x535   : > { %v2253_v57 = vrot.slane %v2224_v21, %v3842_v49  ;;  %v2257_v0 = vrot.slane %v2224_v21, %v3849_v36  ;;  %v4361_v25 = vrot.slane %v2231_v48, %v3842_v49  ;;  %v4364_v8 = vrot.slane %v2231_v48, %v3849_v36  ;;  %v4749_v21 = vld [vmem:[#allocation21_spill] sm:$0xff] }
 0x536   : > { %v2248_v43 = vcombine.high %v2238_v39, %v2238_v39  ;;  %v2249_v31 = vcombine.high %v2245_v35, %v2245_v35  ;;  %v2261_v1 = vrot.slane %v2238_v39, %v3842_v49  ;;  %v2265_v30 = vrot.slane %v2238_v39, %v3849_v36  ;;  %v4750_v39 = vld [vmem:[#allocation22_spill] sm:$0xff] }
 0x537   : > { %v2269_v16 = vrot.slane %v2246_v50, %v3842_v49  ;;  %v2273_v23 = vrot.slane %v2246_v50, %v3849_v36  ;;  %v4371_v29 = vrot.slane %v2245_v35, %v3842_v49  ;;  %v4374_v15 = vrot.slane %v2245_v35, %v3849_v36  ;;  %v4751_v50 = vld [vmem:[#allocation23_spill] sm:$0xff] }
 0x538   : > { %v2277_v26 = vrot.slane %v2248_v43, %v3842_v49  ;;  %v2281_v7 = vrot.slane %v2248_v43, %v3849_v36  ;;  %v4379_v52 = vrot.slane %v2247_v13, %v3842_v49  ;;  %v4382_v5 = vrot.slane %v2247_v13, %v3849_v36  ;;  %v4753_v43 = vld [vmem:[#allocation27_spill] sm:$0xff] }
 0x539   : > { %v4385_v41 = vrot.slane %v2249_v31, %v3842_v49  ;;  %v4388_v24 = vrot.slane %v2249_v31, %v3849_v36  ;;  %v2330_v55 = vmul.f32 %v2253_v57, %v3872_v6  ;;  %v2331_v44 = vmul.f32 %v2257_v0, %v3875_v9  ;;  %v4741_v36 = vld [vmem:[#allocation19_spill] sm:$0xff] }
 0x53a   : > { %v2332_v42 = vmul.f32 %v2253_v57, %v3866_v3  ;;  %v2333_v51 = vmul.f32 %v2257_v0, %v4735_v58  ;;  %v2334_v32 = vmul.f32 %v2253_v57, %v4736_v62  ;;  %v2335_v4 = vmul.f32 %v2257_v0, %v4737_v33  ;;  %v4742_v3 = vld [vmem:[#allocation14_spill] sm:$0xff]  ;;  %v4743_v9 = vld [vmem:[#allocation15_spill] sm:$0xff] }
 0x53b   : > { %v2336_v17 = vmul.f32 %v2253_v57, %v4738_v61  ;;  %v2337_v49 = vmul.f32 %v2257_v0, %v4739_v56  ;;  %v2338_v63 = vmul.f32 %v2261_v1, %v4740_v37  ;;  %v2339_v53 = vmul.f32 %v2265_v30, %v4741_v36  ;;  %2394 = vst [vmem:[%s4402_s24] sm:$0xff] %v2330_v55  ;;  %v4752_v57 = vld [vmem:[#allocation26_spill] sm:$0xff]  ;;  %v4755_v55 = vld [vmem:[#allocation45_spill] sm:$0xff]  ;;  %v4761_v56 = vld [vmem:[#allocation43_spill] sm:$0xff] }
 0x53c   : > { %2395 = vst [vmem:[%s4402_s24 + $0x8] sm:$0xff] %v2331_v44  ;;  %v2340_v6 = vmul.f32 %v2261_v1, %v4742_v3  ;;  %v2341_v20 = vmul.f32 %v2265_v30, %v4743_v9  ;;  %v2342_v18 = vmul.f32 %v2261_v1, %v4744_v34  ;;  %v2343_v46 = vmul.f32 %v2265_v30, %v4745_v59 }
 0x53d   : > { %2396 = vst [vmem:[%s4402_s24 + $0x10] sm:$0xff] %v2332_v42  ;;  %2397 = vst [vmem:[%s4402_s24 + $0x18] sm:$0xff] %v2333_v51  ;;  %v2344_v54 = vmul.f32 %v2261_v1, %v4746_v47  ;;  %v2345_v12 = vmul.f32 %v2265_v30, %v4747_v38  ;;  %v2346_v22 = vmul.f32 %v2269_v16, %v4748_v27  ;;  %v4754_v1 = vld [vmem:[#allocation44_spill] sm:$0xff]  ;;  %v4757_v51 = vld [vmem:[#allocation29_spill] sm:$0xff] }
 0x53e   : > { %2398 = vst [vmem:[%s4402_s24 + $0x20] sm:$0xff] %v2334_v32  ;;  %2399 = vst [vmem:[%s4402_s24 + $0x28] sm:$0xff] %v2335_v4  ;;  %v2347_v48 = vmul.f32 %v2273_v23, %v4749_v21  ;;  %v2348_v35 = vmul.f32 %v2269_v16, %v4750_v39  ;;  %v2349_v13 = vmul.f32 %v2273_v23, %v4751_v50  ;;  %v4756_v42 = vld [vmem:[#allocation28_spill] sm:$0xff]  ;;  %v4758_v32 = vld [vmem:[#allocation30_spill] sm:$0xff] }
 0x53f   : > { %2400 = vst [vmem:[%s4402_s24 + $0x30] sm:$0xff] %v2336_v17  ;;  %2401 = vst [vmem:[%s4402_s24 + $0x38] sm:$0xff] %v2337_v49  ;;  %v2350_v0 = vmul.f32 %v2269_v16, %v4752_v57  ;;  %v2351_v31 = vmul.f32 %v2273_v23, %v4753_v43  ;;  %v2352_v30 = vmul.f32 %v2269_v16, %v4754_v1  ;;  %v4759_v4 = vld [vmem:[#allocation31_spill] sm:$0xff]  ;;  %v4760_v17 = vld [vmem:[#allocation42_spill] sm:$0xff] }
 0x540   : > { %2402 = vst [vmem:[%s4402_s24 + $0x40] sm:$0xff] %v2338_v63  ;;  %2403 = vst [vmem:[%s4402_s24 + $0x48] sm:$0xff] %v2339_v53  ;;  %v2353_v44 = vmul.f32 %v2273_v23, %v4755_v55  ;;  %v2354_v58 = vmul.f32 %v2277_v26, %v4756_v42  ;;  %v2355_v62 = vmul.f32 %v2281_v7, %v4757_v51  ;;  %v4762_v49 = vld [vmem:[#allocation50_spill] sm:$0xff]  ;;  %v4763_v63 = vld [vmem:[#allocation51_spill] sm:$0xff] }
 0x541   : > { %2404 = vst [vmem:[%s4402_s24 + $0x50] sm:$0xff] %v2340_v6  ;;  %2405 = vst [vmem:[%s4402_s24 + $0x58] sm:$0xff] %v2341_v20  ;;  %v2356_v33 = vmul.f32 %v2277_v26, %v4758_v32  ;;  %v2357_v61 = vmul.f32 %v2281_v7, %v4759_v4  ;;  %v2358_v16 = vmul.f32 %v2277_v26, %v4760_v17  ;;  %v4764_v53 = vld [vmem:[#allocation34_spill] sm:$0xff]  ;;  %v4765_v6 = vld [vmem:[#allocation35_spill] sm:$0xff] }
 0x542   : > { %2406 = vst [vmem:[%s4402_s24 + $0x60] sm:$0xff] %v2342_v18  ;;  %2407 = vst [vmem:[%s4402_s24 + $0x68] sm:$0xff] %v2343_v46  ;;  %v2359_v23 = vmul.f32 %v2281_v7, %v4761_v56  ;;  %v2360_v37 = vmul.f32 %v2277_v26, %v4762_v49  ;;  %v2361_v36 = vmul.f32 %v2281_v7, %v4763_v63  ;;  %v4766_v20 = vld [vmem:[#allocation32_spill] sm:$0xff]  ;;  %v4767_v26 = vld [vmem:[#allocation33_spill] sm:$0xff] }
 0x543   : > { %2408 = vst [vmem:[%s4402_s24 + $0x70] sm:$0xff] %v2344_v54  ;;  %2409 = vst [vmem:[%s4402_s24 + $0x78] sm:$0xff] %v2345_v12  ;;  %v2362_v3 = vmul.f32 %v4361_v25, %v4764_v53  ;;  %v2363_v9 = vmul.f32 %v4364_v8, %v4765_v6  ;;  %v2364_v34 = vmul.f32 %v4361_v25, %v4766_v20  ;;  %v4768_v18 = vld [vmem:[#allocation48_spill] sm:$0xff]  ;;  %v4769_v46 = vld [vmem:[#allocation49_spill] sm:$0xff] }
 0x544   : > { %2410 = vst [vmem:[%s4402_s24 + $0x80] sm:$0xff] %v2346_v22  ;;  %2411 = vst [vmem:[%s4402_s24 + $0x88] sm:$0xff] %v2347_v48  ;;  %v2365_v7 = vmul.f32 %v4364_v8, %v4767_v26  ;;  %v2366_v59 = vmul.f32 %v4361_v25, %v4768_v18  ;;  %v2367_v47 = vmul.f32 %v4364_v8, %v4769_v46  ;;  %v4770_v54 = vld [vmem:[#allocation56_spill] sm:$0xff]  ;;  %v4771_v12 = vld [vmem:[#allocation57_spill] sm:$0xff] }
 0x545   : > { %2412 = vst [vmem:[%s4402_s24 + $0x90] sm:$0xff] %v2348_v35  ;;  %2413 = vst [vmem:[%s4402_s24 + $0x98] sm:$0xff] %v2349_v13  ;;  %v2368_v38 = vmul.f32 %v4361_v25, %v4770_v54  ;;  %v2369_v27 = vmul.f32 %v4364_v8, %v4771_v12  ;;  %v4772_v22 = vld [vmem:[#allocation40_spill] sm:$0xff]  ;;  %v4773_v48 = vld [vmem:[#allocation41_spill] sm:$0xff]  ;;  %v2379_v42 = vmul.f32 %v4382_v5, %v4111_v11 }
 0x546   : > { %2414 = vst [vmem:[%s4402_s24 + $0xa0] sm:$0xff] %v2350_v0  ;;  %2415 = vst [vmem:[%s4402_s24 + $0xa8] sm:$0xff] %v2351_v31  ;;  %v2370_v21 = vmul.f32 %v4371_v29, %v4772_v22  ;;  %v2371_v39 = vmul.f32 %v4374_v15, %v4773_v48  ;;  %v4774_v35 = vld [vmem:[#allocation46_spill] sm:$0xff]  ;;  %v4775_v50 = vld [vmem:[#allocation47_spill] sm:$0xff]  ;;  %v2383_v11 = vmul.f32 %v4382_v5, %v4247_v14 }
 0x547   : > { %2416 = vst [vmem:[%s4402_s24 + $0xb0] sm:$0xff] %v2352_v30  ;;  %2417 = vst [vmem:[%s4402_s24 + $0xb8] sm:$0xff] %v2353_v44  ;;  %v2372_v25 = vmul.f32 %v4371_v29, %v4774_v35  ;;  %v2373_v8 = vmul.f32 %v4374_v15, %v4775_v50  ;;  %v4776_v13 = vld [vmem:[#allocation54_spill] sm:$0xff]  ;;  %v4777_v0 = vld [vmem:[#allocation55_spill] sm:$0xff]  ;;  %v2378_v44 = vmul.f32 %v4379_v52, %v4108_v19 }
 0x548   : > { %2418 = vst [vmem:[%s4402_s24 + $0xc0] sm:$0xff] %v2354_v58  ;;  %2419 = vst [vmem:[%s4402_s24 + $0xc8] sm:$0xff] %v2355_v62  ;;  %v2374_v57 = vmul.f32 %v4371_v29, %v4776_v13  ;;  %v2375_v43 = vmul.f32 %v4374_v15, %v4777_v0  ;;  %v4778_v31 = vld [vmem:[#allocation60_spill] sm:$0xff]  ;;  %v4779_v30 = vld [vmem:[#allocation61_spill] sm:$0xff]  ;;  %v2382_v19 = vmul.f32 %v4379_v52, %v4244_v2 }
 0x549   : > { %2420 = vst [vmem:[%s4402_s24 + $0xd0] sm:$0xff] %v2356_v33  ;;  %2421 = vst [vmem:[%s4402_s24 + $0xd8] sm:$0xff] %v2357_v61  ;;  %v2376_v1 = vmul.f32 %v4371_v29, %v4778_v31  ;;  %v2377_v55 = vmul.f32 %v4374_v15, %v4779_v30  ;;  %v2380_v29 = vmul.f32 %v4379_v52, %v4152_v10  ;;  %v4780_v58 = vld [vmem:[#allocation62_spill] sm:$0xff]  ;;  %v4781_v51 = vld [vmem:[#allocation52_spill] sm:$0xff] }
 0x54a   : > { %2422 = vst [vmem:[%s4402_s24 + $0xe0] sm:$0xff] %v2358_v16  ;;  %2423 = vst [vmem:[%s4402_s24 + $0xe8] sm:$0xff] %v2359_v23  ;;  %v2381_v15 = vmul.f32 %v4382_v5, %v4165_v45  ;;  %v2384_v10 = vmul.f32 %v4379_v52, %v4274_v28  ;;  %v2385_v45 = vmul.f32 %v4382_v5, %v4780_v58  ;;  %v4782_v62 = vld [vmem:[#allocation53_spill] sm:$0xff]  ;;  %v4783_v32 = vld [vmem:[#allocation58_spill] sm:$0xff] }
 0x54b   : > { %2424 = vst [vmem:[%s4402_s24 + $0xf0] sm:$0xff] %v2360_v37  ;;  %2425 = vst [vmem:[%s4402_s24 + $0xf8] sm:$0xff] %v2361_v36  ;;  %v2386_v2 = vmul.f32 %v4385_v41, %v4781_v51  ;;  %v2387_v14 = vmul.f32 %v4388_v24, %v4782_v62  ;;  %v2388_v28 = vmul.f32 %v4385_v41, %v4783_v32  ;;  %v4784_v52 = vld [vmem:[#allocation59_spill] sm:$0xff]  ;;  %v4786_v61 = vld [vmem:[#allocation64_spill] sm:$0xff] }
 0x54c   : > { %2426 = vst [vmem:[%s4402_s24 + $0x100] sm:$0xff] %v2362_v3  ;;  %2427 = vst [vmem:[%s4402_s24 + $0x108] sm:$0xff] %v2363_v9  ;;  %v2389_v5 = vmul.f32 %v4388_v24, %v4784_v52  ;;  %v4785_v33 = vld [vmem:[#allocation63_spill] sm:$0xff]  ;;  %v2391_v17 = vmul.f32 %v4388_v24, %v4786_v61  ;;  %v2392_v16 = vmul.f32 %v4385_v41, %v4308_v60 }
 0x54d   : > { %2428 = vst [vmem:[%s4402_s24 + $0x110] sm:$0xff] %v2364_v34  ;;  %2429 = vst [vmem:[%s4402_s24 + $0x118] sm:$0xff] %v2365_v7  ;;  %v2390_v4 = vmul.f32 %v4385_v41, %v4785_v33  ;;  %v2393_v56 = vmul.f32 %v4388_v24, %v4311_v40 }
 0x54e   : > { %2430 = vst [vmem:[%s4402_s24 + $0x120] sm:$0xff] %v2366_v59  ;;  %2431 = vst [vmem:[%s4402_s24 + $0x128] sm:$0xff] %v2367_v47 }
 0x54f   : > { %2432 = vst [vmem:[%s4402_s24 + $0x130] sm:$0xff] %v2368_v38  ;;  %2433 = vst [vmem:[%s4402_s24 + $0x138] sm:$0xff] %v2369_v27 }
 0x550   : > { %2434 = vst [vmem:[%s4402_s24 + $0x140] sm:$0xff] %v2370_v21  ;;  %2435 = vst [vmem:[%s4402_s24 + $0x148] sm:$0xff] %v2371_v39 }
 0x551   : > { %2436 = vst [vmem:[%s4402_s24 + $0x150] sm:$0xff] %v2372_v25  ;;  %2437 = vst [vmem:[%s4402_s24 + $0x158] sm:$0xff] %v2373_v8 }
 0x552   : > { %2438 = vst [vmem:[%s4402_s24 + $0x160] sm:$0xff] %v2374_v57  ;;  %2439 = vst [vmem:[%s4402_s24 + $0x168] sm:$0xff] %v2375_v43 }
 0x553   : > { %2440 = vst [vmem:[%s4402_s24 + $0x170] sm:$0xff] %v2376_v1  ;;  %2441 = vst [vmem:[%s4402_s24 + $0x178] sm:$0xff] %v2377_v55 }
 0x554   : > { %2442 = vst [vmem:[%s4402_s24 + $0x180] sm:$0xff] %v2378_v44  ;;  %2443 = vst [vmem:[%s4402_s24 + $0x188] sm:$0xff] %v2379_v42 }
 0x555   : > { %2444 = vst [vmem:[%s4402_s24 + $0x190] sm:$0xff] %v2380_v29  ;;  %2445 = vst [vmem:[%s4402_s24 + $0x198] sm:$0xff] %v2381_v15 }
 0x556   : > { %2446 = vst [vmem:[%s4402_s24 + $0x1a0] sm:$0xff] %v2382_v19  ;;  %2447 = vst [vmem:[%s4402_s24 + $0x1a8] sm:$0xff] %v2383_v11 }
 0x557   : > { %2448 = vst [vmem:[%s4402_s24 + $0x1b0] sm:$0xff] %v2384_v10  ;;  %2449 = vst [vmem:[%s4402_s24 + $0x1b8] sm:$0xff] %v2385_v45 }
 0x558   : > { %2450 = vst [vmem:[%s4402_s24 + $0x1c0] sm:$0xff] %v2386_v2  ;;  %2451 = vst [vmem:[%s4402_s24 + $0x1c8] sm:$0xff] %v2387_v14 }
 0x559   : > { %2452 = vst [vmem:[%s4402_s24 + $0x1d0] sm:$0xff] %v2388_v28  ;;  %2453 = vst [vmem:[%s4402_s24 + $0x1d8] sm:$0xff] %v2389_v5 }
 0x55a   : > { %2454 = vst [vmem:[%s4402_s24 + $0x1e0] sm:$0xff] %v2390_v4  ;;  %2455 = vst [vmem:[%s4402_s24 + $0x1e8] sm:$0xff] %v2391_v17 }
 0x55b   : > { %2456 = vst [vmem:[%s4402_s24 + $0x1f0] sm:$0xff] %v2392_v16  ;;  %2457 = vst [vmem:[%s4402_s24 + $0x1f8] sm:$0xff] %v2393_v56 }
 0x55c   : > { %3119 = shalt.err (!%p3116_p2)
}
 0x55d   : > { %s3120_s12 = scalar_lea.hbm %s4545_s5, 8192  ;;  %s3124_s26 = scalar_lea.hbm %s4609_s4, 16384 }
 0x55e   : > { %p3121_p13 = scmp.ne.s32.totalorder %s4545_s5, %s3120_s12  ;;  %p3125_p4 = scmp.lt.u32.totalorder %s4545_s5, %s4609_s4 }
 0x55f   : > { %p3126_p5 = scmp.lt.u32.totalorder %s3124_s26, %s3120_s12  ;;  %p3128_p11 = scmp.lt.u32.totalorder %s3120_s12, %s4545_s5 }
 0x560   : > { %p3122_p6 = pnand %p3121_p13, %p4787_p0 }
 0x561   : > { %p3127_p8 = por %p3126_p5, %p3125_p4 }
 0x562   : > { %p3123_p10 = pneg %p3122_p6 }
 0x563   : > { %p3129_p1 = por %p3128_p11, %p3127_p8 }
 0x565   : > { %p3130_p3 = pnand %p3129_p1, %p3123_p10 }
 0x567   : > { %3133 = shalt.err (!%p3130_p3)
}
 0x568   : > { %s3187_s22 = smov 256   ;;  %s3188_s24 = smov 16  }
 0x569   : > { %2784 = dma.vmem_to_hbm [thread:$0]  (%p4787_p0), %s4547_s28, 8192, %s4545_s5, %s2459_s27, %s3187_s22, %s3187_s22, %s3188_s24  }
 0x56a PF: > { %s2488_s21 = sand.u32 1, %s3164_s17   ;;  %p4788_p7 = scmp.ne.s32.totalorder %s4666_s23, 0 }
 0x56b   : > { %p4789_p9 = scmp.ge.s32.totalorder %s3176_s20, 2  ;;  %s2489_s3 = scalar_lea.sflag [#allocation5], %s2488_s21 }
 0x56d   : > { %p2798_p12 = pnand %p4789_p9, %p4788_p7 }
 0x56f   : > { %3159 = dma.done.wait (!%p2798_p12), %s2489_s3, 8192  }
 0x570   : > { %3161 = vsyncadd (!%p2798_p12), %s2489_s3, 4294959104  ;;  %p19_p2 = scmp.ge.s32.totalorder %s3327_s9, 4   ;;  %s4790_s17 = smov %s3168_s18 }
 0x571   : > { %s4791_s18 = smov %s3172_s19  ;;  %s4792_s19 = smov %s3343_s14 }
 0x572   : > { %s4793_s20 = smov %s3327_s9  ;;  %21 = sbr.rel (!%p19_p2) target bundleno = 8 (0x8), region = 89 }
 0x579   :  { %2494 = vsyncpa [#allocation4], 1 }
 0x57a   :  { %2496 = vsyncpa [#allocation4 + $0x1], 1 }
 0x57b   :  { %2497 = vsyncpa [#allocation7], 1 }
 0x57c   :  { %2498 = vsyncpa [#allocation5], 1 }
 0x57d   :  { %2500 = vsyncpa [#allocation5 + $0x1], 1 }

</bundles_post_ra>
